<compile_context>
chip_gen: v5e
topology: v5e:2x2
jax: 0.10.0
libtpu: 0.0.40
codegen_flags: <defaults>
</compile_context>

<pallas_src>
import functools

import jax
import jax.numpy as jnp
from jax.experimental import pallas as pl
from jax.experimental.pallas import tpu as pltpu

NULL_LOGIT = -10000.0
EPS = 1e-12  # F.normalize eps


def _round_up(x, m):
    return ((x + m - 1) // m) * m


def _cdiv(a, b):
    return (a + b - 1) // b


def _plm_ret_kernel(inv_temp,        # python float (static, no captured array)
                    q_ref,           # VMEM (Bn, H)        bf16
                    k_ref,           # VMEM (Bn, K_pad, H) bf16
                    w_ref,           # VMEM (H, D)         bf16
                    b_ref,           # VMEM (1, D)         f32
                    mask_ref,        # VMEM (Bn, K_pad)    int32, 1 == padded
                    labels_ref,      # VMEM (Bn, 1)        int32
                    logits_ref,      # VMEM out (Bn, K_pad) f32
                    loss_ref):       # VMEM out (Bn, 1)     f32
    Bn, K, H = k_ref.shape           # K here is already K_pad (wrapper pads)
    D = w_ref.shape[1]

    w = w_ref[...]                                   # (H, D) bf16
    b = b_ref[...]                                   # (1, D) f32

    # ---- projection: bf16-in / f32-accumulate MXU matmuls ------------------
    # NOTE: fusing q into the k matmul would require an in-VMEM concatenate
    # (a full copy of the dominant k tile); the small extra matmul is cheaper.
    qp = jnp.dot(q_ref[...], w, preferred_element_type=jnp.float32) + b   # (Bn, D)
    kp = jnp.dot(k_ref[...].reshape(Bn * K, H), w,
                 preferred_element_type=jnp.float32) + b                  # (Bn*K, D)

    # ---- L2 normalize (F.normalize eps clamp) via EUP rsqrt; fold 1/T ------
    q_ss = jnp.sum(qp * qp, axis=-1, keepdims=True)
    k_ss = jnp.sum(kp * kp, axis=-1, keepdims=True)
    qn = qp * (jax.lax.rsqrt(jnp.maximum(q_ss, EPS * EPS)) * inv_temp)    # (Bn, D)
    kn = (kp * jax.lax.rsqrt(jnp.maximum(k_ss, EPS * EPS))).reshape(Bn, K, D)

    # ---- similarity on VPU (mul) + XLU (lane reduce); no M=1 MXU matmuls ---
    scores = jnp.sum(qn[:, None, :] * kn, axis=-1)   # (Bn, K) f32

    m = mask_ref[...]                                # (Bn, K) int32
    logits = jnp.where(m != 0, NULL_LOGIT, scores)   # (Bn, K) f32

    # single unmasked lane-dense store (K already padded to 128 upstream)
    logits_ref[...] = logits

    # ---- per-pair cross-entropy: logsumexp(logits) - logits[label] ---------
    labels = labels_ref[...]                         # (Bn, 1) int32
    mx = jnp.max(logits, axis=-1, keepdims=True)
    lse = mx + jnp.log(jnp.sum(jnp.exp(logits - mx), axis=-1, keepdims=True))
    col = jax.lax.broadcasted_iota(jnp.int32, logits.shape, 1)
    tgt = jnp.sum(jnp.where(col == labels, logits, 0.0),
                  axis=-1, keepdims=True)
    # TODO(synk): (Bn, 1) is a narrow masked store; widen only if a v5e bundle
    # dump shows it exposed (review marked this low priority).
    loss_ref[...] = lse - tgt                        # (Bn, 1)


def _choose_block_config(n, k_pad, h, d, in_itemsize, block_n=None):
    """Pairs-per-block + vmem limit, per-generation aware (v7x: 64 MiB/TC,
    v5e/v6e: 128 MiB).  Accounts for the 2x double buffering of every
    pipelined tile plus the in-kernel f32 temporaries."""
    try:
        info = pltpu.get_tpu_info()
        vmem_cap = int(getattr(info, "vmem_capacity_bytes", 64 * 1024 * 1024))
    except Exception:
        vmem_cap = 64 * 1024 * 1024              # conservative: v7x per-core
    usable = int(vmem_cap * 0.70)                # headroom for Mosaic internals

    fixed = 2 * h * d * in_itemsize + 2 * d * 4 + (1 << 20)
    per_pair = (2 * k_pad * h * in_itemsize      # k tile (dominant, 2 buffers)
                + 2 * h * in_itemsize            # q tile
                + 2 * k_pad * 4                  # mask tile (int32)
                + 2 * k_pad * 4                  # logits output tile
                + 4 * 4                          # labels + loss
                + 3 * k_pad * d * 4              # kp / kn / qn*kn f32 temps
                + 4 * k_pad * 4)                 # scores / where / exp temps

    if block_n is None:
        bn = (max(0, usable - fixed) // per_pair // 8) * 8
        bn = max(8, min(int(bn), 128, _round_up(n, 8)))
        # v7x has 2 TensorCores sharing the parallel grid axis: prefer an even
        # (>= 2) number of grid steps so neither core idles a whole step.
        if n > 8:
            cand = bn
            while cand >= 8:
                if _cdiv(n, cand) % 2 == 0:
                    bn = cand
                    break
                cand -= 8
    else:
        bn = max(8, _round_up(int(block_n), 8))

    required = fixed + bn * per_pair
    vmem_limit = int(min(max(required + (8 << 20), 32 << 20),
                         int(vmem_cap * 0.9)))
    return bn, vmem_limit


def plm_retrieval_forward(q_hidden, k_hidden, mask, labels, proj_w, proj_b,
                          temperature=0.07, block_n=None,
                          compute_dtype=jnp.bfloat16):
    """Pallas implementation of PlmForRetrieval.forward (post-backbone part).

    q_hidden: [N, H]     CLS hidden state per (query, attribute) pair
    k_hidden: [N, K, H]  CLS hidden states per candidate prompt (zero padded)
    mask:     [N, K]     int, 1 where padded
    labels:   [N]        int class index (0 = NULL, 1 = positive)
    proj_w:   [H, D], proj_b: [D]
    returns: {'loss': scalar f32, 'logits': [N, K] f32}
    """
    N, H = q_hidden.shape
    _, K, _ = k_hidden.shape
    D = proj_w.shape[1]

    K_pad = _round_up(K, 128)
    in_itemsize = jnp.dtype(compute_dtype).itemsize
    bn, vmem_limit = _choose_block_config(N, K_pad, H, D, in_itemsize, block_n)

    N_pad = _round_up(N, bn)
    num_blocks = N_pad // bn
    pad_n = N_pad - N
    pad_k = K_pad - K

    # bf16 storage/compute for the HBM-bandwidth-dominant streams (f32 accum
    # inside the kernel); K padded here so the kernel store is lane dense and
    # unmasked (pad mask columns are 1 => NULL_LOGIT => vanish in logsumexp).
    q_p = jnp.pad(q_hidden, ((0, pad_n), (0, 0))).astype(compute_dtype)
    k_p = jnp.pad(k_hidden, ((0, pad_n), (0, pad_k), (0, 0))).astype(compute_dtype)
    m_p = jnp.pad(mask.astype(jnp.int32), ((0, pad_n), (0, pad_k)),
                  constant_values=1)
    lab_p = jnp.pad(labels.astype(jnp.int32), ((0, pad_n),)).reshape(N_pad, 1)
    w_p = proj_w.astype(compute_dtype)
    b2 = proj_b.reshape(1, D).astype(jnp.float32)

    kernel = functools.partial(_plm_ret_kernel, 1.0 / float(temperature))

    flops = 2.0 * N_pad * (K_pad + 1) * H * D + 2.0 * N_pad * K_pad * D
    bytes_accessed = (N_pad * K_pad * H * in_itemsize        # k_hidden
                      + N_pad * H * in_itemsize              # q_hidden
                      + num_blocks * H * D * in_itemsize     # proj_w per block
                      + N_pad * K_pad * 4                    # mask
                      + N_pad * K_pad * 4                    # logits out
                      + N_pad * 8)                           # labels + loss
    transcendentals = N_pad * K_pad + 2 * N_pad * (K_pad + 1)

    logits_pad, loss_pad = pl.pallas_call(
        kernel,
        out_shape=(
            jax.ShapeDtypeStruct((N_pad, K_pad), jnp.float32),
            jax.ShapeDtypeStruct((N_pad, 1), jnp.float32),
        ),
        grid_spec=pl.GridSpec(
            grid=(num_blocks,),
            in_specs=[
                pl.BlockSpec((bn, H), lambda n: (n, 0)),          # q_hidden
                pl.BlockSpec((bn, K_pad, H), lambda n: (n, 0, 0)),  # k_hidden
                pl.BlockSpec((H, D), lambda n: (0, 0)),           # proj_w
                pl.BlockSpec((1, D), lambda n: (0, 0)),           # proj_b
                pl.BlockSpec((bn, K_pad), lambda n: (n, 0)),      # mask
                pl.BlockSpec((bn, 1), lambda n: (n, 0)),          # labels
            ],
            out_specs=(
                pl.BlockSpec((bn, K_pad), lambda n: (n, 0)),      # logits
                pl.BlockSpec((bn, 1), lambda n: (n, 0)),          # per-pair loss
            ),
        ),
        compiler_params=pltpu.CompilerParams(
            dimension_semantics=("parallel",),
            vmem_limit_bytes=vmem_limit),
        cost_estimate=pl.CostEstimate(
            flops=int(flops),
            transcendentals=int(transcendentals),
            bytes_accessed=int(bytes_accessed)),
    )(q_p, k_p, w_p, b2, m_p, lab_p)

    logits = logits_pad[:N, :K]
    loss = jnp.mean(loss_pad[:N, 0])                 # F.cross_entropy mean
    return {"loss": loss, "logits": logits}


def _reference_forward(q_hidden, k_hidden, mask, labels, proj_w, proj_b,
                       temperature=0.07):
    """Pure-JAX reference mirroring the PyTorch forward semantics."""
    q = q_hidden @ proj_w + proj_b
    q = q / jnp.maximum(jnp.linalg.norm(q, axis=-1, keepdims=True), EPS)
    k = k_hidden @ proj_w + proj_b
    k = k / jnp.maximum(jnp.linalg.norm(k, axis=-1, keepdims=True), EPS)
    logits = jnp.einsum("nh,nkh->nk", q, k) / temperature
    logits = jnp.where(mask != 0, NULL_LOGIT, logits)
    lse = jax.scipy.special.logsumexp(logits, axis=-1)
    tgt = jnp.take_along_axis(logits, labels[:, None], axis=-1)[:, 0]
    return {"loss": jnp.mean(lse - tgt), "logits": logits}


if __name__ == "__main__":
    # Small synthetic shapes: N=20 (query, attribute) pairs, K=8 candidate
    # prompts each (PlmForRetrieval.num_samples scaled down), hidden=32,
    # dim_proj=16, temperature=0.07.  block_n=8 -> multi-block grid.
    N, K, H, D = 20, 8, 32, 16
    key = jax.random.PRNGKey(0)
    k1, k2, k3, k4 = jax.random.split(key, 4)

    q_hidden = jax.random.normal(k1, (N, H), dtype=jnp.float32)
    k_hidden = jax.random.normal(k2, (N, K, H), dtype=jnp.float32)
    proj_w = jax.random.normal(k3, (H, D), dtype=jnp.float32) * 0.1
    proj_b = jax.random.normal(k4, (D,), dtype=jnp.float32) * 0.01

    # Variable number of real prompts per pair (pad_sequence semantics).
    lengths = 2 + (jnp.arange(N, dtype=jnp.int32) % 7)          # in [2, 8]
    mask = (jnp.arange(K, dtype=jnp.int32)[None, :] >= lengths[:, None]
            ).astype(jnp.int32)
    # Zero out padded key rows (pad_sequence pads with zeros).
    k_hidden = k_hidden * (1 - mask)[:, :, None].astype(jnp.float32)
    # LABEL_POS = 1 when a positive value exists, LABEL_NULL = 0 otherwise.
    labels = (jnp.arange(N, dtype=jnp.int32) % 2).astype(jnp.int32)

    out = plm_retrieval_forward(q_hidden, k_hidden, mask, labels,
                                proj_w, proj_b, temperature=0.07, block_n=8)
    jax.block_until_ready(out["loss"])
    jax.block_until_ready(out["logits"])

    # Reference on the same bf16-quantized operands the kernel consumes
    # (accumulation is f32 in both), so tolerances stay tight.
    q_q = q_hidden.astype(jnp.bfloat16).astype(jnp.float32)
    k_q = k_hidden.astype(jnp.bfloat16).astype(jnp.float32)
    w_q = proj_w.astype(jnp.bfloat16).astype(jnp.float32)
    ref = _reference_forward(q_q, k_q, mask, labels, w_q, proj_b,
                             temperature=0.07)
    assert out["logits"].shape == (N, K)
    assert jnp.allclose(out["logits"], ref["logits"], atol=2e-3, rtol=1e-3)
    assert jnp.allclose(out["loss"], ref["loss"], atol=2e-3, rtol=1e-3)

    print("KERNEL_OK")
</pallas_src>

<mosaic_0001>
module attributes {stable_mosaic.version = 11 : i64} {
  func.func @_plm_ret_kernel(%arg0: i32, %arg1: memref<8x32xbf16, #tpu.memory_space<vmem>>, %arg2: memref<8x128x32xbf16, #tpu.memory_space<vmem>>, %arg3: memref<32x16xbf16, #tpu.memory_space<vmem>>, %arg4: memref<1x16xf32, #tpu.memory_space<vmem>>, %arg5: memref<8x128xi32, #tpu.memory_space<vmem>>, %arg6: memref<8x1xi32, #tpu.memory_space<vmem>>, %arg7: memref<8x128xf32, #tpu.memory_space<vmem>>, %arg8: memref<8x1xf32, #tpu.memory_space<vmem>>) attributes {dimension_semantics = [#tpu.dimension_semantics<parallel>], iteration_bounds = array<i64: 3>, scalar_prefetch = 0 : i64, scratch_operands = 0 : i64, tpu.core_type = #tpu.core_type<tc>, window_params = [{transform_indices = @transform_0, window_bounds = array<i64: 8, 32>}, {transform_indices = @transform_1, window_bounds = array<i64: 8, 128, 32>}, {pipeline_mode = #tpu.pipeline_mode<synchronous>, transform_indices = @transform_2, window_bounds = array<i64: 32, 16>}, {pipeline_mode = #tpu.pipeline_mode<synchronous>, transform_indices = @transform_3, window_bounds = array<i64: 1, 16>}, {transform_indices = @transform_4, window_bounds = array<i64: 8, 128>}, {transform_indices = @transform_5, window_bounds = array<i64: 8, 1>}, {transform_indices = @transform_6, window_bounds = array<i64: 8, 128>}, {transform_indices = @transform_7, window_bounds = array<i64: 8, 1>}]} {
    %c0 = arith.constant 0 : index
    %c0_0 = arith.constant 0 : index
    %0 = vector.load %arg3[%c0, %c0_0] : memref<32x16xbf16, #tpu.memory_space<vmem>>, vector<32x16xbf16>
    %c0_1 = arith.constant 0 : index
    %c0_2 = arith.constant 0 : index
    %1 = vector.load %arg4[%c0_1, %c0_2] : memref<1x16xf32, #tpu.memory_space<vmem>>, vector<1x16xf32>
    %c0_3 = arith.constant 0 : index
    %c0_4 = arith.constant 0 : index
    %2 = vector.load %arg1[%c0_3, %c0_4] : memref<8x32xbf16, #tpu.memory_space<vmem>>, vector<8x32xbf16>
    %cst = arith.constant dense<0.000000e+00> : vector<8x16xf32>
    %3 = tpu.matmul %2, %0, %cst {dimension_numbers = #tpu.dot_dimension_numbers<[1], [0], [0], [1], [0, 0, 1, 1], [], []>} : vector<8x32xbf16>, vector<32x16xbf16>, vector<8x16xf32> -> vector<8x16xf32>
    %4 = vector.broadcast %1 : vector<1x16xf32> to vector<8x16xf32>
    %5 = arith.addf %3, %4 : vector<8x16xf32>
    %c0_5 = arith.constant 0 : index
    %c0_6 = arith.constant 0 : index
    %c0_7 = arith.constant 0 : index
    %6 = vector.load %arg2[%c0_5, %c0_6, %c0_7] : memref<8x128x32xbf16, #tpu.memory_space<vmem>>, vector<8x128x32xbf16>
    %7 = vector.shape_cast %6 : vector<8x128x32xbf16> to vector<1024x32xbf16>
    %cst_8 = arith.constant dense<0.000000e+00> : vector<1024x16xf32>
    %8 = tpu.matmul %7, %0, %cst_8 {dimension_numbers = #tpu.dot_dimension_numbers<[1], [0], [0], [1], [0, 0, 1, 1], [], []>} : vector<1024x32xbf16>, vector<32x16xbf16>, vector<1024x16xf32> -> vector<1024x16xf32>
    %9 = vector.broadcast %1 : vector<1x16xf32> to vector<1024x16xf32>
    %10 = arith.addf %8, %9 : vector<1024x16xf32>
    %11 = arith.mulf %5, %5 : vector<8x16xf32>
    %cst_9 = arith.constant dense<0.000000e+00> : vector<8xf32>
    %12 = vector.multi_reduction <add>, %11, %cst_9 [1] : vector<8x16xf32> to vector<8xf32>
    %13 = vector.shape_cast %12 : vector<8xf32> to vector<8x1xf32>
    %14 = arith.mulf %10, %10 : vector<1024x16xf32>
    %cst_10 = arith.constant dense<0.000000e+00> : vector<1024xf32>
    %15 = vector.multi_reduction <add>, %14, %cst_10 [1] : vector<1024x16xf32> to vector<1024xf32>
    %16 = vector.shape_cast %15 : vector<1024xf32> to vector<1024x1xf32>
    %cst_11 = arith.constant 1.000000e-24 : f32
    %17 = vector.broadcast %cst_11 : f32 to vector<8x1xf32>
    %18 = arith.maximumf %13, %17 : vector<8x1xf32>
    %19 = math.rsqrt %18 : vector<8x1xf32>
    %cst_12 = arith.constant 14.2857141 : f32
    %20 = vector.broadcast %cst_12 : f32 to vector<8x1xf32>
    %21 = arith.mulf %19, %20 : vector<8x1xf32>
    %22 = vector.broadcast %21 : vector<8x1xf32> to vector<8x16xf32>
    %23 = arith.mulf %5, %22 : vector<8x16xf32>
    %cst_13 = arith.constant 1.000000e-24 : f32
    %24 = vector.broadcast %cst_13 : f32 to vector<1024x1xf32>
    %25 = arith.maximumf %16, %24 : vector<1024x1xf32>
    %26 = math.rsqrt %25 : vector<1024x1xf32>
    %27 = vector.broadcast %26 : vector<1024x1xf32> to vector<1024x16xf32>
    %28 = arith.mulf %10, %27 : vector<1024x16xf32>
    %29 = vector.shape_cast %28 : vector<1024x16xf32> to vector<8x128x16xf32>
    %30 = vector.shape_cast %23 : vector<8x16xf32> to vector<8x1x16xf32>
    %31 = vector.broadcast %30 : vector<8x1x16xf32> to vector<8x128x16xf32>
    %32 = arith.mulf %31, %29 : vector<8x128x16xf32>
    %cst_14 = arith.constant dense<0.000000e+00> : vector<8x128xf32>
    %33 = vector.multi_reduction <add>, %32, %cst_14 [2] : vector<8x128x16xf32> to vector<8x128xf32>
    %c0_15 = arith.constant 0 : index
    %c0_16 = arith.constant 0 : index
    %34 = vector.load %arg5[%c0_15, %c0_16] : memref<8x128xi32, #tpu.memory_space<vmem>>, vector<8x128xi32>
    %c0_i32 = arith.constant 0 : i32
    %35 = vector.broadcast %c0_i32 : i32 to vector<8x128xi32>
    %36 = arith.cmpi ne, %34, %35 : vector<8x128xi32>
    %cst_17 = arith.constant -1.000000e+04 : f32
    %37 = vector.broadcast %cst_17 : f32 to vector<8x128xf32>
    %38 = arith.select %36, %37, %33 : vector<8x128xi1>, vector<8x128xf32>
    %c0_18 = arith.constant 0 : index
    %c0_19 = arith.constant 0 : index
    %39 = vector.load %arg7[%c0_18, %c0_19] : memref<8x128xf32, #tpu.memory_space<vmem>>, vector<8x128xf32>
    tpu.vector_store %arg7[%c0_18, %c0_19], %38 {strides = array<i32>} : memref<8x128xf32, #tpu.memory_space<vmem>>, vector<8x128xf32>,
    %c0_20 = arith.constant 0 : index
    %c0_21 = arith.constant 0 : index
    %40 = vector.load %arg6[%c0_20, %c0_21] : memref<8x1xi32, #tpu.memory_space<vmem>>, vector<8x1xi32>
    %cst_22 = arith.constant dense<0xFF800000> : vector<8xf32>
    %41 = vector.multi_reduction <maximumf>, %38, %cst_22 [1] : vector<8x128xf32> to vector<8xf32>
    %42 = vector.shape_cast %41 : vector<8xf32> to vector<8x1xf32>
    %43 = vector.broadcast %42 : vector<8x1xf32> to vector<8x128xf32>
    %44 = arith.subf %38, %43 : vector<8x128xf32>
    %45 = math.exp %44 : vector<8x128xf32>
    %cst_23 = arith.constant dense<0.000000e+00> : vector<8xf32>
    %46 = vector.multi_reduction <add>, %45, %cst_23 [1] : vector<8x128xf32> to vector<8xf32>
    %47 = vector.shape_cast %46 : vector<8xf32> to vector<8x1xf32>
    %48 = math.log %47 : vector<8x1xf32>
    %49 = arith.addf %42, %48 : vector<8x1xf32>
    %50 = tpu.iota {dimensions = array<i32: 1>} : vector<8x128xi32>
    %51 = vector.broadcast %40 : vector<8x1xi32> to vector<8x128xi32>
    %52 = arith.cmpi eq, %50, %51 : vector<8x128xi32>
    %cst_24 = arith.constant 0.000000e+00 : f32
    %53 = vector.broadcast %cst_24 : f32 to vector<8x128xf32>
    %54 = arith.select %52, %38, %53 : vector<8x128xi1>, vector<8x128xf32>
    %cst_25 = arith.constant dense<0.000000e+00> : vector<8xf32>
    %55 = vector.multi_reduction <add>, %54, %cst_25 [1] : vector<8x128xf32> to vector<8xf32>
    %56 = vector.shape_cast %55 : vector<8xf32> to vector<8x1xf32>
    %57 = arith.subf %49, %56 : vector<8x1xf32>
    %c0_26 = arith.constant 0 : index
    %c0_27 = arith.constant 0 : index
    %58 = vector.load %arg8[%c0_26, %c0_27] : memref<8x1xf32, #tpu.memory_space<vmem>>, vector<8x1xf32>
    tpu.vector_store %arg8[%c0_26, %c0_27], %57 {strides = array<i32>} : memref<8x1xf32, #tpu.memory_space<vmem>>, vector<8x1xf32>,
    return
  }
  func.func @transform_0(%arg0: i32) -> (i32, i32) {
    %c0_i32 = arith.constant 0 : i32
    %c0_i32_0 = arith.constant 0 : i32
    return %arg0, %c0_i32 : i32, i32
  }
  func.func @transform_1(%arg0: i32) -> (i32, i32, i32) {
    %c0_i32 = arith.constant 0 : i32
    %c0_i32_0 = arith.constant 0 : i32
    %c0_i32_1 = arith.constant 0 : i32
    return %arg0, %c0_i32, %c0_i32_0 : i32, i32, i32
  }
  func.func @transform_2(%arg0: i32) -> (i32, i32) {
    %c0_i32 = arith.constant 0 : i32
    %c0_i32_0 = arith.constant 0 : i32
    %c0_i32_1 = arith.constant 0 : i32
    return %c0_i32, %c0_i32_0 : i32, i32
  }
  func.func @transform_3(%arg0: i32) -> (i32, i32) {
    %c0_i32 = arith.constant 0 : i32
    %c0_i32_0 = arith.constant 0 : i32
    %c0_i32_1 = arith.constant 0 : i32
    return %c0_i32, %c0_i32_0 : i32, i32
  }
  func.func @transform_4(%arg0: i32) -> (i32, i32) {
    %c0_i32 = arith.constant 0 : i32
    %c0_i32_0 = arith.constant 0 : i32
    return %arg0, %c0_i32 : i32, i32
  }
  func.func @transform_5(%arg0: i32) -> (i32, i32) {
    %c0_i32 = arith.constant 0 : i32
    %c0_i32_0 = arith.constant 0 : i32
    return %arg0, %c0_i32 : i32, i32
  }
  func.func @transform_6(%arg0: i32) -> (i32, i32) {
    %c0_i32 = arith.constant 0 : i32
    %c0_i32_0 = arith.constant 0 : i32
    return %arg0, %c0_i32 : i32, i32
  }
  func.func @transform_7(%arg0: i32) -> (i32, i32) {
    %c0_i32 = arith.constant 0 : i32
    %c0_i32_0 = arith.constant 0 : i32
    return %arg0, %c0_i32 : i32, i32
  }
}

</mosaic_0001>

<bundles_post_ra>
// kernel: tpu_custom_call.1
= control target key start
LH: loop header
LB: loop body
LE: loop exit
PB: predicated region body
PF: predicated region fallthrough
CT: control target
= control target key end

     0   :  { %13 = vsyncpa [#allocation3], 0  ;;  %s10638_s0 = inlined_call_operand.vmem [shape: bf16[24,32], index: 0, kind: input, shape index: {}]   ;;  %s10639_s1 = inlined_call_operand.vmem [shape: bf16[24,128,32], index: 1, kind: input, shape index: {}]   ;;  %s10640_s2 = inlined_call_operand.vmem [shape: bf16[32,16], index: 2, kind: input, shape index: {}]   ;;  %s10641_s3 = inlined_call_operand.vmem [shape: f32[1,16], index: 3, kind: input, shape index: {}]   ;;  %s10642_s4 = inlined_call_operand.vmem [shape: s32[24,128], index: 4, kind: input, shape index: {}]   ;;  %s10643_s5 = inlined_call_operand.vmem [shape: s32[24,1], index: 5, kind: input, shape index: {}]   ;;  %s10644_s6 = inlined_call_operand.hbm [shape: f32[24,128], index: 6, kind: output, shape index: {0}]   ;;  %s10645_s7 = inlined_call_operand.vmem [shape: f32[24,1], index: 7, kind: output, shape index: {1}]  }
   0x1   :  { %15 = vsyncpa [#allocation3 + $0x1], 0  ;;  %s5374_s24 = smov 0   ;;  %s5376_s25 = smov 0  }
   0x2   :  { %s5378_s26 = smov 0   ;;  %s5380_s27 = smov 0  }
   0x3 LB: > { %s4543_s28 = sadd.s32 4294967295, %s5331_s27   ;;  %s4544_s29 = sadd.s32 4294967294, %s5331_s27   ;;  %s5331_s27 = sphi %s5380_s27, %s12033_s27   ;;  %s5327_s26 = sphi %s5378_s26, %s12032_s26   ;;  %s5323_s25 = sphi %s5376_s25, %s12031_s25   ;;  %s5319_s24 = sphi %s5374_s24, %s12030_s24  }
   0x4   : > { %s5397_s30 = sadd.s32 1, %s5331_s27   ;;  %s174_s8 = sadd.s32 1, %s5327_s26 }
   0x5   : > { %s171_s9 = ssub.s32 %s5331_s27, %s5397_s30  ;;  %p184_p0 = scmp.ne.s32.totalorder %s5327_s26, %s5323_s25 }
   0x6   : > { %p172_p1 = scmp.eq.s32.totalorder %s171_s9, 0  ;;  %p185_p2 = scmp.eq.s32.totalorder %s4543_s28, 2 }
   0x7   : > { %p190_p3 = scmp.ne.s32.totalorder %s5323_s25, %s5319_s24  ;;  %p191_p4 = scmp.eq.s32.totalorder %s4544_s29, 2 }
   0x8   : > { %s5407_s10 = scalar_select %p172_p1, %s5327_s26, %s174_s8  }
   0x9   : > { %p5409_p5 = por %p185_p2, %p184_p0  ;;  %p5413_p6 = por %p191_p4, %p190_p3 }
   0xa   : > { %p4547_p7 = scmp.ge.s32.totalorder %s5331_s27, 1  ;;  %p272_p8 = scmp.lt.s32.totalorder %s5331_s27, 4 }
   0xc   : > { %p273_p9 = pnand %p4547_p7, %p272_p8 }
   0xe   : > { %276 = sbr.rel (%p273_p9) target bundleno = 1311 (0x51f), region = 44 }
  0x13   : > { %v4891_v0 = vld [vmem:[%s10640_s2 + $0x8] sm:$0xff]  ;;  %p321_p10 = scmp.lt.s32.totalorder %s4543_s28, 2  ;;  %s5422_s15 = sshll.u32 %s4543_s28, 3  ;;  %v4890_v1 = vld [vmem:[%s10640_s2] sm:$0xff]  ;;  %vm366_vm0 = vcmask 261120   ;;  %vm1353_vm1 = vcmask 130048  }
  0x14   : > { %p326_p11 = scmp.lt.s32.totalorder %s5422_s15, 23  ;;  %376 = vmatpush.bf16.msra.mxu0 %v4891_v0  ;;  %4956 = vmatpush.bf16.msra.mxu1 %v4891_v0  ;;  %v5506_v34 = vld [vmem:[%s10641_s3] ss:$0 sm:$0xff]  ;;  %s312_s14 = sand.u32 1, %s5323_s25  }
  0x15   : > { %s12035_s28 = smov (!%p321_p10, %s4543_s28), 2  ;;  %4957 = vmatpush.bf16.msra.mxu2 %v4891_v0  ;;  %4958 = vmatpush.bf16.msra.mxu3 %v4891_v0  ;;  %s4403_s29 = scalar_lea.sflag [#allocation3], %s312_s14 }
  0x16   : > { %s327_s18 = scalar_select %p326_p11, %s5422_s15, 23 }
  0x17   : > { %s4549_s19 = sshll.u32 %s12035_s28, 2  ;;  %s5289_s16 = scalar_lea.hbm %s10644_s6, 24 }
  0x18   : > { %s324_s22 = scalar_lea.vmem %s10638_s0, %s4549_s19  ;;  %s4889_s23 = sshll.u32 %s327_s18, 6  ;;  %377 = vmatpush.bf16.msra.mxu0 %v4890_v1  ;;  %4959 = vmatpush.bf16.msra.mxu1 %v4890_v1 }
  0x19   : > { %v350_v2 = vld [vmem:[%s324_s22] sm:$0xf]  ;;  %s5438_s9 = scalar_lea.vmem %s10639_s1, %s4889_s23  ;;  %4960 = vmatpush.bf16.msra.mxu2 %v4890_v1  ;;  %4961 = vmatpush.bf16.msra.mxu3 %v4890_v1  ;;  %s10502_s22 = sshll.u32 %s12035_s28, 3 }
  0x1a   : > { %v4905_v3 = vld [vmem:[%s5438_s9 + $0x68] sm:$0xff]  ;;  %v4922_v4 = vld [vmem:[%s5438_s9 + $0xf0] sm:$0xff]  ;;  %v4939_v5 = vld [vmem:[%s5438_s9 + $0x178] sm:$0xff]  ;;  %s339_s8 = scalar_lea.vmem %s10643_s5, %s10502_s22  ;;  %s335_s13 = scalar_lea.vmem %s10642_s4, %s10502_s22 }
  0x1b   : > { %4564 = vmatmul.msk.bf16.vlgmr.msra.gmra.mxu0 %vm366_vm0, %v350_v2  ;;  %4834 = vmatmul.msk.bf16.vlgmr.msra.gmra.mxu1 %vm366_vm0, %v4905_v3  ;;  %v4892_v6 = vld [vmem:[%s5438_s9] sm:$0xff]  ;;  %v4906_v7 = vld [vmem:[%s5438_s9 + $0x70] sm:$0xff]  ;;  %v4923_v8 = vld [vmem:[%s5438_s9 + $0xf8] sm:$0xff]  ;;  %s4417_s18 = scalar_lea.hbm %s10644_s6, %s5422_s15  ;;  %s4548_s19 = sshll.u32 %s312_s14, 3 }
  0x1c   : > { %1029 = vmatpush.bf16.msrb.mxu0 %v4891_v0  ;;  %4851 = vmatmul.msk.bf16.vlgmr.msra.gmra.mxu2 %vm366_vm0, %v4922_v4  ;;  %v4940_v9 = vld [vmem:[%s5438_s9 + $0x180] sm:$0xff]  ;;  %v4893_v10 = vld [vmem:[%s5438_s9 + $0x8] sm:$0xff]  ;;  %v4907_v11 = vld [vmem:[%s5438_s9 + $0x78] sm:$0xff]  ;;  %s4421_s20 = sshll.u32 %s4417_s18, 4  ;;  %s314_s21 = scalar_lea.vmem [#allocation2], %s4548_s19  ;;  %s4422_s20 = int_to_ptr.hbm [resolvable:$true] %s4421_s20 }
  0x1d   : > { %4868 = vmatmul.msk.bf16.vlgmr.msra.gmra.mxu3 %vm366_vm0, %v4939_v5  ;;  %v4924_v12 = vld [vmem:[%s5438_s9 + $0x100] sm:$0xff]  ;;  %v4941_v13 = vld [vmem:[%s5438_s9 + $0x188] sm:$0xff]  ;;  %v4894_v14 = vld [vmem:[%s5438_s9 + $0x10] sm:$0xff]  ;;  %s4419_s23 = sshll.u32 %s314_s21, 4  ;;  %s4420_s23 = int_to_ptr.vmem [resolvable:$true] %s4419_s23 }
  0x1e   : > { %v4908_v15 = vld [vmem:[%s5438_s9 + $0x80] sm:$0xff]  ;;  %v4925_v16 = vld [vmem:[%s5438_s9 + $0x108] sm:$0xff]  ;;  %v4942_v17 = vld [vmem:[%s5438_s9 + $0x190] sm:$0xff] }
  0x1f   : > { %v4895_v18 = vld [vmem:[%s5438_s9 + $0x18] sm:$0xff]  ;;  %v4909_v19 = vld [vmem:[%s5438_s9 + $0x88] sm:$0xff]  ;;  %v4926_v20 = vld [vmem:[%s5438_s9 + $0x110] sm:$0xff] }
  0x20   : > { %1030 = vmatpush.bf16.msrb.mxu0 %v4890_v1  ;;  %v4943_v21 = vld [vmem:[%s5438_s9 + $0x198] sm:$0xff]  ;;  %v4896_v22 = vld [vmem:[%s5438_s9 + $0x20] sm:$0xff]  ;;  %v4910_v23 = vld [vmem:[%s5438_s9 + $0x90] sm:$0xff] }
  0x21   : > { %v4927_v24 = vld [vmem:[%s5438_s9 + $0x118] sm:$0xff]  ;;  %v4944_v25 = vld [vmem:[%s5438_s9 + $0x1a0] sm:$0xff]  ;;  %v4897_v26 = vld [vmem:[%s5438_s9 + $0x28] sm:$0xff] }
  0x22   : > { %v4911_v27 = vld [vmem:[%s5438_s9 + $0x98] sm:$0xff]  ;;  %v4928_v28 = vld [vmem:[%s5438_s9 + $0x120] sm:$0xff]  ;;  %v4945_v29 = vld [vmem:[%s5438_s9 + $0x1a8] sm:$0xff] }
  0x23   : > { %v4898_v30 = vld [vmem:[%s5438_s9 + $0x30] sm:$0xff]  ;;  %v4929_v31 = vld [vmem:[%s5438_s9 + $0x128] sm:$0xff]  ;;  %v4912_v33 = vld [vmem:[%s5438_s9 + $0xa0] sm:$0xff] }
  0x24   : > { %v4946_v32 = vld [vmem:[%s5438_s9 + $0x1b0] sm:$0xff]  ;;  %v4899_v44 = vld [vmem:[%s5438_s9 + $0x38] sm:$0xff]  ;;  %v4913_v49 = vld [vmem:[%s5438_s9 + $0xa8] sm:$0xff] }
  0x25   : > { %v4930_v41 = vld [vmem:[%s5438_s9 + $0x130] sm:$0xff]  ;;  %v4947_v51 = vld [vmem:[%s5438_s9 + $0x1b8] sm:$0xff] }
  0x2b   : > { %4821 = vmatmul.msk.bf16.vlgmr.msrb.gmra.mxu0 %vm366_vm0, %v4892_v6  ;;  %4835 = vmatmul.msk.bf16.gmra.mxu1 %vm366_vm0, %v4906_v7 }
  0x2c   : > { %4852 = vmatmul.msk.bf16.gmra.mxu2 %vm366_vm0, %v4923_v8 }
  0x2d   : > { %4869 = vmatmul.msk.bf16.gmra.mxu3 %vm366_vm0, %v4940_v9  ;;  %v4931_v9 = vld [vmem:[%s5438_s9 + $0x138] sm:$0xff] }
  0x3b   : > { %4822 = vmatmul.msk.bf16.gmra.mxu0 %vm366_vm0, %v4893_v10  ;;  %4836 = vmatmul.msk.bf16.gmra.mxu1 %vm366_vm0, %v4907_v11  ;;  %v4900_v10 = vld [vmem:[%s5438_s9 + $0x40] sm:$0xff] }
  0x3c   : > { %4853 = vmatmul.msk.bf16.gmra.mxu2 %vm366_vm0, %v4924_v12 }
  0x3d   : > { %4870 = vmatmul.msk.bf16.gmra.mxu3 %vm366_vm0, %v4941_v13 }
  0x4b   : > { %4823 = vmatmul.msk.bf16.gmra.mxu0 %vm366_vm0, %v4894_v14  ;;  %4837 = vmatmul.msk.bf16.gmra.mxu1 %vm366_vm0, %v4908_v15 }
  0x4c   : > { %4854 = vmatmul.msk.bf16.gmra.mxu2 %vm366_vm0, %v4925_v16 }
  0x4d   : > { %4871 = vmatmul.msk.bf16.gmra.mxu3 %vm366_vm0, %v4942_v17 }
  0x5b   : > { %4824 = vmatmul.msk.bf16.gmra.mxu0 %vm366_vm0, %v4895_v18  ;;  %4838 = vmatmul.msk.bf16.gmra.mxu1 %vm366_vm0, %v4909_v19 }
  0x5c   : > { %4855 = vmatmul.msk.bf16.gmra.mxu2 %vm366_vm0, %v4926_v20 }
  0x5d   : > { %4872 = vmatmul.msk.bf16.gmra.mxu3 %vm366_vm0, %v4943_v21 }
  0x6b   : > { %4825 = vmatmul.msk.bf16.gmra.mxu0 %vm366_vm0, %v4896_v22  ;;  %4839 = vmatmul.msk.bf16.gmra.mxu1 %vm366_vm0, %v4910_v23  ;;  %v4914_v23 = vld [vmem:[%s5438_s9 + $0xb0] sm:$0xff] }
  0x6c   : > { %4856 = vmatmul.msk.bf16.gmra.mxu2 %vm366_vm0, %v4927_v24 }
  0x6d   : > { %4873 = vmatmul.msk.bf16.gmra.mxu3 %vm366_vm0, %v4944_v25 }
  0x7b   : > { %4826 = vmatmul.msk.bf16.gmra.mxu0 %vm366_vm0, %v4897_v26  ;;  %4840 = vmatmul.msk.bf16.gmra.mxu1 %vm366_vm0, %v4911_v27 }
  0x7c   : > { %4857 = vmatmul.msk.bf16.gmra.mxu2 %vm366_vm0, %v4928_v28 }
  0x7d   : > { %4874 = vmatmul.msk.bf16.gmra.mxu3 %vm366_vm0, %v4945_v29 }
  0x8b   : > { %4827 = vmatmul.msk.bf16.gmra.mxu0 %vm366_vm0, %v4898_v30  ;;  %4841 = vmatmul.msk.bf16.gmra.mxu1 %vm366_vm0, %v4912_v33 }
  0x8c   : > { %4858 = vmatmul.msk.bf16.gmra.mxu2 %vm366_vm0, %v4929_v31 }
  0x8d   : > { %4875 = vmatmul.msk.bf16.gmra.mxu3 %vm366_vm0, %v4946_v32 }
  0x98   : > { %v379_v35 = vpop.f32.mrf.mxu0  ;;  %v1097_v36 = vpop.f32.mrf.mxu1 }
  0x99   : > { %v5509_v37 = vadd.f32 %v5506_v34, %v379_v35  ;;  %v5514_v39 = vadd.f32 %v5506_v34, %v1097_v36 }
  0x9b   : > { %v1352_v38 = vmul.f32 %v5509_v37, %v5509_v37  ;;  %v1383_v50 = vmul.f32 %v5514_v39, %v5514_v39  ;;  %4828 = vmatmul.msk.bf16.gmra.mxu0 %vm366_vm0, %v4899_v44  ;;  %4842 = vmatmul.msk.bf16.gmra.mxu1 %vm366_vm0, %v4913_v49 }
  0x9c   : > { %4859 = vmatmul.msk.bf16.gmra.mxu2 %vm366_vm0, %v4930_v41 }
  0x9d   : > { %v1354_v40 = vsel %vm1353_vm1, %v1352_v38, 0.0  ;;  %4876 = vmatmul.msk.bf16.gmra.mxu3 %vm366_vm0, %v4947_v51  ;;  %v1563_v57 = vsel %vm1353_vm1, %v1383_v50, 0.0  ;;  %v4948_v38 = vld [vmem:[%s5438_s9 + $0x1c0] sm:$0xff] }
  0x9e   : > { %1355 = vadd.xlane.f32.xlu0 %v1354_v40 }
  0x9f   : > { %v1182_v42 = vpop.f32.mrf.mxu2 }
  0xa0   : > { %v1267_v43 = vpop.f32.mrf.mxu3  ;;  %v5521_v45 = vadd.f32 %v5506_v34, %v1182_v42  ;;  %v381_v47 = vpop.f32.mrf.mxu0 }
  0xa1   : > { %v5524_v46 = vadd.f32 %v5506_v34, %v1267_v43  ;;  %v1099_v48 = vpop.f32.mrf.mxu1 }
  0xa2   : > { %11001 = vst [vmem:[#allocation5_spill] sm:$0xff] %v5521_v45  ;;  %v1417_v53 = vmul.f32 %v5521_v45, %v5521_v45  ;;  %v5538_v54 = vadd.f32 %v5506_v34, %v1099_v48 }
  0xa3   : > { %11002 = vst [vmem:[#allocation6_spill] sm:$0xff] %v5524_v46  ;;  %v1451_v52 = vmul.f32 %v5524_v46, %v5524_v46 }
  0xa4   : > { %v1665_v56 = vsel %vm1353_vm1, %v1417_v53, 0.0  ;;  %v1384_v63 = vmul.f32 %v5538_v54, %v5538_v54 }
  0xa5   : > { %v1767_v55 = vsel %vm1353_vm1, %v1451_v52, 0.0  ;;  %1666 = vadd.xlane.f32.xlu1 %v1665_v56 }
  0xa6   : > { %1768 = vadd.xlane.f32.xlu2 %v1767_v55  ;;  %1564 = vadd.xlane.f32.xlu0 %v1563_v57  ;;  %v1566_v5 = vsel %vm1353_vm1, %v1384_v63, 0.0 }
  0xa7   : > { %v1184_v58 = vpop.f32.mrf.mxu2 }
  0xa8   : > { %v1269_v59 = vpop.f32.mrf.mxu3  ;;  %v5544_v60 = vadd.f32 %v5506_v34, %v1184_v58  ;;  %v1032_v62 = vpop.f32.mrf.mxu0 }
  0xa9   : > { %v5547_v61 = vadd.f32 %v5506_v34, %v1269_v59  ;;  %v1102_v0 = vpop.f32.mrf.mxu1  ;;  %v5561_v6 = vadd.f32 %v5506_v34, %v1032_v62 }
  0xaa   : > { %11003 = vst [vmem:[#allocation7_spill] sm:$0xff] %v5544_v60  ;;  %v5552_v1 = vadd.f32 %v5506_v34, %v1102_v0  ;;  %v1418_v2 = vmul.f32 %v5544_v60, %v5544_v60 }
  0xab   : > { %11004 = vst [vmem:[#allocation8_spill] sm:$0xff] %v5547_v61  ;;  %v1452_v3 = vmul.f32 %v5547_v61, %v5547_v61  ;;  %v1357_v15 = vmul.f32 %v5561_v6, %v5561_v6  ;;  %4829 = vmatmul.msk.bf16.gmra.mxu0 %vm366_vm0, %v4900_v10  ;;  %4843 = vmatmul.msk.bf16.gmra.mxu1 %vm366_vm0, %v4914_v23 }
  0xac   : > { %v1668_v4 = vsel %vm1353_vm1, %v1418_v2, 0.0  ;;  %v1385_v8 = vmul.f32 %v5552_v1, %v5552_v1  ;;  %4860 = vmatmul.msk.bf16.gmra.mxu2 %vm366_vm0, %v4931_v9  ;;  %v4915_v9 = vld [vmem:[%s5438_s9 + $0xb8] sm:$0xff] }
  0xad   : > { %1567 = vadd.xlane.f32.xlu1 %v1566_v5  ;;  %v1770_v7 = vsel %vm1353_vm1, %v1452_v3, 0.0  ;;  %v1485_v21 = vsel %vm1353_vm1, %v1357_v15, 0.0  ;;  %4877 = vmatmul.msk.bf16.gmra.mxu3 %vm366_vm0, %v4948_v38 }
  0xae   : > { %1669 = vadd.xlane.f32.xlu2 %v1668_v4  ;;  %1771 = vadd.xlane.f32.xlu0 %v1770_v7  ;;  %v1569_v16 = vsel %vm1353_vm1, %v1385_v8, 0.0  ;;  %v4901_v8 = vld [vmem:[%s5438_s9 + $0x48] sm:$0xff] }
  0xaf   : > { %v1187_v11 = vpop.f32.mrf.mxu2 }
  0xb0   : > { %v1272_v12 = vpop.f32.mrf.mxu3  ;;  %v1034_v14 = vpop.f32.mrf.mxu0  ;;  %v5583_v20 = vadd.f32 %v5506_v34, %v1187_v11 }
  0xb1   : > { %v5569_v13 = vadd.f32 %v5506_v34, %v1272_v12  ;;  %v5579_v18 = vadd.f32 %v5506_v34, %v1034_v14  ;;  %v1104_v22 = vpop.f32.mrf.mxu1 }
  0xb2   : > { %11006 = vst [vmem:[#allocation10_spill] sm:$0xff] %v5583_v20  ;;  %v1419_v29 = vmul.f32 %v5583_v20, %v5583_v20  ;;  %v5603_v35 = vadd.f32 %v5506_v34, %v1104_v22 }
  0xb3   : > { %11005 = vst [vmem:[#allocation9_spill] sm:$0xff] %v5569_v13  ;;  %v1453_v17 = vmul.f32 %v5569_v13, %v5569_v13  ;;  %v1358_v28 = vmul.f32 %v5579_v18, %v5579_v18 }
  0xb4   : > { %v1671_v36 = vsel %vm1353_vm1, %v1419_v29, 0.0  ;;  %v1386_v47 = vmul.f32 %v5603_v35, %v5603_v35 }
  0xb5   : > { %v1773_v19 = vsel %vm1353_vm1, %v1453_v17, 0.0  ;;  %v1488_v33 = vsel %vm1353_vm1, %v1358_v28, 0.0  ;;  %v4949_v28 = vld [vmem:[%s5438_s9 + $0x1c8] sm:$0xff] }
  0xb6   : > { %1570 = vadd.xlane.f32.xlu2 %v1569_v16  ;;  %1774 = vadd.xlane.f32.xlu1 %v1773_v19  ;;  %v1572_v56 = vsel %vm1353_vm1, %v1386_v47, 0.0 }
  0xb7   : > { %1486 = vadd.xlane.f32.xlu0 %v1485_v21  ;;  %v1189_v24 = vpop.f32.mrf.mxu2 }
  0xb8   : > { %v1274_v25 = vpop.f32.mrf.mxu3  ;;  %v1037_v27 = vpop.f32.mrf.mxu0  ;;  %v5598_v31 = vadd.f32 %v5506_v34, %v1189_v24 }
  0xb9   : > { %v5588_v26 = vadd.f32 %v5506_v34, %v1274_v25  ;;  %v1107_v41 = vpop.f32.mrf.mxu1  ;;  %v5621_v51 = vadd.f32 %v5506_v34, %v1037_v27  ;;  %v4932_v27 = vld [vmem:[%s5438_s9 + $0x140] sm:$0xff] }
  0xba   : > { %11008 = vst [vmem:[#allocation12_spill] sm:$0xff] %v5598_v31  ;;  %v1420_v43 = vmul.f32 %v5598_v31, %v5598_v31  ;;  %v5637_v2 = vadd.f32 %v5506_v34, %v1107_v41 }
  0xbb   : > { %11007 = vst [vmem:[#allocation11_spill] sm:$0xff] %v5588_v26  ;;  %v1454_v30 = vmul.f32 %v5588_v26, %v5588_v26  ;;  %v1359_v59 = vmul.f32 %v5621_v51, %v5621_v51  ;;  %4830 = vmatmul.msk.bf16.gmra.mxu0 %vm366_vm0, %v4901_v8  ;;  %4844 = vmatmul.msk.bf16.gmra.mxu1 %vm366_vm0, %v4915_v9 }
  0xbc   : > { %v1674_v55 = vsel %vm1353_vm1, %v1420_v43, 0.0  ;;  %v1387_v14 = vmul.f32 %v5637_v2, %v5637_v2  ;;  %4861 = vmatmul.msk.bf16.gmra.mxu2 %vm366_vm0, %v4932_v27 }
  0xbd   : > { %v1776_v32 = vsel %vm1353_vm1, %v1454_v30, 0.0  ;;  %v1491_v5 = vsel %vm1353_vm1, %v1359_v59, 0.0  ;;  %4878 = vmatmul.msk.bf16.gmra.mxu3 %vm366_vm0, %v4949_v28  ;;  %v4916_v28 = vld [vmem:[%s5438_s9 + $0xc0] sm:$0xff] }
  0xbe   : > { %1777 = vadd.xlane.f32.xlu2 %v1776_v32  ;;  %1489 = vadd.xlane.f32.xlu1 %v1488_v33  ;;  %v1575_v23 = vsel %vm1353_vm1, %v1387_v14, 0.0 }
  0xbf   : > { %1672 = vadd.xlane.f32.xlu0 %v1671_v36  ;;  %v1192_v40 = vpop.f32.mrf.mxu2 }
  0xc0   : > { %v5609_v42 = vadd.f32 %v5506_v34, %v1192_v40  ;;  %v1039_v44 = vpop.f32.mrf.mxu0  ;;  %v1277_v49 = vpop.f32.mrf.mxu3 }
  0xc1   : > { %v5618_v50 = vadd.f32 %v5506_v34, %v1277_v49  ;;  %v5624_v52 = vadd.f32 %v5506_v34, %v1039_v44  ;;  %v1109_v62 = vpop.f32.mrf.mxu1 }
  0xc2   : > { %11009 = vst [vmem:[#allocation13_spill] sm:$0xff] %v5609_v42  ;;  %v1421_v48 = vmul.f32 %v5609_v42, %v5609_v42  ;;  %v5640_v3 = vadd.f32 %v5506_v34, %v1109_v62 }
  0xc3   : > { %11010 = vst [vmem:[#allocation14_spill] sm:$0xff] %v5618_v50  ;;  %v1455_v57 = vmul.f32 %v5618_v50, %v5618_v50  ;;  %v1360_v58 = vmul.f32 %v5624_v52, %v5624_v52 }
  0xc4   : > { %v1677_v53 = vsel %vm1353_vm1, %v1421_v48, 0.0  ;;  %v1388_v12 = vmul.f32 %v5640_v3, %v5640_v3 }
  0xc5   : > { %v1779_v0 = vsel %vm1353_vm1, %v1455_v57, 0.0  ;;  %v1494_v4 = vsel %vm1353_vm1, %v1360_v58, 0.0 }
  0xc6   : > { %1678 = vadd.xlane.f32.xlu2 %v1677_v53  ;;  %1675 = vadd.xlane.f32.xlu1 %v1674_v55  ;;  %v1578_v22 = vsel %vm1353_vm1, %v1388_v12, 0.0 }
  0xc7   : > { %1573 = vadd.xlane.f32.xlu0 %v1572_v56  ;;  %v1194_v63 = vpop.f32.mrf.mxu2 }
  0xc8   : > { %v5645_v7 = vadd.f32 %v5506_v34, %v1194_v63  ;;  %v1279_v10 = vpop.f32.mrf.mxu3  ;;  %v1042_v11 = vpop.f32.mrf.mxu0 }
  0xc9   : > { %v5658_v16 = vadd.f32 %v5506_v34, %v1042_v11  ;;  %v1112_v17 = vpop.f32.mrf.mxu1  ;;  %v5664_v21 = vadd.f32 %v5506_v34, %v1279_v10 }
  0xca   : > { %11011 = vst [vmem:[#allocation15_spill] sm:$0xff] %v5645_v7  ;;  %v1422_v15 = vmul.f32 %v5645_v7, %v5645_v7  ;;  %v5661_v19 = vadd.f32 %v5506_v34, %v1112_v17 }
  0xcb   : > { %11012 = vst [vmem:[#allocation16_spill] sm:$0xff] %v5664_v21  ;;  %v1361_v25 = vmul.f32 %v5658_v16, %v5658_v16  ;;  %v1456_v33 = vmul.f32 %v5664_v21, %v5664_v21  ;;  %4845 = vmatmul.msk.bf16.gmra.mxu1 %vm366_vm0, %v4916_v28 }
  0xcc   : > { %v1680_v24 = vsel %vm1353_vm1, %v1422_v15, 0.0  ;;  %v1389_v30 = vmul.f32 %v5661_v19, %v5661_v19 }
  0xcd   : > { %v1497_v41 = vsel %vm1353_vm1, %v1361_v25, 0.0  ;;  %v1782_v44 = vsel %vm1353_vm1, %v1456_v33, 0.0 }
  0xce   : > { %1495 = vadd.xlane.f32.xlu2 %v1494_v4  ;;  %1492 = vadd.xlane.f32.xlu1 %v1491_v5  ;;  %v1581_v43 = vsel %vm1353_vm1, %v1389_v30, 0.0 }
  0xcf   : > { %1780 = vadd.xlane.f32.xlu0 %v1779_v0  ;;  %v1197_v29 = vpop.f32.mrf.mxu2 }
  0xd0   : > { %v1282_v32 = vpop.f32.mrf.mxu3  ;;  %v5680_v36 = vadd.f32 %v5506_v34, %v1197_v29  ;;  %v1044_v38 = vpop.f32.mrf.mxu0 }
  0xd1   : > { %v5683_v40 = vadd.f32 %v5506_v34, %v1282_v32  ;;  %v5689_v47 = vadd.f32 %v5506_v34, %v1044_v38  ;;  %v1114_v53 = vpop.f32.mrf.mxu1 }
  0xd2   : > { %11013 = vst [vmem:[#allocation17_spill] sm:$0xff] %v5680_v36  ;;  %v1423_v49 = vmul.f32 %v5680_v36, %v5680_v36  ;;  %v5700_v62 = vadd.f32 %v5506_v34, %v1114_v53  ;;  %v4933_v53 = vld [vmem:[%s5438_s9 + $0x148] sm:$0xff] }
  0xd3   : > { %11014 = vst [vmem:[#allocation18_spill] sm:$0xff] %v5683_v40  ;;  %v1457_v48 = vmul.f32 %v5683_v40, %v5683_v40  ;;  %v1362_v56 = vmul.f32 %v5689_v47, %v5689_v47  ;;  %4862 = vmatmul.msk.bf16.gmra.mxu2 %vm366_vm0, %v4933_v53 }
  0xd4   : > { %v1683_v59 = vsel %vm1353_vm1, %v1423_v49, 0.0  ;;  %v1390_v10 = vmul.f32 %v5700_v62, %v5700_v62 }
  0xd5   : > { %v1785_v58 = vsel %vm1353_vm1, %v1457_v48, 0.0  ;;  %v1500_v4 = vsel %vm1353_vm1, %v1362_v56, 0.0 }
  0xd6   : > { %1579 = vadd.xlane.f32.xlu2 %v1578_v22  ;;  %1576 = vadd.xlane.f32.xlu1 %v1575_v23  ;;  %v1584_v23 = vsel %vm1353_vm1, %v1390_v10, 0.0 }
  0xd7   : > { %1681 = vadd.xlane.f32.xlu0 %v1680_v24  ;;  %v1199_v55 = vpop.f32.mrf.mxu2 }
  0xd8   : > { %v1284_v57 = vpop.f32.mrf.mxu3  ;;  %v5703_v63 = vadd.f32 %v5506_v34, %v1199_v55  ;;  %v1047_v5 = vpop.f32.mrf.mxu0 }
  0xd9   : > { %v5706_v0 = vadd.f32 %v5506_v34, %v1284_v57  ;;  %v1117_v8 = vpop.f32.mrf.mxu1  ;;  %v5716_v12 = vadd.f32 %v5506_v34, %v1047_v5 }
  0xda   : > { %11015 = vst [vmem:[#allocation19_spill] sm:$0xff] %v5703_v63  ;;  %v1424_v9 = vmul.f32 %v5703_v63, %v5703_v63  ;;  %v5719_v14 = vadd.f32 %v5506_v34, %v1117_v8 }
  0xdb   : > { %11016 = vst [vmem:[#allocation20_spill] sm:$0xff] %v5706_v0  ;;  %v1458_v11 = vmul.f32 %v5706_v0, %v5706_v0  ;;  %v1363_v27 = vmul.f32 %v5716_v12, %v5716_v12 }
  0xdc   : > { %11017 = vst [vmem:[#allocation21_spill] sm:$0xff] %v5716_v12  ;;  %v1686_v22 = vsel %vm1353_vm1, %v1424_v9, 0.0  ;;  %v1391_v25 = vmul.f32 %v5719_v14, %v5719_v14 }
  0xdd   : > { %11018 = vst [vmem:[#allocation22_spill] sm:$0xff] %v5719_v14  ;;  %v1788_v24 = vsel %vm1353_vm1, %v1458_v11, 0.0 }
  0xde   : > { %1498 = vadd.xlane.f32.xlu2 %v1497_v41  ;;  %1783 = vadd.xlane.f32.xlu1 %v1782_v44  ;;  %v1587_v41 = vsel %vm1353_vm1, %v1391_v25, 0.0 }
  0xdf   : > { %1582 = vadd.xlane.f32.xlu0 %v1581_v43  ;;  %v1202_v15 = vpop.f32.mrf.mxu2  ;;  %v1503_v43 = vsel %vm1353_vm1, %v1363_v27, 0.0 }
  0xe0   : > { %v5722_v17 = vadd.f32 %v5506_v34, %v1202_v15  ;;  %v1287_v29 = vpop.f32.mrf.mxu3  ;;  %v1049_v32 = vpop.f32.mrf.mxu0 }
  0xe1   : > { %v5736_v33 = vadd.f32 %v5506_v34, %v1287_v29  ;;  %v1119_v38 = vpop.f32.mrf.mxu1  ;;  %v5742_v48 = vadd.f32 %v5506_v34, %v1049_v32 }
  0xe2   : > { %11019 = vst [vmem:[#allocation23_spill] sm:$0xff] %v5722_v17  ;;  %v1425_v30 = vmul.f32 %v5722_v17, %v5722_v17  ;;  %v5745_v49 = vadd.f32 %v5506_v34, %v1119_v38 }
  0xe3   : > { %11020 = vst [vmem:[#allocation24_spill] sm:$0xff] %v5736_v33  ;;  %v1459_v55 = vmul.f32 %v5736_v33, %v5736_v33  ;;  %v1364_v57 = vmul.f32 %v5742_v48, %v5742_v48 }
  0xe4   : > { %v1689_v44 = vsel %vm1353_vm1, %v1425_v30, 0.0  ;;  %11021 = vst [vmem:[#allocation25_spill] sm:$0xff] %v5742_v48 }
  0xe5   : > { %11022 = vst [vmem:[#allocation26_spill] sm:$0xff] %v5745_v49  ;;  %v1791_v5 = vsel %vm1353_vm1, %v1459_v55, 0.0  ;;  %v1506_v15 = vsel %vm1353_vm1, %v1364_v57, 0.0 }
  0xe6   : > { %1786 = vadd.xlane.f32.xlu2 %v1785_v58  ;;  %1684 = vadd.xlane.f32.xlu1 %v1683_v59  ;;  %v4902_v58 = vld [vmem:[%s5438_s9 + $0x50] sm:$0xff] }
  0xe7   : > { %1501 = vadd.xlane.f32.xlu0 %v1500_v4  ;;  %v1204_v56 = vpop.f32.mrf.mxu2  ;;  %v1392_v4 = vmul.f32 %v5745_v49, %v5745_v49  ;;  %4831 = vmatmul.msk.bf16.gmra.mxu0 %vm366_vm0, %v4902_v58 }
  0xe8   : > { %v1289_v59 = vpop.f32.mrf.mxu3  ;;  %v1052_v8 = vpop.f32.mrf.mxu0  ;;  %v5762_v10 = vadd.f32 %v5506_v34, %v1204_v56  ;;  %v4950_v56 = vld [vmem:[%s5438_s9 + $0x1d0] sm:$0xff] }
  0xe9   : > { %v5759_v9 = vadd.f32 %v5506_v34, %v1052_v8  ;;  %v5765_v11 = vadd.f32 %v5506_v34, %v1289_v59  ;;  %4879 = vmatmul.msk.bf16.gmra.mxu3 %vm366_vm0, %v4950_v56 }
  0xea   : > { %11024 = vst [vmem:[#allocation28_spill] sm:$0xff] %v5762_v10  ;;  %v1426_v28 = vmul.f32 %v5762_v10, %v5762_v10 }
  0xeb   : > { %11023 = vst [vmem:[#allocation27_spill] sm:$0xff] %v5759_v9  ;;  %v1460_v27 = vmul.f32 %v5765_v11, %v5765_v11 }
  0xec   : > { %11025 = vst [vmem:[#allocation29_spill] sm:$0xff] %v5765_v11  ;;  %v4951_v11 = vld [vmem:[%s5438_s9 + $0x1d8] sm:$0xff] }
  0xee   : > { %1687 = vadd.xlane.f32.xlu2 %v1686_v22  ;;  %1585 = vadd.xlane.f32.xlu1 %v1584_v23  ;;  %v1590_v22 = vsel %vm1353_vm1, %v1392_v4, 0.0  ;;  %v1122_v23 = vpop.f32.mrf.mxu1 }
  0xef   : > { %1789 = vadd.xlane.f32.xlu0 %v1788_v24  ;;  %v1365_v24 = vmul.f32 %v5759_v9, %v5759_v9  ;;  %v1207_v25 = vpop.f32.mrf.mxu2  ;;  %v5776_v29 = vadd.f32 %v5506_v34, %v1122_v23 }
  0xf0   : > { %v5779_v30 = vadd.f32 %v5506_v34, %v1207_v25  ;;  %v1292_v32 = vpop.f32.mrf.mxu3  ;;  %v1054_v58 = vpop.f32.mrf.mxu0 }
  0xf1   : > { %11026 = vst [vmem:[#allocation30_spill] sm:$0xff] %v5776_v29  ;;  %v5782_v38 = vadd.f32 %v5506_v34, %v1292_v32  ;;  %v1393_v55 = vmul.f32 %v5776_v29, %v5776_v29 }
  0xf2   : > { %11027 = vst [vmem:[#allocation31_spill] sm:$0xff] %v5779_v30  ;;  %v1427_v53 = vmul.f32 %v5779_v30, %v5779_v30 }
  0xf3   : > { %11028 = vst [vmem:[#allocation32_spill] sm:$0xff] %v5782_v38  ;;  %v1461_v57 = vmul.f32 %v5782_v38, %v5782_v38  ;;  %v1593_v8 = vsel %vm1353_vm1, %v1393_v55, 0.0 }
  0xf6   : > { %1588 = vadd.xlane.f32.xlu2 %v1587_v41  ;;  %1504 = vadd.xlane.f32.xlu1 %v1503_v43  ;;  %v1509_v41 = vsel %vm1353_vm1, %v1365_v24, 0.0  ;;  %v1794_v43 = vsel %vm1353_vm1, %v1460_v27, 0.0  ;;  %v1124_v59 = vpop.f32.mrf.mxu1 }
  0xf7   : > { %1690 = vadd.xlane.f32.xlu0 %v1689_v44  ;;  %v1692_v44 = vsel %vm1353_vm1, %v1426_v28, 0.0  ;;  %v1209_v4 = vpop.f32.mrf.mxu2  ;;  %v5802_v23 = vadd.f32 %v5506_v34, %v1124_v59 }
  0xf8   : > { %v5805_v24 = vadd.f32 %v5506_v34, %v1209_v4  ;;  %v1294_v25 = vpop.f32.mrf.mxu3  ;;  %v1057_v27 = vpop.f32.mrf.mxu0 }
  0xf9   : > { %11030 = vst [vmem:[#allocation34_spill] sm:$0xff] %v5802_v23  ;;  %v1394_v28 = vmul.f32 %v5802_v23, %v5802_v23  ;;  %v5822_v56 = vadd.f32 %v5506_v34, %v1294_v25  ;;  %4880 = vmatmul.msk.bf16.gmra.mxu3 %vm366_vm0, %v4951_v11 }
  0xfa   : > { %11031 = vst [vmem:[#allocation35_spill] sm:$0xff] %v5805_v24 }
  0xfb   : > { %11034 = vst [vmem:[#allocation38_spill] sm:$0xff] %v5822_v56 }
  0xfe   : > { %1507 = vadd.xlane.f32.xlu2 %v1506_v15  ;;  %1792 = vadd.xlane.f32.xlu1 %v1791_v5  ;;  %v1695_v5 = vsel %vm1353_vm1, %v1427_v53, 0.0  ;;  %v1797_v15 = vsel %vm1353_vm1, %v1461_v57, 0.0  ;;  %v1127_v53 = vpop.f32.mrf.mxu1  ;;  %v1596_v57 = vsel %vm1353_vm1, %v1394_v28, 0.0  ;;  %v1462_v28 = vmul.f32 %v5822_v56, %v5822_v56 }
  0xff   : > { %1591 = vadd.xlane.f32.xlu0 %v1590_v22  ;;  %v5799_v22 = vadd.f32 %v5506_v34, %v1054_v58  ;;  %v5819_v55 = vadd.f32 %v5506_v34, %v1127_v53 }
 0x100   : > { %v1800_v56 = vsel %vm1353_vm1, %v1462_v28, 0.0 }
 0x101   : > { %11029 = vst [vmem:[#allocation33_spill] sm:$0xff] %v5799_v22  ;;  %v1366_v32 = vmul.f32 %v5799_v22, %v5799_v22 }
 0x102   : > { %11033 = vst [vmem:[#allocation37_spill] sm:$0xff] %v5819_v55 }
 0x103   : > { %v1512_v58 = vsel %vm1353_vm1, %v1366_v32, 0.0  ;;  %v4934_v32 = vld [vmem:[%s5438_s9 + $0x150] sm:$0xff] }
 0x104   : > { %4863 = vmatmul.msk.bf16.gmra.mxu2 %vm366_vm0, %v4934_v32 }
 0x106   : > { %1795 = vadd.xlane.f32.xlu2 %v1794_v43  ;;  %1693 = vadd.xlane.f32.xlu1 %v1692_v44  ;;  %v1428_v43 = vmul.f32 %v5805_v24, %v5805_v24  ;;  %v5816_v44 = vadd.f32 %v5506_v34, %v1057_v27  ;;  %v1129_v32 = vpop.f32.mrf.mxu1 }
 0x107   : > { %1510 = vadd.xlane.f32.xlu0 %v1509_v41  ;;  %v5873_v33 = vadd.f32 %v5506_v34, %v1129_v32 }
 0x108   : > { %11032 = vst [vmem:[#allocation36_spill] sm:$0xff] %v5816_v44  ;;  %v1698_v59 = vsel %vm1353_vm1, %v1428_v43, 0.0  ;;  %v1367_v4 = vmul.f32 %v5816_v44, %v5816_v44  ;;  %v4903_v43 = vld [vmem:[%s5438_s9 + $0x58] sm:$0xff] }
 0x109   : > { %4832 = vmatmul.msk.bf16.gmra.mxu0 %vm366_vm0, %v4903_v43  ;;  %11038 = vst [vmem:[#allocation42_spill] sm:$0xff] %v5873_v33 }
 0x10a   : > { %v1515_v61 = vsel %vm1353_vm1, %v1367_v4, 0.0 }
 0x10e   : > { %1696 = vadd.xlane.f32.xlu2 %v1695_v5  ;;  %1594 = vadd.xlane.f32.xlu1 %v1593_v8  ;;  %v1212_v5 = vpop.f32.mrf.mxu2  ;;  %v1297_v8 = vpop.f32.mrf.mxu3 }
 0x10f   : > { %1798 = vadd.xlane.f32.xlu0 %v1797_v15  ;;  %v1395_v15 = vmul.f32 %v5819_v55, %v5819_v55  ;;  %v1132_v21 = vpop.f32.mrf.mxu1 }
 0x110   : > { %v5899_v11 = vadd.f32 %v5506_v34, %v1132_v21 }
 0x111   : > { %v5811_v41 = vpop.xlane.xlu0 %1355  ;;  %v1599_v46 = vsel %vm1353_vm1, %v1395_v15, 0.0 }
 0x112   : > { %11042 = vst [vmem:[#allocation46_spill] sm:$0xff] %v5899_v11 }
 0x116   : > { %1597 = vadd.xlane.f32.xlu2 %v1596_v57  ;;  %1513 = vadd.xlane.f32.xlu1 %v1512_v58  ;;  %v5842_v57 = vadd.f32 %v5506_v34, %v1212_v5  ;;  %v1059_v58 = vpop.f32.mrf.mxu0  ;;  %v4917_v5 = vld [vmem:[%s5438_s9 + $0xc8] sm:$0xff]  ;;  %v1214_v43 = vpop.f32.mrf.mxu2 }
 0x117   : > { %1699 = vadd.xlane.f32.xlu0 %v1698_v59  ;;  %v5845_v59 = vadd.f32 %v5506_v34, %v1297_v8  ;;  %v5853_v38 = vadd.f32 %v5506_v34, %v1059_v58  ;;  %4846 = vmatmul.msk.bf16.gmra.mxu1 %vm366_vm0, %v4917_v5  ;;  %v5876_v5 = vadd.f32 %v5506_v34, %v1214_v43 }
 0x118   : > { %v5833_v27 = vpop.xlane.xlu1 %1666  ;;  %11035 = vst [vmem:[#allocation39_spill] sm:$0xff] %v5842_v57  ;;  %v1429_v4 = vmul.f32 %v5842_v57, %v5842_v57  ;;  %v1396_v43 = vmul.f32 %v5873_v33, %v5873_v33 }
 0x119   : > { %v5831_v25 = vpop.xlane.xlu2 %1768  ;;  %v5838_v53 = vpop.xlane.xlu0 %1564  ;;  %11036 = vst [vmem:[#allocation40_spill] sm:$0xff] %v5845_v59  ;;  %v1463_v8 = vmul.f32 %v5845_v59, %v5845_v59  ;;  %v1430_v32 = vmul.f32 %v5876_v5, %v5876_v5 }
 0x11a   : > { %11037 = vst [vmem:[#allocation41_spill] sm:$0xff] %v5853_v38  ;;  %v1701_v59 = vsel %vm1353_vm1, %v1429_v4, 0.0  ;;  %v1602_v13 = vsel %vm1353_vm1, %v1396_v43, 0.0  ;;  %v1134_v43 = vpop.f32.mrf.mxu1 }
 0x11b   : > { %11039 = vst [vmem:[#allocation43_spill] sm:$0xff] %v5876_v5  ;;  %v1704_v26 = vsel %vm1353_vm1, %v1430_v32, 0.0  ;;  %v5932_v36 = vadd.f32 %v5506_v34, %v1134_v43 }
 0x11d   : > { %11046 = vst [vmem:[#allocation50_spill] sm:$0xff] %v5932_v36 }
 0x11e   : > { %1516 = vadd.xlane.f32.xlu2 %v1515_v61  ;;  %1801 = vadd.xlane.f32.xlu1 %v1800_v56  ;;  %v1368_v61 = vmul.f32 %v5853_v38, %v5853_v38  ;;  %v1803_v56 = vsel %vm1353_vm1, %v1463_v8, 0.0  ;;  %v1062_v8 = vpop.f32.mrf.mxu0 }
 0x11f   : > { %1600 = vadd.xlane.f32.xlu0 %v1599_v46  ;;  %v1299_v46 = vpop.f32.mrf.mxu3 }
 0x120   : > { %v5863_v28 = vpop.xlane.xlu1 %1567  ;;  %v5879_v0 = vadd.f32 %v5506_v34, %v1299_v46  ;;  %v1518_v40 = vsel %vm1353_vm1, %v1368_v61, 0.0  ;;  %v1217_v61 = vpop.f32.mrf.mxu2 }
 0x121   : > { %v5861_v15 = vpop.xlane.xlu2 %1669  ;;  %v5865_v58 = vpop.xlane.xlu0 %1771 }
 0x122   : > { %11040 = vst [vmem:[#allocation44_spill] sm:$0xff] %v5879_v0 }
 0x126   : > { %1804 = vadd.xlane.f32.xlu2 %v1803_v56  ;;  %1702 = vadd.xlane.f32.xlu1 %v1701_v59  ;;  %v1464_v59 = vmul.f32 %v5879_v0, %v5879_v0  ;;  %v5902_v56 = vadd.f32 %v5506_v34, %v1217_v61 }
 0x127   : > { %1519 = vadd.xlane.f32.xlu0 %v1518_v40  ;;  %v5896_v40 = vadd.f32 %v5506_v34, %v1062_v8  ;;  %v1397_v8 = vmul.f32 %v5899_v11, %v5899_v11  ;;  %v1302_v0 = vpop.f32.mrf.mxu3 }
 0x128   : > { %11043 = vst [vmem:[#allocation47_spill] sm:$0xff] %v5902_v56  ;;  %v1806_v57 = vsel %vm1353_vm1, %v1464_v59, 0.0  ;;  %v1431_v61 = vmul.f32 %v5902_v56, %v5902_v56  ;;  %v5926_v56 = vmax.f32 %v5811_v41, 1e-24 }
 0x129   : > { %v5883_v4 = vpop.xlane.xlu2 %1570  ;;  %v5885_v50 = vpop.xlane.xlu1 %1774  ;;  %11041 = vst [vmem:[#allocation45_spill] sm:$0xff] %v5896_v40  ;;  %v1369_v21 = vmul.f32 %v5896_v40, %v5896_v40  ;;  %v1605_v59 = vsel %vm1353_vm1, %v1397_v8, 0.0  ;;  %v4904_v8 = vld [vmem:[%s5438_s9 + $0x60] sm:$0xff] }
 0x12a   : > { %v5891_v46 = vpop.xlane.xlu0 %1486  ;;  %v1707_v10 = vsel %vm1353_vm1, %v1431_v61, 0.0  ;;  %5004 = vrsqrt.f32 %v5926_v56  ;;  %4833 = vmatmul.msk.bf16.gmra.mxu0 %vm366_vm0, %v4904_v8  ;;  %vm1876_vm3 = vweird.f32 %v5926_v56 }
 0x12b   : > { %v1521_v30 = vsel %vm1353_vm1, %v1369_v21, 0.0  ;;  %v1219_v21 = vpop.f32.mrf.mxu2 }
 0x12c   : > { %v5956_v31 = vadd.f32 %v5506_v34, %v1219_v21  ;;  %v4935_v21 = vld [vmem:[%s5438_s9 + $0x158] sm:$0xff] }
 0x12d   : > { %4864 = vmatmul.msk.bf16.gmra.mxu2 %vm366_vm0, %v4935_v21 }
 0x12e   : > { %1705 = vadd.xlane.f32.xlu2 %v1704_v26  ;;  %1603 = vadd.xlane.f32.xlu1 %v1602_v13  ;;  %v1064_v26 = vpop.f32.mrf.mxu0  ;;  %11048 = vst [vmem:[#allocation52_spill] sm:$0xff] %v5956_v31 }
 0x12f   : > { %1807 = vadd.xlane.f32.xlu0 %v1806_v57  ;;  %v5920_v57 = vadd.f32 %v5506_v34, %v1302_v0  ;;  %v5929_v24 = vadd.f32 %v5506_v34, %v1064_v26  ;;  %v1304_v43 = vpop.f32.mrf.mxu3 }
 0x130   : > { %v5959_v8 = vadd.f32 %v5506_v34, %v1304_v43 }
 0x131   : > { %v5913_v5 = vpop.xlane.xlu2 %1777  ;;  %v5915_v32 = vpop.xlane.xlu1 %1489  ;;  %11044 = vst [vmem:[#allocation48_spill] sm:$0xff] %v5920_v57  ;;  %v1465_v0 = vmul.f32 %v5920_v57, %v5920_v57  ;;  %v1370_v26 = vmul.f32 %v5929_v24, %v5929_v24 }
 0x132   : > { %v5917_v13 = vpop.xlane.xlu0 %1672  ;;  %11045 = vst [vmem:[#allocation49_spill] sm:$0xff] %v5929_v24 }
 0x133   : > { %v1809_v57 = vsel %vm1353_vm1, %v1465_v0, 0.0  ;;  %11049 = vst [vmem:[#allocation53_spill] sm:$0xff] %v5959_v8  ;;  %v1524_v7 = vsel %vm1353_vm1, %v1370_v26, 0.0  ;;  %v5963_v0 = vpop.eup %5004  ;;  %v1222_v45 = vpop.f32.mrf.mxu2  ;;  %v1466_v26 = vmul.f32 %v5959_v8, %v5959_v8 }
 0x134   : > { %v5989_v33 = vadd.f32 %v5506_v34, %v1222_v45  ;;  %vm1877_vm2 = vweird.f32 %v5963_v0 }
 0x135   : > { %v1812_v11 = vsel %vm1353_vm1, %v1466_v26, 0.0  ;;  %vm1878_vm4 = vmor %vm1876_vm3, %vm1877_vm2 }
 0x136   : > { %1606 = vadd.xlane.f32.xlu2 %v1605_v59  ;;  %1522 = vadd.xlane.f32.xlu1 %v1521_v30  ;;  %v4918_v30 = vld [vmem:[%s5438_s9 + $0xd0] sm:$0xff]  ;;  %v1067_v17 = vpop.f32.mrf.mxu0  ;;  %11051 = vst [vmem:[#allocation55_spill] sm:$0xff] %v5989_v33  ;;  %v1433_v45 = vmul.f32 %v5989_v33, %v5989_v33 }
 0x137   : > { %1708 = vadd.xlane.f32.xlu0 %v1707_v10  ;;  %v1398_v10 = vmul.f32 %v5932_v36, %v5932_v36  ;;  %v5952_v63 = vadd.f32 %v5506_v34, %v1067_v17  ;;  %4847 = vmatmul.msk.bf16.gmra.mxu1 %vm366_vm0, %v4918_v30  ;;  %v1137_v17 = vpop.f32.mrf.mxu1  ;;  %v1307_v8 = vpop.f32.mrf.mxu3 }
 0x138   : > { %v5986_v36 = vadd.f32 %v5506_v34, %v1137_v17  ;;  %v6000_v17 = vmax.f32 %v5863_v28, 1e-24 }
 0x139   : > { %v5938_v61 = vpop.xlane.xlu2 %1678  ;;  %v5940_v41 = vpop.xlane.xlu1 %1675  ;;  %11047 = vst [vmem:[#allocation51_spill] sm:$0xff] %v5952_v63  ;;  %v1608_v42 = vsel %vm1353_vm1, %v1398_v10, 0.0  ;;  %v1371_v30 = vmul.f32 %v5952_v63, %v5952_v63  ;;  %v5983_v10 = vmax.f32 %v5838_v53, 1e-24 }
 0x13a   : > { %v5945_v59 = vpop.xlane.xlu0 %1573  ;;  %11050 = vst [vmem:[#allocation54_spill] sm:$0xff] %v5986_v36  ;;  %vm2286_vm9 = vweird.f32 %v6000_v17 }
 0x13b   : > { %v1527_v55 = vsel %vm1353_vm1, %v1371_v30, 0.0  ;;  %5006 = vrsqrt.f32 %v5983_v10  ;;  %vm2276_vm6 = vweird.f32 %v5983_v10 }
 0x13c   : > { %5008 = vrsqrt.f32 %v6000_v17 }
 0x13e   : > { %1525 = vadd.xlane.f32.xlu2 %v1524_v7  ;;  %1810 = vadd.xlane.f32.xlu1 %v1809_v57  ;;  %v1432_v7 = vmul.f32 %v5956_v31, %v5956_v31  ;;  %v4952_v57 = vld [vmem:[%s5438_s9 + $0x1e0] sm:$0xff]  ;;  %v5993_v31 = vadd.f32 %v5506_v34, %v1307_v8  ;;  %v1399_v8 = vmul.f32 %v5986_v36, %v5986_v36  ;;  %v1069_v30 = vpop.f32.mrf.mxu0 }
 0x13f   : > { %1609 = vadd.xlane.f32.xlu0 %v1608_v42  ;;  %v1871_v42 = vmul.f32 %v5963_v0, %v5926_v56  ;;  %4881 = vmatmul.msk.bf16.gmra.mxu3 %vm366_vm0, %v4952_v57 }
 0x140   : > { %11052 = vst [vmem:[#allocation56_spill] sm:$0xff] %v5993_v31  ;;  %v1710_v21 = vsel %vm1353_vm1, %v1432_v7, 0.0  ;;  %v1467_v26 = vmul.f32 %v5993_v31, %v5993_v31  ;;  %v1611_v33 = vsel %vm1353_vm1, %v1399_v8, 0.0  ;;  %v6022_v31 = vadd.f32 %v5506_v34, %v1069_v30 }
 0x141   : > { %v5968_v20 = vpop.xlane.xlu2 %1495  ;;  %v5970_v60 = vpop.xlane.xlu1 %1492  ;;  %v1872_v53 = vmul.f32 %v5963_v0, %v1871_v42 }
 0x142   : > { %v5979_v43 = vpop.xlane.xlu0 %1780  ;;  %v1815_v36 = vsel %vm1353_vm1, %v1467_v26, 0.0  ;;  %v6019_v29 = vpop.eup %5006  ;;  %11053 = vst [vmem:[#allocation57_spill] sm:$0xff] %v6022_v31 }
 0x143   : > { %v1873_v28 = vmul.f32 0.5, %v1872_v53  ;;  %v2271_v8 = vmul.f32 %v6019_v29, %v5983_v10  ;;  %v1309_v26 = vpop.f32.mrf.mxu3  ;;  %vm2277_vm5 = vweird.f32 %v6019_v29 }
 0x144   : > { %vm2278_vm7 = vmor %vm2276_vm6, %vm2277_vm5 }
 0x145   : > { %v1874_v53 = vsub.f32 1.5, %v1873_v28  ;;  %v1372_v28 = vmul.f32 %v6022_v31, %v6022_v31  ;;  %v2272_v31 = vmul.f32 %v6019_v29, %v2271_v8 }
 0x146   : > { %1813 = vadd.xlane.f32.xlu2 %v1812_v11  ;;  %1711 = vadd.xlane.f32.xlu1 %v1710_v21  ;;  %v1139_v11 = vpop.f32.mrf.mxu1  ;;  %v1713_v21 = vsel %vm1353_vm1, %v1433_v45, 0.0  ;;  %v6030_v45 = vpop.eup %5008 }
 0x147   : > { %1528 = vadd.xlane.f32.xlu0 %v1527_v55  ;;  %v1224_v55 = vpop.f32.mrf.mxu2  ;;  %v6025_v63 = vadd.f32 %v5506_v34, %v1139_v11  ;;  %v2281_v40 = vmul.f32 %v6030_v45, %v6000_v17  ;;  %v2273_v8 = vmul.f32 0.5, %v2272_v31  ;;  %vm2287_vm8 = vweird.f32 %v6030_v45 }
 0x148   : > { %v6028_v23 = vadd.f32 %v5506_v34, %v1224_v55  ;;  %v1875_v55 = vmul.f32 %v5963_v0, %v1874_v53  ;;  %v6056_v53 = vmax.f32 %v5883_v4, 1e-24  ;;  %vm2288_vm10 = vmor %vm2286_vm9, %vm2287_vm8 }
 0x149   : > { %v6009_v7 = vpop.xlane.xlu2 %1579  ;;  %v6011_v57 = vpop.xlane.xlu1 %1576  ;;  %11054 = vst [vmem:[#allocation58_spill] sm:$0xff] %v6025_v63  ;;  %v1400_v11 = vmul.f32 %v6025_v63, %v6025_v63  ;;  %v2282_v4 = vmul.f32 %v6030_v45, %v2281_v40 }
 0x14a   : > { %v6014_v42 = vpop.xlane.xlu0 %1681  ;;  %11055 = vst [vmem:[#allocation59_spill] sm:$0xff] %v6028_v23  ;;  %v1879_v9 = vsel %vm1878_vm4, %v5963_v0, %v1875_v55  ;;  %5010 = vrsqrt.f32 %v6056_v53  ;;  %vm2296_vm12 = vweird.f32 %v6056_v53 }
 0x14b   : > { %v1614_v22 = vsel %vm1353_vm1, %v1400_v11, 0.0  ;;  %v1880_v11 = vmul.f32 14.285714, %v1879_v9  ;;  %v2274_v9 = vsub.f32 1.5, %v2273_v8 }
 0x14e   : > { %1714 = vadd.xlane.f32.xlu2 %v1713_v21  ;;  %1612 = vadd.xlane.f32.xlu1 %v1611_v33  ;;  %v1434_v21 = vmul.f32 %v6028_v23, %v6028_v23  ;;  %v1142_v63 = vpop.f32.mrf.mxu1  ;;  %v6062_v23 = vadd.f32 %v5506_v34, %v1309_v26 }
 0x14f   : > { %1816 = vadd.xlane.f32.xlu0 %v1815_v36  ;;  %v1072_v36 = vpop.f32.mrf.mxu0  ;;  %v6059_v44 = vadd.f32 %v5506_v34, %v1142_v63  ;;  %v1227_v55 = vpop.f32.mrf.mxu2 }
 0x150   : > { %v6051_v38 = vadd.f32 %v5506_v34, %v1072_v36  ;;  %11058 = vst [vmem:[#allocation62_spill] sm:$0xff] %v6062_v23  ;;  %v1530_v36 = vsel %vm1353_vm1, %v1372_v28, 0.0  ;;  %v1716_v56 = vsel %vm1353_vm1, %v1434_v21, 0.0  ;;  %v2283_v21 = vmul.f32 0.5, %v2282_v4  ;;  %v6094_v49 = vpop.eup %5010 }
 0x151   : > { %v6034_v24 = vpop.xlane.xlu2 %1498  ;;  %v6036_v30 = vpop.xlane.xlu1 %1783  ;;  %11057 = vst [vmem:[#allocation61_spill] sm:$0xff] %v6059_v44  ;;  %v1401_v26 = vmul.f32 %v6059_v44, %v6059_v44  ;;  %v6086_v31 = vadd.f32 %v5506_v34, %v1227_v55  ;;  %v2291_v8 = vmul.f32 %v6094_v49, %v6056_v53  ;;  %v4919_v55 = vld [vmem:[%s5438_s9 + $0xd8] sm:$0xff]  ;;  %vm2297_vm11 = vweird.f32 %v6094_v49 }
 0x152   : > { %v6044_v33 = vpop.xlane.xlu0 %1582  ;;  %11056 = vst [vmem:[#allocation60_spill] sm:$0xff] %v6051_v38  ;;  %v1373_v63 = vmul.f32 %v6051_v38, %v6051_v38  ;;  %v6091_v38 = vmul.f32 %v1880_v11, %v5509_v37  ;;  %v2275_v37 = vmul.f32 %v6019_v29, %v2274_v9  ;;  %v4953_v9 = vld [vmem:[%s5438_s9 + $0x1e8] sm:$0xff]  ;;  %4848 = vmatmul.msk.bf16.gmra.mxu1 %vm366_vm0, %v4919_v55  ;;  %vm2298_vm13 = vmor %vm2296_vm12, %vm2297_vm11 }
 0x153   : > { %11059 = vst [vmem:[#allocation63_spill] sm:$0xff] %v6086_v31  ;;  %v1617_v44 = vsel %vm1353_vm1, %v1401_v26, 0.0  ;;  %v1435_v4 = vmul.f32 %v6086_v31, %v6086_v31  ;;  %4882 = vmatmul.msk.bf16.gmra.mxu3 %vm366_vm0, %v4953_v9  ;;  %v6159_v9 = vmax.f32 %v5945_v59, 1e-24 }
 0x155   : > { %v1719_v10 = vsel %vm1353_vm1, %v1435_v4, 0.0 }
 0x156   : > { %1615 = vadd.xlane.f32.xlu2 %v1614_v22  ;;  %1531 = vadd.xlane.f32.xlu1 %v1530_v36  ;;  %v1468_v22 = vmul.f32 %v6062_v23, %v6062_v23  ;;  %v6083_v36 = vmax.f32 %v5891_v46, 1e-24  ;;  %v2284_v46 = vsub.f32 1.5, %v2283_v21 }
 0x157   : > { %1717 = vadd.xlane.f32.xlu0 %v1716_v56  ;;  %v1533_v56 = vsel %vm1353_vm1, %v1373_v63, 0.0  ;;  %v3419_v63 = vrot.slane %v6091_v38, 1 }
 0x158   : > { %v1818_v23 = vsel %vm1353_vm1, %v1468_v22, 0.0  ;;  %5012 = vrsqrt.f32 %v6083_v36  ;;  %v2279_v22 = vsel %vm2278_vm7, %v6019_v29, %v2275_v37  ;;  %v2285_v21 = vmul.f32 %v6030_v45, %v2284_v46  ;;  %v1312_v46 = vpop.f32.mrf.mxu3 }
 0x159   : > { %v6074_v28 = vpop.xlane.xlu2 %1786  ;;  %v6076_v0 = vpop.xlane.xlu1 %1684  ;;  %v3316_v31 = vmul.f32 %v2279_v22, %v5514_v39  ;;  %v6122_v12 = vperm.slane %v3419_v63, 0  ;;  %v2292_v29 = vmul.f32 %v6094_v49, %v2291_v8  ;;  %v6132_v39 = vmax.f32 %v5915_v32, 1e-24 }
 0x15a   : > { %v6080_v40 = vpop.xlane.xlu0 %1501  ;;  %v2289_v63 = vsel %vm2288_vm10, %v6030_v45, %v2285_v21  ;;  %v1074_v8 = vpop.f32.mrf.mxu0  ;;  %vm2016_vm15 = vweird.f32 %v6083_v36  ;;  %vm2306_vm7 = vweird.f32 %v6159_v9 }
 0x15b   : > { %11060 = vst [vmem:[#allocation64_spill] sm:$0xff] %v6122_v12  ;;  %v3468_v4 = vmul.f32 %v6122_v12, %v3316_v31  ;;  %v3317_v32 = vmul.f32 %v2289_v63, %v5538_v54  ;;  %v2293_v22 = vmul.f32 0.5, %v2292_v29  ;;  %5014 = vrsqrt.f32 %v6132_v39 }
 0x15c   : > { %5016 = vrsqrt.f32 %v6159_v9  ;;  %vm2026_vm4 = vweird.f32 %v6132_v39 }
 0x15d   : > { %v3648_v55 = vsel %vm1353_vm1, %v3468_v4, 0.0  ;;  %v3469_v21 = vmul.f32 %v6122_v12, %v3317_v32  ;;  %v2294_v63 = vsub.f32 1.5, %v2293_v22 }
 0x15e   : > { %1534 = vadd.xlane.f32.xlu2 %v1533_v56  ;;  %1819 = vadd.xlane.f32.xlu1 %v1818_v23  ;;  %v4936_v56 = vld [vmem:[%s5438_s9 + $0x160] sm:$0xff]  ;;  %v6120_v48 = vpop.eup %5012 }
 0x15f   : > { %1618 = vadd.xlane.f32.xlu0 %v1617_v44  ;;  %v1144_v44 = vpop.f32.mrf.mxu1  ;;  %4865 = vmatmul.msk.bf16.gmra.mxu2 %vm366_vm0, %v4936_v56  ;;  %v2011_v17 = vmul.f32 %v6120_v48, %v6083_v36  ;;  %vm2017_vm14 = vweird.f32 %v6120_v48 }
 0x160   : > { %v6127_v37 = vadd.f32 %v5506_v34, %v1144_v44  ;;  %v6141_v34 = vld [vmem:[%s10641_s3] ss:$0 sm:$0xff]  ;;  %vm6207_vm2 = vmor %vm2016_vm15, %vm2017_vm14 }
 0x161   : > { %v6105_v23 = vpop.xlane.xlu2 %1687  ;;  %v6107_v26 = vpop.xlane.xlu1 %1585  ;;  %v6144_v44 = vadd.f32 %v6141_v34, %v1312_v46  ;;  %v2012_v54 = vmul.f32 %v6120_v48, %v2011_v17  ;;  %v6163_v29 = vadd.f32 %v6141_v34, %v1074_v8  ;;  %v3651_v46 = vsel %vm1353_vm1, %v3469_v21, 0.0 }
 0x162   : > { %v6109_v11 = vpop.xlane.xlu0 %1789  ;;  %11061 = vst [vmem:[#allocation65_spill] sm:$0xff] %v6127_v37  ;;  %v6174_v21 = vpop.eup %5014 }
 0x163   : > { %11062 = vst [vmem:[#allocation66_spill] sm:$0xff] %v6144_v44  ;;  %v1469_v4 = vmul.f32 %v6144_v44, %v6144_v44  ;;  %v2013_v59 = vmul.f32 0.5, %v2012_v54  ;;  %v1374_v8 = vmul.f32 %v6163_v29, %v6163_v29  ;;  %v2021_v44 = vmul.f32 %v6174_v21, %v6132_v39  ;;  %v6192_v14 = vpop.eup %5016 }
 0x164   : > { %11063 = vst [vmem:[#allocation67_spill] sm:$0xff] %v6163_v29  ;;  %v4937_v29 = vld [vmem:[%s5438_s9 + $0x168] sm:$0xff]  ;;  %vm2027_vm3 = vweird.f32 %v6174_v21  ;;  %vm2307_vm6 = vweird.f32 %v6192_v14 }
 0x165   : > { %v1821_v17 = vsel %vm1353_vm1, %v1469_v4, 0.0  ;;  %v2014_v4 = vsub.f32 1.5, %v2013_v59  ;;  %v2022_v59 = vmul.f32 %v6174_v21, %v2021_v44  ;;  %vm2028_vm5 = vmor %vm2026_vm4, %vm2027_vm3 }
 0x166   : > { %1720 = vadd.xlane.f32.xlu1 %v1719_v10  ;;  %v1402_v10 = vmul.f32 %v6127_v37, %v6127_v37  ;;  %3649 = vadd.xlane.f32.xlu2 %v3648_v55  ;;  %v1229_v55 = vpop.f32.mrf.mxu2  ;;  %v1536_v37 = vsel %vm1353_vm1, %v1374_v8, 0.0  ;;  %vm2308_vm8 = vmor %vm2306_vm7, %vm2307_vm6 }
 0x167   : > { %3652 = vadd.xlane.f32.xlu0 %v3651_v46  ;;  %v6177_v22 = vadd.f32 %v6141_v34, %v1229_v55  ;;  %v1147_v8 = vpop.f32.mrf.mxu1 }
 0x168   : > { %v1620_v32 = vsel %vm1353_vm1, %v1402_v10, 0.0 }
 0x169   : > { %v6148_v31 = vpop.xlane.xlu2 %1588  ;;  %v6150_v45 = vpop.xlane.xlu1 %1504  ;;  %11064 = vst [vmem:[#allocation68_spill] sm:$0xff] %v6177_v22 }
 0x16a   : > { %v6155_v56 = vpop.xlane.xlu0 %1690 }
 0x16e   : > { %1621 = vadd.xlane.f32.xlu1 %v1620_v32  ;;  %v2295_v32 = vmul.f32 %v6094_v49, %v2294_v63  ;;  %1822 = vadd.xlane.f32.xlu2 %v1821_v17  ;;  %v1436_v63 = vmul.f32 %v6177_v22, %v6177_v22  ;;  %v6204_v17 = vmax.f32 %v5970_v60, 1e-24  ;;  %v6221_v60 = vadd.f32 %v6141_v34, %v1147_v8 }
 0x16f   : > { %1537 = vadd.xlane.f32.xlu0 %v1536_v37  ;;  %4866 = vmatmul.msk.bf16.gmra.mxu2 %vm366_vm0, %v4937_v29  ;;  %v1077_v37 = vpop.f32.mrf.mxu0  ;;  %v6238_v22 = vmax.f32 %v6011_v57, 1e-24 }
 0x170   : > { %v2299_v55 = vsel %vm2298_vm13, %v6094_v49, %v2295_v32  ;;  %v2301_v49 = vmul.f32 %v6192_v14, %v6159_v9  ;;  %v2015_v32 = vmul.f32 %v6120_v48, %v2014_v4  ;;  %v6212_v36 = vadd.f32 %v6141_v34, %v1077_v37  ;;  %11071 = vst [vmem:[#allocation73_spill] sm:$0xff] %v6221_v60 }
 0x171   : > { %v6179_v46 = vpop.xlane.xlu2 %1507  ;;  %v6181_v10 = vpop.xlane.xlu1 %1792  ;;  %v3318_v53 = vmul.f32 %v2299_v55, %v5552_v1  ;;  %v1722_v44 = vsel %vm1353_vm1, %v1436_v63, 0.0  ;;  %v6229_v37 = vperm.slane %v6091_v38, 0  ;;  %5018 = vrsqrt.f32 %v6204_v17 }
 0x172   : > { %11065 = vst [vmem:[#allocation69_spill] sm:$0xff] %v6181_v10  ;;  %v6185_v54 = vpop.xlane.xlu0 %1591  ;;  %v2019_v4 = vsel %vm6207_vm2, %v6120_v48, %v2015_v32  ;;  %v1375_v48 = vmul.f32 %v6212_v36, %v6212_v36  ;;  %5020 = vrsqrt.f32 %v6238_v22  ;;  %vm2036_vm10 = vweird.f32 %v6204_v17 }
 0x173   : > { %11068 = vst [vmem:[#allocation70_spill] sm:$0xff] %v6212_v36  ;;  %v3470_v1 = vmul.f32 %v6122_v12, %v3318_v53  ;;  %v2023_v53 = vmul.f32 0.5, %v2022_v59  ;;  %v3290_v8 = vmul.f32 %v2019_v4, %v5561_v6  ;;  %v4920_v59 = vld [vmem:[%s5438_s9 + $0xe0] sm:$0xff]  ;;  %v4954_v4 = vld [vmem:[%s5438_s9 + $0x1f0] sm:$0xff] }
 0x174   : > { %4849 = vmatmul.msk.bf16.gmra.mxu1 %vm366_vm0, %v4920_v59  ;;  %4883 = vmatmul.msk.bf16.gmra.mxu3 %vm366_vm0, %v4954_v4 }
 0x175   : > { %v3654_v63 = vsel %vm1353_vm1, %v3470_v1, 0.0  ;;  %v3442_v32 = vmul.f32 %v6229_v37, %v3290_v8  ;;  %v1403_v1 = vmul.f32 %v6221_v60, %v6221_v60 }
 0x176   : > { %1723 = vadd.xlane.f32.xlu2 %v1722_v44  ;;  %3655 = vadd.xlane.f32.xlu1 %v3654_v63  ;;  %v1314_v44 = vpop.f32.mrf.mxu3  ;;  %v1539_v63 = vsel %vm1353_vm1, %v1375_v48, 0.0 }
 0x177   : > { %v3570_v6 = vsel %vm1353_vm1, %v3442_v32, 0.0  ;;  %v6255_v8 = vpop.eup %5018 }
 0x178   : > { %3571 = vadd.xlane.f32.xlu0 %v3570_v6  ;;  %v2031_v59 = vmul.f32 %v6255_v8, %v6204_v17  ;;  %v1232_v6 = vpop.f32.mrf.mxu2  ;;  %vm2037_vm9 = vweird.f32 %v6255_v8 }
 0x179   : > { %v6216_v29 = vpop.xlane.xlu2 %1795  ;;  %v6218_v55 = vpop.xlane.xlu1 %1693  ;;  %vm2038_vm11 = vmor %vm2036_vm10, %vm2037_vm9 }
 0x17a   : > { %11069 = vst [vmem:[#allocation71_spill] sm:$0xff] %v6216_v29  ;;  %v6226_v10 = vpop.xlane.xlu0 %1510  ;;  %v2024_v29 = vsub.f32 1.5, %v2023_v53 }
 0x17b   : > { %11070 = vst [vmem:[#allocation72_spill] sm:$0xff] %v6218_v55  ;;  %v2302_v55 = vmul.f32 %v6192_v14, %v2301_v49 }
 0x17c   : > { %11072 = vst [vmem:[#allocation74_spill] sm:$0xff] %v6226_v10  ;;  %v6245_v10 = vadd.f32 %v6141_v34, %v1314_v44  ;;  %v2025_v32 = vmul.f32 %v6174_v21, %v2024_v29 }
 0x17d   : > { %v2303_v49 = vmul.f32 0.5, %v2302_v55  ;;  %v1623_v55 = vsel %vm1353_vm1, %v1403_v1, 0.0  ;;  %v6271_v1 = vadd.f32 %v6141_v34, %v1232_v6 }
 0x17e   : > { %11073 = vst [vmem:[#allocation75_spill] sm:$0xff] %v6245_v10  ;;  %1624 = vadd.xlane.f32.xlu2 %v1623_v55  ;;  %1540 = vadd.xlane.f32.xlu1 %v1539_v63  ;;  %v1470_v48 = vmul.f32 %v6245_v10, %v6245_v10  ;;  %v2029_v4 = vsel %vm2028_vm5, %v6174_v21, %v2025_v32 }
 0x17f   : > { %v2304_v44 = vsub.f32 1.5, %v2303_v49  ;;  %11074 = vst [vmem:[#allocation76_spill] sm:$0xff] %v6271_v1  ;;  %v3291_v39 = vmul.f32 %v2029_v4, %v5579_v18  ;;  %v6275_v49 = vpop.eup %5020  ;;  %v2032_v55 = vmul.f32 %v6255_v8, %v2031_v59  ;;  %v6287_v18 = vmax.f32 %v6009_v7, 1e-24  ;;  %v1079_v4 = vpop.f32.mrf.mxu0 }
 0x180   : > { %v1824_v29 = vsel %vm1353_vm1, %v1470_v48, 0.0  ;;  %v1437_v9 = vmul.f32 %v6271_v1, %v6271_v1  ;;  %v1149_v7 = vpop.f32.mrf.mxu1  ;;  %vm2317_vm12 = vweird.f32 %v6275_v49 }
 0x181   : > { %v6250_v36 = vpop.xlane.xlu2 %1696  ;;  %v6252_v57 = vpop.xlane.xlu1 %1594  ;;  %v2305_v63 = vmul.f32 %v6192_v14, %v2304_v44  ;;  %1825 = vadd.xlane.f32.xlu0 %v1824_v29  ;;  %v3443_v10 = vmul.f32 %v6229_v37, %v3291_v39  ;;  %v2311_v44 = vmul.f32 %v6275_v49, %v6238_v22  ;;  %v2033_v29 = vmul.f32 0.5, %v2032_v55 }
 0x182   : > { %v6260_v53 = vpop.xlane.xlu0 %1798  ;;  %v1317_v39 = vpop.f32.mrf.mxu3  ;;  %5022 = vrsqrt.f32 %v6287_v18  ;;  %vm2326_vm15 = vweird.f32 %v6287_v18 }
 0x183   : > { %v2309_v21 = vsel %vm2308_vm8, %v6192_v14, %v2305_v63  ;;  %v3573_v32 = vsel %vm1353_vm1, %v3443_v10, 0.0  ;;  %v6303_v63 = vmax.f32 %v5968_v20, 1e-24  ;;  %v1725_v10 = vsel %vm1353_vm1, %v1437_v9, 0.0 }
 0x184   : > { %v3319_v59 = vmul.f32 %v2309_v21, %v5603_v35  ;;  %v2312_v35 = vmul.f32 %v6275_v49, %v2311_v44  ;;  %v6309_v21 = vadd.f32 %v6141_v34, %v1079_v4  ;;  %v4938_v44 = vld [vmem:[%s5438_s9 + $0x170] sm:$0xff]  ;;  %v4955_v4 = vld [vmem:[%s5438_s9 + $0x1f8] sm:$0xff] }
 0x185   : > { %5024 = vrsqrt.f32 %v6303_v63  ;;  %4867 = vmatmul.msk.bf16.gmra.mxu2 %vm366_vm0, %v4938_v44  ;;  %4884 = vmatmul.msk.bf16.gmra.mxu3 %vm366_vm0, %v4955_v4  ;;  %vm2046_vm4 = vweird.f32 %v6303_v63 }
 0x186   : > { %3574 = vadd.xlane.f32.xlu1 %v3573_v32  ;;  %v3471_v14 = vmul.f32 %v6122_v12, %v3319_v59  ;;  %11077 = vst [vmem:[#allocation79_spill] sm:$0xff] %v6309_v21  ;;  %v6313_v32 = vadd.f32 %v6141_v34, %v1149_v7  ;;  %v1234_v59 = vpop.f32.mrf.mxu2  ;;  %v2313_v7 = vmul.f32 0.5, %v2312_v35 }
 0x188   : > { %v3657_v55 = vsel %vm1353_vm1, %v3471_v14, 0.0  ;;  %11078 = vst [vmem:[#allocation80_spill] sm:$0xff] %v6313_v32  ;;  %v1404_v35 = vmul.f32 %v6313_v32, %v6313_v32  ;;  %v2314_v44 = vsub.f32 1.5, %v2313_v7 }
 0x189   : > { %v6282_v6 = vpop.xlane.xlu2 %1597  ;;  %v6284_v60 = vpop.xlane.xlu1 %1513  ;;  %3658 = vadd.xlane.f32.xlu2 %v3657_v55  ;;  %1726 = vadd.xlane.f32.xlu0 %v1725_v10  ;;  %v6327_v55 = vadd.f32 %v6141_v34, %v1234_v59  ;;  %v1376_v10 = vmul.f32 %v6309_v21, %v6309_v21 }
 0x18a   : > { %11075 = vst [vmem:[#allocation77_spill] sm:$0xff] %v6282_v6  ;;  %v6292_v48 = vpop.xlane.xlu0 %1699  ;;  %v6299_v6 = vadd.f32 %v6141_v34, %v1317_v39  ;;  %v2034_v39 = vsub.f32 1.5, %v2033_v29 }
 0x18b   : > { %11081 = vst [vmem:[#allocation83_spill] sm:$0xff] %v6327_v55  ;;  %v1542_v4 = vsel %vm1353_vm1, %v1376_v10, 0.0  ;;  %v6358_v10 = vmax.f32 %v5831_v25, 1e-24  ;;  %v1319_v25 = vpop.f32.mrf.mxu3 }
 0x18c   : > { %11076 = vst [vmem:[#allocation78_spill] sm:$0xff] %v6299_v6  ;;  %v1471_v20 = vmul.f32 %v6299_v6, %v6299_v6  ;;  %v6334_v6 = vpop.eup %5022  ;;  %v2035_v59 = vmul.f32 %v6255_v8, %v2034_v39 }
 0x18d   : > { %v2321_v21 = vmul.f32 %v6334_v6, %v6287_v18  ;;  %11082 = vst [vmem:[#allocation84_spill] sm:$0xff] %v6358_v10  ;;  %5026 = vrsqrt.f32 %v6358_v10  ;;  %vm2327_vm14 = vweird.f32 %v6334_v6 }
 0x18e   : > { %v1827_v29 = vsel %vm1353_vm1, %v1471_v20, 0.0  ;;  %v4921_v20 = vld [vmem:[%s5438_s9 + $0xe8] sm:$0xff]  ;;  %v2039_v39 = vsel %vm2038_vm11, %v6255_v8, %v2035_v59  ;;  %vm2328_vm2 = vmor %vm2326_vm15, %vm2327_vm14 }
 0x18f   : > { %1828 = vadd.xlane.f32.xlu1 %v1827_v29  ;;  %v1626_v29 = vsel %vm1353_vm1, %v1404_v35, 0.0  ;;  %4850 = vmatmul.msk.bf16.gmra.mxu1 %vm366_vm0, %v4921_v20  ;;  %v3292_v17 = vmul.f32 %v2039_v39, %v5621_v51  ;;  %v2322_v35 = vmul.f32 %v6334_v6, %v2321_v21  ;;  %v2315_v20 = vmul.f32 %v6275_v49, %v2314_v44 }
 0x190   : > { %v6368_v51 = vmax.f32 %v5833_v27, 1e-24  ;;  %vm2316_vm0 = vweird.f32 %v6238_v22  ;;  %v6378_v21 = vmax.f32 %v6044_v33, 1e-24  ;;  %v6382_v39 = vadd.f32 %v6141_v34, %v1319_v25 }
 0x191   : > { %v6317_v1 = vpop.xlane.xlu2 %1516  ;;  %v6319_v9 = vpop.xlane.xlu1 %1801  ;;  %1543 = vadd.xlane.f32.xlu2 %v1542_v4  ;;  %1627 = vadd.xlane.f32.xlu0 %v1626_v29  ;;  %v3444_v59 = vmul.f32 %v6229_v37, %v3292_v17  ;;  %vm2318_vm13 = vmor %vm2316_vm0, %vm2317_vm12  ;;  %v6374_v29 = vmax.f32 %v6034_v24, 1e-24  ;;  %v2323_v44 = vmul.f32 0.5, %v2322_v35 }
 0x192   : > { %11079 = vst [vmem:[#allocation81_spill] sm:$0xff] %v6319_v9  ;;  %v6324_v14 = vpop.xlane.xlu0 %1600  ;;  %v6347_v9 = vpop.eup %5024  ;;  %v2319_v27 = vsel %vm2318_vm13, %v6275_v49, %v2315_v20  ;;  %5028 = vrsqrt.f32 %v6368_v51  ;;  %vm2336_vm10 = vweird.f32 %v6378_v21 }
 0x193   : > { %11080 = vst [vmem:[#allocation82_spill] sm:$0xff] %v6324_v14  ;;  %v1438_v14 = vmul.f32 %v6327_v55, %v6327_v55  ;;  %v2041_v4 = vmul.f32 %v6347_v9, %v6303_v63  ;;  %v3576_v17 = vsel %vm1353_vm1, %v3444_v59, 0.0  ;;  %v3320_v33 = vmul.f32 %v2319_v27, %v5637_v2  ;;  %v6407_v27 = vpop.eup %5026 }
 0x194   : > { %11083 = vst [vmem:[#allocation85_spill] sm:$0xff] %v6368_v51  ;;  %5030 = vrsqrt.f32 %v6374_v29  ;;  %v1472_v2 = vmul.f32 %v6382_v39, %v6382_v39  ;;  %vm2047_vm3 = vweird.f32 %v6347_v9  ;;  %vm2056_vm8 = vweird.f32 %v6374_v29 }
 0x195   : > { %v1728_v8 = vsel %vm1353_vm1, %v1438_v14, 0.0  ;;  %v1152_v14 = vpop.f32.mrf.mxu1  ;;  %11084 = vst [vmem:[#allocation86_spill] sm:$0xff] %v6382_v39  ;;  %v2042_v24 = vmul.f32 %v6347_v9, %v2041_v4  ;;  %5032 = vrsqrt.f32 %v6378_v21  ;;  %v3472_v59 = vmul.f32 %v6122_v12, %v3320_v33  ;;  %vm6459_vm5 = vmor %vm2046_vm4, %vm2047_vm3 }
 0x196   : > { %v6385_v22 = vadd.f32 %v6141_v34, %v1152_v14  ;;  %v2324_v4 = vsub.f32 1.5, %v2323_v44  ;;  %11090 = vst [vmem:[#allocation92_spill] sm:$0xff] %v6407_v27  ;;  %v2951_v39 = vmul.f32 %v6407_v27, %v6358_v10 }
 0x197   : > { %1729 = vadd.xlane.f32.xlu1 %v1728_v8  ;;  %v1082_v8 = vpop.f32.mrf.mxu0 }
 0x198   : > { %11085 = vst [vmem:[#allocation87_spill] sm:$0xff] %v6385_v22  ;;  %v6398_v20 = vadd.f32 %v6141_v34, %v1082_v8  ;;  %v1405_v14 = vmul.f32 %v6385_v22, %v6385_v22  ;;  %v1237_v22 = vpop.f32.mrf.mxu2 }
 0x199   : > { %v6353_v32 = vpop.xlane.xlu2 %1804  ;;  %v6355_v7 = vpop.xlane.xlu1 %1702  ;;  %3577 = vadd.xlane.f32.xlu2 %v3576_v17  ;;  %v2043_v17 = vmul.f32 0.5, %v2042_v24  ;;  %v1830_v24 = vsel %vm1353_vm1, %v1472_v2, 0.0 }
 0x19a   : > { %v6361_v55 = vpop.xlane.xlu0 %1519  ;;  %11088 = vst [vmem:[#allocation90_spill] sm:$0xff] %v6398_v20  ;;  %v1629_v8 = vsel %vm1353_vm1, %v1405_v14, 0.0  ;;  %v1377_v44 = vmul.f32 %v6398_v20, %v6398_v20 }
 0x19b   : > { %v2044_v14 = vsub.f32 1.5, %v2043_v17 }
 0x19c   : > { %v1545_v18 = vsel %vm1353_vm1, %v1377_v44, 0.0 }
 0x19d   : > { %v2045_v44 = vmul.f32 %v6347_v9, %v2044_v14 }
 0x19f   : > { %1630 = vadd.xlane.f32.xlu1 %v1629_v8  ;;  %v6426_v8 = vadd.f32 %v6141_v34, %v1237_v22 }
 0x1a1   : > { %v6392_v49 = vpop.xlane.xlu2 %1705  ;;  %v6394_v35 = vpop.xlane.xlu1 %1603  ;;  %11092 = vst [vmem:[#allocation94_spill] sm:$0xff] %v6426_v8  ;;  %1831 = vadd.xlane.f32.xlu2 %v1830_v24  ;;  %v2952_v24 = vmul.f32 %v6407_v27, %v2951_v39  ;;  %v6457_v39 = vmax.f32 %v5865_v58, 1e-24 }
 0x1a2   : > { %11086 = vst [vmem:[#allocation88_spill] sm:$0xff] %v6392_v49  ;;  %v6401_v25 = vpop.xlane.xlu0 %1807  ;;  %v6411_v49 = vpop.eup %5028 }
 0x1a3   : > { %11087 = vst [vmem:[#allocation89_spill] sm:$0xff] %v6394_v35  ;;  %v3660_v35 = vsel %vm1353_vm1, %v3472_v59, 0.0  ;;  %v6416_v33 = vpop.eup %5030  ;;  %v2611_v20 = vmul.f32 %v6411_v49, %v6368_v51  ;;  %v1154_v27 = vpop.f32.mrf.mxu1  ;;  %v6471_v58 = vmul.f32 0.5, %v2952_v24 }
 0x1a4   : > { %11089 = vst [vmem:[#allocation91_spill] sm:$0xff] %v6401_v25  ;;  %3661 = vadd.xlane.f32.xlu0 %v3660_v35  ;;  %v2325_v35 = vmul.f32 %v6334_v6, %v2324_v4  ;;  %v6422_v59 = vpop.eup %5032  ;;  %v6431_v25 = vmax.f32 %v5861_v15, 1e-24  ;;  %v2051_v15 = vmul.f32 %v6416_v33, %v6374_v29  ;;  %vm2057_vm6 = vweird.f32 %v6416_v33 }
 0x1a5   : > { %11091 = vst [vmem:[#allocation93_spill] sm:$0xff] %v6411_v49  ;;  %v2331_v10 = vmul.f32 %v6422_v59, %v6378_v21  ;;  %vm2337_vm7 = vweird.f32 %v6422_v59  ;;  %vm2058_vm9 = vmor %vm2056_vm8, %vm2057_vm6  ;;  %v6571_v29 = vmax.f32 %v5940_v41, 1e-24 }
 0x1a6   : > { %11093 = vst [vmem:[#allocation95_spill] sm:$0xff] %v6431_v25  ;;  %v2329_v22 = vsel %vm2328_vm2, %v6334_v6, %v2325_v35  ;;  %v2612_v6 = vmul.f32 %v6411_v49, %v2611_v20  ;;  %5034 = vrsqrt.f32 %v6431_v25  ;;  %v2049_v20 = vsel %vm6459_vm5, %v6347_v9, %v2045_v44  ;;  %vm2338_vm11 = vmor %vm2336_vm10, %vm2337_vm7 }
 0x1a7   : > { %v3321_v51 = vmul.f32 %v2329_v22, %v5640_v3  ;;  %11096 = vst [vmem:[#allocation98_spill] sm:$0xff] %v6457_v39  ;;  %v1084_v3 = vpop.f32.mrf.mxu0  ;;  %v6465_v22 = vmax.f32 %v6080_v40, 1e-24  ;;  %v2332_v49 = vmul.f32 %v6422_v59, %v2331_v10  ;;  %5036 = vrsqrt.f32 %v6457_v39 }
 0x1a8   : > { %11099 = vst [vmem:[#allocation99_spill] sm:$0xff] %v6471_v58  ;;  %v6480_v40 = vadd.f32 %v6141_v34, %v1084_v3  ;;  %v6492_v10 = vmax.f32 %v6107_v26, 1e-24 }
 0x1a9   : > { %v6435_v2 = vpop.xlane.xlu2 %1606  ;;  %v6437_v4 = vpop.xlane.xlu1 %1522  ;;  %v3473_v63 = vmul.f32 %v6122_v12, %v3321_v51  ;;  %v3293_v51 = vmul.f32 %v2049_v20, %v5624_v52  ;;  %5038 = vrsqrt.f32 %v6465_v22  ;;  %v3421_v52 = vrot.slane %v6091_v38, 3  ;;  %11114 = vst [vmem:[#allocation114_spill] sm:$0xff] %v6571_v29 }
 0x1aa   : > { %11094 = vst [vmem:[#allocation96_spill] sm:$0xff] %v6435_v2  ;;  %v6442_v17 = vpop.xlane.xlu0 %1708  ;;  %v1439_v2 = vmul.f32 %v6426_v8, %v6426_v8  ;;  %v2052_v8 = vmul.f32 %v6416_v33, %v2051_v15  ;;  %5040 = vrsqrt.f32 %v6492_v10  ;;  %vm2066_vm0 = vweird.f32 %v6465_v22 }
 0x1ab   : > { %11095 = vst [vmem:[#allocation97_spill] sm:$0xff] %v6442_v17  ;;  %v3663_v17 = vsel %vm1353_vm1, %v3473_v63, 0.0  ;;  %v3445_v15 = vmul.f32 %v6229_v37, %v3293_v51  ;;  %v2333_v63 = vmul.f32 0.5, %v2332_v49  ;;  %v3420_v51 = vrot.slane %v6091_v38, 2 }
 0x1ac   : > { %1546 = vadd.xlane.f32.xlu0 %v1545_v18  ;;  %v1731_v14 = vsel %vm1353_vm1, %v1439_v2, 0.0  ;;  %v6477_v18 = vadd.f32 %v6141_v34, %v1154_v27  ;;  %11101 = vst [vmem:[#allocation101_spill] sm:$0xff] %v6480_v40  ;;  %3664 = vadd.xlane.f32.xlu1 %v3663_v17  ;;  %v6483_v2 = vmul.f32 0.5, %v2612_v6  ;;  %v1322_v27 = vpop.f32.mrf.mxu3  ;;  %v6497_v44 = vpop.eup %5034  ;;  %v6501_v6 = vmax.f32 %v5885_v50, 1e-24 }
 0x1ad   : > { %1732 = vadd.xlane.f32.xlu2 %v1731_v14  ;;  %11103 = vst [vmem:[#allocation103_spill] sm:$0xff] %v6497_v44  ;;  %v2053_v35 = vmul.f32 0.5, %v2052_v8  ;;  %v6504_v3 = vadd.f32 %v6141_v34, %v1322_v27  ;;  %v3579_v26 = vsel %vm1353_vm1, %v3445_v15, 0.0  ;;  %v1378_v14 = vmul.f32 %v6480_v40, %v6480_v40  ;;  %v6520_v58 = vpop.eup %5036 }
 0x1ae   : > { %11100 = vst [vmem:[#allocation100_spill] sm:$0xff] %v6477_v18  ;;  %v1406_v20 = vmul.f32 %v6477_v18, %v6477_v18  ;;  %v3422_v50 = vrot.slane %v6091_v38, 4  ;;  %v2621_v15 = vmul.f32 %v6497_v44, %v6431_v25  ;;  %5042 = vrsqrt.f32 %v6501_v6  ;;  %v1239_v25 = vpop.f32.mrf.mxu2 }
 0x1af   : > { %11102 = vst [vmem:[#allocation102_spill] sm:$0xff] %v6483_v2  ;;  %v2054_v18 = vsub.f32 1.5, %v2053_v35  ;;  %v1548_v40 = vsel %vm1353_vm1, %v1378_v14, 0.0  ;;  %v1473_v8 = vmul.f32 %v6504_v3, %v6504_v3  ;;  %v6531_v49 = vmax.f32 %v5913_v5, 1e-24 }
 0x1b0   : > { %11104 = vst [vmem:[#allocation104_spill] sm:$0xff] %v6501_v6  ;;  %v1632_v12 = vsel %vm1353_vm1, %v1406_v20, 0.0  ;;  %v2334_v2 = vsub.f32 1.5, %v2333_v63  ;;  %v6533_v35 = vperm.slane %v3420_v51, 0  ;;  %v6535_v14 = vperm.slane %v3421_v52, 0 }
 0x1b1   : > { %v6486_v9 = vpop.xlane.xlu2 %1525  ;;  %v6488_v24 = vpop.xlane.xlu1 %1810  ;;  %11105 = vst [vmem:[#allocation105_spill] sm:$0xff] %v6504_v3  ;;  %v6538_v20 = vmax.f32 %v5917_v13, 1e-24  ;;  %v2961_v5 = vmul.f32 %v6520_v58, %v6457_v39  ;;  %v6548_v63 = vmax.f32 %v5938_v61, 1e-24  ;;  %v2622_v13 = vmul.f32 %v6497_v44, %v2621_v15 }
 0x1b2   : > { %v6495_v17 = vpop.xlane.xlu0 %1609  ;;  %11106 = vst [vmem:[#allocation106_spill] sm:$0xff] %v6520_v58  ;;  %v2055_v51 = vmul.f32 %v6416_v33, %v2054_v18  ;;  %5044 = vrsqrt.f32 %v6531_v49  ;;  %v6564_v61 = vadd.f32 %v6141_v34, %v1239_v25  ;;  %v6567_v15 = vperm.slane %v3422_v50, 0 }
 0x1b3   : > { %11107 = vst [vmem:[#allocation107_spill] sm:$0xff] %v6531_v49  ;;  %5046 = vrsqrt.f32 %v6538_v20  ;;  %v2962_v21 = vmul.f32 %v6520_v58, %v2961_v5  ;;  %v6583_v50 = vmax.f32 %v5979_v43, 1e-24  ;;  %v6592_v5 = vmax.f32 %v6014_v42, 1e-24  ;;  %v1087_v58 = vpop.f32.mrf.mxu0 }
 0x1b4   : > { %3580 = vadd.xlane.f32.xlu0 %v3579_v26  ;;  %v6526_v26 = vpop.eup %5038  ;;  %1549 = vadd.xlane.f32.xlu1 %v1548_v40  ;;  %11108 = vst [vmem:[#allocation108_spill] sm:$0xff] %v6535_v14  ;;  %v2059_v18 = vsel %vm2058_vm9, %v6416_v33, %v2055_v51  ;;  %5048 = vrsqrt.f32 %v6548_v63  ;;  %v6589_v51 = vmul.f32 0.5, %v2622_v13  ;;  %v1440_v43 = vmul.f32 %v6564_v61, %v6564_v61 }
 0x1b5   : > { %1633 = vadd.xlane.f32.xlu2 %v1632_v12  ;;  %11109 = vst [vmem:[#allocation109_spill] sm:$0xff] %v6538_v20  ;;  %v1833_v12 = vsel %vm1353_vm1, %v1473_v8, 0.0  ;;  %v2061_v52 = vmul.f32 %v6526_v26, %v6465_v22  ;;  %v6559_v14 = vpop.eup %5040  ;;  %v2335_v8 = vmul.f32 %v6422_v59, %v2334_v2  ;;  %v3294_v25 = vmul.f32 %v2059_v18, %v5658_v16 }
 0x1b6   : > { %11111 = vst [vmem:[#allocation111_spill] sm:$0xff] %v6548_v63  ;;  %v6576_v39 = vpop.eup %5042  ;;  %5050 = vrsqrt.f32 %v6571_v29  ;;  %v6611_v18 = vmax.f32 %v6150_v45, 1e-24  ;;  %vm2067_vm12 = vweird.f32 %v6526_v26  ;;  %vm2347_vm13 = vweird.f32 %v6559_v14 }
 0x1b7   : > { %11112 = vst [vmem:[#allocation112_spill] sm:$0xff] %v6564_v61  ;;  %v2339_v2 = vsel %vm2338_vm11, %v6422_v59, %v2335_v8  ;;  %v2062_v41 = vmul.f32 %v6526_v26, %v2061_v52  ;;  %v3446_v16 = vmul.f32 %v6229_v37, %v3294_v25  ;;  %v2971_v59 = vmul.f32 %v6576_v39, %v6501_v6  ;;  %vm2068_vm14 = vmor %vm2066_vm0, %vm2067_vm12 }
 0x1b8   : > { %11113 = vst [vmem:[#allocation113_spill] sm:$0xff] %v6567_v15  ;;  %v1324_v15 = vpop.f32.mrf.mxu3  ;;  %v3322_v33 = vmul.f32 %v2339_v2, %v5661_v19  ;;  %v6601_v52 = vmax.f32 %v6148_v31, 1e-24  ;;  %v6608_v8 = vpop.eup %5044  ;;  %v6617_v2 = vadd.f32 %v6141_v34, %v1087_v58  ;;  %5052 = vrsqrt.f32 %v6583_v50 }
 0x1b9   : > { %v6541_v3 = vpop.xlane.xlu2 %1813  ;;  %v6543_v27 = vpop.xlane.xlu1 %1711  ;;  %11115 = vst [vmem:[#allocation115_spill] sm:$0xff] %v6576_v39  ;;  %v6614_v25 = vadd.f32 %v6141_v34, %v1324_v15  ;;  %v3582_v31 = vsel %vm1353_vm1, %v3446_v16, 0.0  ;;  %v2063_v6 = vmul.f32 0.5, %v2062_v41  ;;  %v11127_v15 = vrot.slane %v6091_v38, 5 }
 0x1ba   : > { %11110 = vst [vmem:[#allocation110_spill] sm:$0xff] %v6543_v27  ;;  %v6552_v40 = vpop.xlane.xlu0 %1528  ;;  %v3474_v19 = vmul.f32 %v6533_v35, %v3322_v33  ;;  %v6622_v33 = vpop.eup %5046  ;;  %5054 = vrsqrt.f32 %v6592_v5  ;;  %v11130_v41 = vrot.slane %v6091_v38, 6  ;;  %vm2346_vm15 = vweird.f32 %v6492_v10 }
 0x1bb   : > { %11116 = vst [vmem:[#allocation116_spill] sm:$0xff] %v6583_v50  ;;  %v6631_v58 = vperm.slane %v11127_v15, 0  ;;  %v1157_v16 = vpop.f32.mrf.mxu1  ;;  %5056 = vrsqrt.f32 %v6601_v52  ;;  %vm6726_vm2 = vmor %vm2346_vm15, %vm2347_vm13  ;;  %vm2356_vm4 = vweird.f32 %v6601_v52  ;;  %vm2076_vm6 = vweird.f32 %v6611_v18 }
 0x1bc   : > { %1834 = vadd.xlane.f32.xlu0 %v1833_v12  ;;  %v2341_v12 = vmul.f32 %v6559_v14, %v6492_v10  ;;  %11117 = vst [vmem:[#allocation117_spill] sm:$0xff] %v6589_v51  ;;  %3583 = vadd.xlane.f32.xlu1 %v3582_v31  ;;  %v3666_v45 = vsel %vm1353_vm1, %v3474_v19, 0.0  ;;  %v2972_v19 = vmul.f32 %v6576_v39, %v2971_v59  ;;  %5058 = vrsqrt.f32 %v6611_v18 }
 0x1bd   : > { %11118 = vst [vmem:[#allocation118_spill] sm:$0xff] %v6592_v5  ;;  %3667 = vadd.xlane.f32.xlu2 %v3666_v45  ;;  %v6644_v31 = vadd.f32 %v6141_v34, %v1157_v16  ;;  %v1379_v45 = vmul.f32 %v6617_v2, %v6617_v2  ;;  %v11134_v59 = vrot.slane %v6091_v38, 7  ;;  %v2631_v39 = vmul.f32 %v6622_v33, %v6538_v20 }
 0x1be   : > { %11121 = vst [vmem:[#allocation121_spill] sm:$0xff] %v6608_v8  ;;  %v2342_v44 = vmul.f32 %v6559_v14, %v2341_v12  ;;  %v6639_v12 = vperm.slane %v11130_v41, 0  ;;  %v6670_v38 = vmul.f32 0.5, %v2972_v19 }
 0x1bf   : > { %11122 = vst [vmem:[#allocation122_spill] sm:$0xff] %v6614_v25  ;;  %v6657_v41 = vperm.slane %v11134_v59, 0  ;;  %v6673_v59 = vmax.f32 %v6036_v30, 1e-24 }
 0x1c0   : > { %11123 = vst [vmem:[#allocation123_spill] sm:$0xff] %v6617_v2 }
 0x1c1   : > { %v6604_v13 = vpop.xlane.xlu2 %1714  ;;  %v6606_v42 = vpop.xlane.xlu1 %1612  ;;  %11125 = vst [vmem:[#allocation125_spill] sm:$0xff] %v6622_v33  ;;  %5060 = vrsqrt.f32 %v6673_v59 }
 0x1c2   : > { %11119 = vst [vmem:[#allocation119_spill] sm:$0xff] %v6604_v13  ;;  %v6620_v61 = vpop.xlane.xlu0 %1816  ;;  %v6633_v13 = vmul.f32 0.5, %v2962_v21  ;;  %v2981_v21 = vmul.f32 %v6608_v8, %v6531_v49 }
 0x1c3   : > { %11120 = vst [vmem:[#allocation120_spill] sm:$0xff] %v6606_v42  ;;  %v6627_v42 = vpop.eup %5048 }
 0x1c4   : > { %11124 = vst [vmem:[#allocation124_spill] sm:$0xff] %v6620_v61  ;;  %v1734_v61 = vsel %vm1353_vm1, %v1440_v43, 0.0  ;;  %v1474_v43 = vmul.f32 %v6614_v25, %v6614_v25  ;;  %v6653_v15 = vpop.eup %5050  ;;  %v2651_v25 = vmul.f32 %v6627_v42, %v6548_v63 }
 0x1c5   : > { %11126 = vst [vmem:[#allocation126_spill] sm:$0xff] %v6627_v42  ;;  %1735 = vadd.xlane.f32.xlu0 %v1734_v61  ;;  %v2064_v61 = vsub.f32 1.5, %v2063_v6  ;;  %v6668_v27 = vpop.eup %5052  ;;  %v1407_v6 = vmul.f32 %v6644_v31, %v6644_v31  ;;  %v2641_v19 = vmul.f32 %v6653_v15, %v6571_v29 }
 0x1c6   : > { %11128 = vst [vmem:[#allocation127_spill] sm:$0xff] %v6631_v58  ;;  %v1242_v58 = vpop.f32.mrf.mxu2  ;;  %v1836_v30 = vsel %vm1353_vm1, %v1474_v43, 0.0 }
 0x1c7   : > { %11129 = vst [vmem:[#allocation128_spill] sm:$0xff] %v6633_v13  ;;  %v6666_v2 = vadd.f32 %v6141_v34, %v1242_v58  ;;  %v6682_v13 = vpop.eup %5054  ;;  %v2982_v58 = vmul.f32 %v6608_v8, %v2981_v21  ;;  %1837 = vadd.xlane.f32.xlu1 %v1836_v30  ;;  %v1635_v63 = vsel %vm1353_vm1, %v1407_v6, 0.0  ;;  %v2065_v20 = vmul.f32 %v6526_v26, %v2064_v61  ;;  %v1159_v30 = vpop.f32.mrf.mxu1 }
 0x1c8   : > { %11131 = vst [vmem:[#allocation129_spill] sm:$0xff] %v6639_v12  ;;  %v2343_v12 = vmul.f32 0.5, %v2342_v44  ;;  %v1551_v44 = vsel %vm1353_vm1, %v1379_v45, 0.0  ;;  %v6691_v45 = vpop.eup %5056  ;;  %v2632_v21 = vmul.f32 %v6622_v33, %v2631_v39  ;;  %v2652_v8 = vmul.f32 %v6627_v42, %v2651_v25 }
 0x1c9   : > { %11132 = vst [vmem:[#allocation130_spill] sm:$0xff] %v6644_v31  ;;  %v6678_v49 = vpop.xlane.xlu2 %1615  ;;  %v6680_v16 = vpop.xlane.xlu1 %1531  ;;  %1552 = vadd.xlane.f32.xlu2 %v1551_v44  ;;  %v1441_v43 = vmul.f32 %v6666_v2, %v6666_v2  ;;  %v2642_v39 = vmul.f32 %v6653_v15, %v2641_v19  ;;  %v6714_v25 = vmax.f32 %v6076_v0, 1e-24  ;;  %v2351_v61 = vmul.f32 %v6691_v45, %v6601_v52  ;;  %v11178_v52 = vld [vmem:[#allocation72_spill] sm:$0xff] }
 0x1ca   : > { %11133 = vst [vmem:[#allocation131_spill] sm:$0xff] %v6653_v15  ;;  %v2344_v31 = vsub.f32 1.5, %v2343_v12  ;;  %v6696_v51 = vpop.eup %5058  ;;  %v6704_v29 = vpop.xlane.xlu0 %1717  ;;  %v2661_v12 = vmul.f32 %v6682_v13, %v6592_v5  ;;  %v6731_v19 = vmax.f32 %v6179_v46, 1e-24  ;;  %v6746_v46 = vmul.f32 0.5, %v2632_v21 }
 0x1cb   : > { %11135 = vst [vmem:[#allocation132_spill] sm:$0xff] %v6657_v41  ;;  %v6688_v41 = vmax.f32 %v6074_v28, 1e-24  ;;  %v2991_v28 = vmul.f32 %v6668_v27, %v6583_v50  ;;  %v2071_v22 = vmul.f32 %v6696_v51, %v6611_v18  ;;  %v6735_v50 = vmul.f32 0.5, %v2982_v58  ;;  %v6753_v58 = vpop.eup %5060 }
 0x1cc   : > { %11136 = vst [vmem:[#allocation133_spill] sm:$0xff] %v6666_v2  ;;  %v2345_v44 = vmul.f32 %v6559_v14, %v2344_v31  ;;  %v1737_v2 = vsel %vm1353_vm1, %v1441_v43, 0.0  ;;  %v6750_v43 = vmax.f32 %v6105_v23, 1e-24  ;;  %v6765_v23 = vmul.f32 0.5, %v2652_v8 }
 0x1cd   : > { %11137 = vst [vmem:[#allocation134_spill] sm:$0xff] %v6668_v27  ;;  %1636 = vadd.xlane.f32.xlu0 %v1635_v63  ;;  %5062 = vrsqrt.f32 %v6688_v41  ;;  %v2069_v63 = vsel %vm2068_vm14, %v6526_v26, %v2065_v20  ;;  %v2992_v6 = vmul.f32 %v6668_v27, %v2991_v28  ;;  %v2662_v26 = vmul.f32 %v6682_v13, %v2661_v12 }
 0x1ce   : > { %11138 = vst [vmem:[#allocation135_spill] sm:$0xff] %v6670_v38  ;;  %v3295_v10 = vmul.f32 %v2069_v63, %v5689_v47  ;;  %v6739_v20 = vmax.f32 %v6185_v54, 1e-24  ;;  %v2349_v31 = vsel %vm6726_vm2, %v6559_v14, %v2345_v44  ;;  %5064 = vrsqrt.f32 %v6714_v25 }
 0x1cf   : > { %11139 = vst [vmem:[#allocation136_spill] sm:$0xff] %v6673_v59  ;;  %v2352_v47 = vmul.f32 %v6691_v45, %v2351_v61  ;;  %v2072_v54 = vmul.f32 %v6696_v51, %v2071_v22  ;;  %v6757_v12 = vadd.f32 %v6141_v34, %v1159_v30  ;;  %1738 = vadd.xlane.f32.xlu1 %v1737_v2  ;;  %v6767_v0 = vmul.f32 0.5, %v2642_v39  ;;  %v1089_v22 = vpop.f32.mrf.mxu0  ;;  %v1327_v2 = vpop.f32.mrf.mxu3 }
 0x1d0   : > { %11140 = vst [vmem:[#allocation137_spill] sm:$0xff] %v6682_v13  ;;  %v3447_v14 = vmul.f32 %v6229_v37, %v3295_v10  ;;  %v3323_v21 = vmul.f32 %v2349_v31, %v5700_v62  ;;  %v6769_v61 = vmul.f32 0.5, %v2992_v6  ;;  %5066 = vrsqrt.f32 %v6731_v19 }
 0x1d1   : > { %11141 = vst [vmem:[#allocation138_spill] sm:$0xff] %v6688_v41  ;;  %v6744_v28 = vpop.xlane.xlu1 %1819  ;;  %v6761_v63 = vpop.xlane.xlu2 %1534  ;;  %v6772_v30 = vmul.f32 0.5, %v2662_v26  ;;  %5068 = vrsqrt.f32 %v6739_v20  ;;  %v3001_v8 = vmul.f32 %v6753_v58, %v6673_v59  ;;  %v2353_v39 = vmul.f32 0.5, %v2352_v47 }
 0x1d2   : > { %11142 = vst [vmem:[#allocation139_spill] sm:$0xff] %v6714_v25  ;;  %v3585_v62 = vsel %vm1353_vm1, %v3447_v14, 0.0  ;;  %v3475_v10 = vmul.f32 %v6533_v35, %v3323_v21  ;;  %5070 = vrsqrt.f32 %v6750_v43  ;;  %v6781_v6 = vadd.f32 %v6141_v34, %v1327_v2  ;;  %v6783_v31 = vpop.xlane.xlu0 %1618  ;;  %v1244_v2 = vpop.f32.mrf.mxu2 }
 0x1d3   : > { %11145 = vst [vmem:[#allocation140_spill] sm:$0xff] %v6735_v50  ;;  %v6763_v44 = vpop.eup %5062  ;;  %3586 = vadd.xlane.f32.xlu2 %v3585_v62  ;;  %v2073_v26 = vmul.f32 0.5, %v2072_v54  ;;  %v6786_v27 = vadd.f32 %v6141_v34, %v1089_v22  ;;  %v1408_v21 = vmul.f32 %v6757_v12, %v6757_v12  ;;  %v6802_v15 = vmax.f32 %v6109_v11, 1e-24 }
 0x1d4   : > { %11146 = vst [vmem:[#allocation141_spill] sm:$0xff] %v6744_v28  ;;  %v3669_v14 = vsel %vm1353_vm1, %v3475_v10, 0.0  ;;  %v6791_v28 = vpop.eup %5064  ;;  %v3011_v62 = vmul.f32 %v6763_v44, %v6688_v41  ;;  %v6808_v47 = vmax.f32 %v6155_v56, 1e-24  ;;  %v3002_v10 = vmul.f32 %v6753_v58, %v3001_v8 }
 0x1d5   : > { %11147 = vst [vmem:[#allocation142_spill] sm:$0xff] %v6746_v46  ;;  %3670 = vadd.xlane.f32.xlu0 %v3669_v14  ;;  %v1638_v41 = vsel %vm1353_vm1, %v1408_v21, 0.0  ;;  %v1475_v14 = vmul.f32 %v6781_v6, %v6781_v6  ;;  %v2354_v22 = vsub.f32 1.5, %v2353_v39  ;;  %v2074_v11 = vsub.f32 1.5, %v2073_v26  ;;  %v11163_v21 = vld [vmem:[#allocation69_spill] sm:$0xff] }
 0x1d6   : > { %11148 = vst [vmem:[#allocation143_spill] sm:$0xff] %v6750_v43  ;;  %v3012_v50 = vmul.f32 %v6763_v44, %v3011_v62  ;;  %vm2357_vm3 = vweird.f32 %v6691_v45  ;;  %5072 = vrsqrt.f32 %v6802_v15  ;;  %vm2077_vm5 = vweird.f32 %v6696_v51  ;;  %v11169_v62 = vld [vmem:[#allocation74_spill] sm:$0xff] }
 0x1d7   : > { %11149 = vst [vmem:[#allocation144_spill] sm:$0xff] %v6753_v58  ;;  %1639 = vadd.xlane.f32.xlu1 %v1638_v41  ;;  %v1839_v38 = vsel %vm1353_vm1, %v1475_v14, 0.0  ;;  %v6832_v41 = vadd.f32 %v6141_v34, %v1244_v2  ;;  %5074 = vrsqrt.f32 %v6808_v47  ;;  %vm6842_vm7 = vmor %vm2356_vm4, %vm2357_vm3  ;;  %v6847_v34 = vmax.f32 %v11169_v62, 1e-24 }
 0x1d8   : > { %11150 = vst [vmem:[#allocation145_spill] sm:$0xff] %v6757_v12  ;;  %v6804_v12 = vpop.eup %5066  ;;  %v2355_v18 = vmul.f32 %v6691_v45, %v2354_v22  ;;  %v2075_v14 = vmul.f32 %v6696_v51, %v2074_v11  ;;  %vm2078_vm8 = vmor %vm2076_vm6, %vm2077_vm5  ;;  %vm2086_vm11 = vweird.f32 %v6731_v19  ;;  %vm2366_vm12 = vweird.f32 %v6739_v20 }
 0x1d9   : > { %11151 = vst [vmem:[#allocation146_spill] sm:$0xff] %v6763_v44  ;;  %v6813_v54 = vpop.eup %5068  ;;  %v6818_v59 = vpop.xlane.xlu1 %1720  ;;  %v2081_v39 = vmul.f32 %v6804_v12, %v6731_v19  ;;  %v2671_v44 = vmul.f32 %v6791_v28, %v6714_v25  ;;  %v1442_v11 = vmul.f32 %v6832_v41, %v6832_v41  ;;  %v6874_v25 = vmax.f32 %v6284_v60, 1e-24 }
 0x1da   : > { %11152 = vst [vmem:[#allocation147_spill] sm:$0xff] %v6765_v23  ;;  %v6820_v56 = vpop.eup %5070  ;;  %v6834_v8 = vpop.xlane.xlu2 %3649  ;;  %v2361_v26 = vmul.f32 %v6813_v54, %v6739_v20  ;;  %v2079_v58 = vsel %vm2078_vm8, %v6696_v51, %v2075_v14  ;;  %vm2087_vm9 = vweird.f32 %v6804_v12  ;;  %vm2367_vm10 = vweird.f32 %v6813_v54  ;;  %v11243_v23 = vld [vmem:[#allocation36_spill] sm:$0xff] }
 0x1db   : > { %11153 = vst [vmem:[#allocation148_spill] sm:$0xff] %v6767_v0  ;;  %1840 = vadd.xlane.f32.xlu2 %v1839_v38  ;;  %v2681_v38 = vmul.f32 %v6820_v56, %v6750_v43  ;;  %v6861_v62 = vpop.xlane.xlu0 %3652  ;;  %v1092_v51 = vpop.f32.mrf.mxu0  ;;  %v2672_v60 = vmul.f32 %v6791_v28, %v2671_v44  ;;  %v1740_v44 = vsel %vm1353_vm1, %v1442_v11, 0.0  ;;  %vm6977_vm0 = vmor %vm2086_vm11, %vm2087_vm9  ;;  %vm2096_vm14 = vweird.f32 %v6847_v34 }
 0x1dc   : > { %11154 = vst [vmem:[#allocation149_spill] sm:$0xff] %v6769_v61  ;;  %v1380_v61 = vmul.f32 %v6786_v27, %v6786_v27  ;;  %vm2368_vm13 = vmor %vm2366_vm12, %vm2367_vm10  ;;  %vm2106_vm3 = vweird.f32 %v6874_v25 }
 0x1dd   : > { %11155 = vst [vmem:[#allocation150_spill] sm:$0xff] %v6772_v30 }
 0x1de   : > { %11156 = vst [vmem:[#allocation151_spill] sm:$0xff] %v6781_v6  ;;  %v6825_v6 = vmax.f32 %v11163_v21, 1e-24  ;;  %v1554_v2 = vsel %vm1353_vm1, %v1380_v61, 0.0  ;;  %v6852_v21 = vmul.f32 0.5, %v3002_v10  ;;  %v11172_v61 = vld [vmem:[#allocation71_spill] sm:$0xff]  ;;  %v2359_v10 = vsel %vm6842_vm7, %v6691_v45, %v2355_v18 }
 0x1df   : > { %11157 = vst [vmem:[#allocation152_spill] sm:$0xff] %v6786_v27  ;;  %1555 = vadd.xlane.f32.xlu0 %v1554_v2  ;;  %v6864_v22 = vmax.f32 %v11172_v61, 1e-24  ;;  %v11174_v2 = vld [vmem:[#allocation22_spill] sm:$0xff]  ;;  %v6878_v61 = vpop.eup %5072  ;;  %v2362_v45 = vmul.f32 %v6813_v54, %v2361_v26  ;;  %v6884_v18 = vmax.f32 %v11178_v52, 1e-24 }
 0x1e0   : > { %11158 = vst [vmem:[#allocation153_spill] sm:$0xff] %v6791_v28  ;;  %5076 = vrsqrt.f32 %v6825_v6  ;;  %v3324_v43 = vmul.f32 %v2359_v10, %v11174_v2  ;;  %v6887_v14 = vpop.eup %5074  ;;  %v1329_v10 = vpop.f32.mrf.mxu3  ;;  %v2682_v2 = vmul.f32 %v6820_v56, %v2681_v38 }
 0x1e1   : > { %11159 = vst [vmem:[#allocation154_spill] sm:$0xff] %v6802_v15  ;;  %5078 = vrsqrt.f32 %v6847_v34  ;;  %v2363_v38 = vmul.f32 0.5, %v2362_v45 }
 0x1e2   : > { %11160 = vst [vmem:[#allocation155_spill] sm:$0xff] %v6808_v47  ;;  %5080 = vrsqrt.f32 %v6864_v22  ;;  %v6908_v28 = vpop.xlane.xlu2 %1822 }
 0x1e3   : > { %11161 = vst [vmem:[#allocation156_spill] sm:$0xff] %v6818_v59  ;;  %v6880_v59 = vmul.f32 0.5, %v3012_v50  ;;  %5082 = vrsqrt.f32 %v6874_v25  ;;  %1741 = vadd.xlane.f32.xlu2 %v1740_v44  ;;  %v6932_v44 = vmul.f32 0.5, %v2672_v60 }
 0x1e4   : > { %11162 = vst [vmem:[#allocation157_spill] sm:$0xff] %v6820_v56  ;;  %5084 = vrsqrt.f32 %v6884_v18 }
 0x1e5   : > { %11164 = vst [vmem:[#allocation69_spill] sm:$0xff] %v6825_v6 }
 0x1e6   : > { %11165 = vst [vmem:[#allocation158_spill] sm:$0xff] %v6832_v41  ;;  %v6906_v41 = vpop.xlane.xlu1 %1621  ;;  %v6910_v30 = vpop.eup %5076 }
 0x1e7   : > { %11166 = vst [vmem:[#allocation159_spill] sm:$0xff] %v6834_v8  ;;  %v2082_v8 = vmul.f32 %v6804_v12, %v2081_v39  ;;  %v1162_v39 = vpop.f32.mrf.mxu1  ;;  %v3031_v60 = vmul.f32 %v6910_v30, %v6825_v6 }
 0x1e8   : > { %11170 = vst [vmem:[#allocation74_spill] sm:$0xff] %v6852_v21 }
 0x1e9   : > { %11171 = vst [vmem:[#allocation160_spill] sm:$0xff] %v6861_v62  ;;  %v11175_v62 = vld [vmem:[#allocation21_spill] sm:$0xff] }
 0x1ea   : > { %11173 = vst [vmem:[#allocation71_spill] sm:$0xff] %v6864_v22  ;;  %v3296_v0 = vmul.f32 %v2079_v58, %v11175_v62  ;;  %v6893_v58 = vld [vmem:[%s10641_s3] ss:$0 sm:$0xff]  ;;  %v3476_v62 = vmul.f32 %v6533_v35, %v3324_v43 }
 0x1eb   : > { %11176 = vst [vmem:[#allocation22_spill] sm:$0xff] %v6878_v61  ;;  %v6896_v50 = vadd.f32 %v6893_v58, %v1092_v51  ;;  %v6899_v26 = vadd.f32 %v6893_v58, %v1162_v39  ;;  %v3021_v51 = vmul.f32 %v6878_v61, %v6802_v15  ;;  %v2083_v39 = vmul.f32 0.5, %v2082_v8  ;;  %v6943_v15 = vpop.xlane.xlu0 %1537 }
 0x1ec   : > { %11177 = vst [vmem:[#allocation21_spill] sm:$0xff] %v6880_v59  ;;  %v3448_v52 = vmul.f32 %v6229_v37, %v3296_v0  ;;  %v3672_v43 = vsel %vm1353_vm1, %v3476_v62, 0.0  ;;  %v6918_v0 = vadd.f32 %v6893_v58, %v1329_v10  ;;  %v6929_v62 = vpop.eup %5078  ;;  %v6958_v59 = vmax.f32 %v6317_v1, 1e-24 }
 0x1ed   : > { %11179 = vst [vmem:[#allocation72_spill] sm:$0xff] %v6884_v18  ;;  %3673 = vadd.xlane.f32.xlu1 %v3672_v43  ;;  %v1381_v8 = vmul.f32 %v6896_v50, %v6896_v50  ;;  %v1409_v45 = vmul.f32 %v6899_v26, %v6899_v26  ;;  %v6934_v43 = vmul.f32 0.5, %v2682_v2  ;;  %v2084_v56 = vsub.f32 1.5, %v2083_v39  ;;  %v6945_v21 = vpop.eup %5080 }
 0x1ee   : > { %11180 = vst [vmem:[#allocation161_spill] sm:$0xff] %v6887_v14  ;;  %v3588_v11 = vsel %vm1353_vm1, %v3448_v52, 0.0  ;;  %v6937_v52 = vmax.f32 %v6252_v57, 1e-24  ;;  %v2364_v2 = vsub.f32 1.5, %v2363_v38  ;;  %v1476_v57 = vmul.f32 %v6918_v0, %v6918_v0 }
 0x1ef   : > { %11181 = vst [vmem:[#allocation162_spill] sm:$0xff] %v6896_v50  ;;  %3589 = vadd.xlane.f32.xlu0 %v3588_v11  ;;  %v2691_v11 = vmul.f32 %v6887_v14, %v6808_v47  ;;  %v1641_v10 = vsel %vm1353_vm1, %v1409_v45, 0.0  ;;  %v2091_v39 = vmul.f32 %v6929_v62, %v6847_v34  ;;  %v1247_v47 = vpop.f32.mrf.mxu2  ;;  %v6966_v38 = vmax.f32 %v6260_v53, 1e-24 }
 0x1f0   : > { %11182 = vst [vmem:[#allocation163_spill] sm:$0xff] %v6899_v26  ;;  %v6969_v45 = vadd.f32 %v6893_v58, %v1247_v47  ;;  %1642 = vadd.xlane.f32.xlu2 %v1641_v10  ;;  %v2085_v1 = vmul.f32 %v6804_v12, %v2084_v56  ;;  %v3041_v53 = vmul.f32 %v6945_v21, %v6864_v22  ;;  %v1842_v19 = vsel %vm1353_vm1, %v1476_v57, 0.0  ;;  %v6987_v10 = vpop.xlane.xlu1 %3655  ;;  %v6989_v56 = vpop.xlane.xlu2 %1723  ;;  %v11199_v26 = vld [vmem:[#allocation26_spill] sm:$0xff] }
 0x1f1   : > { %11183 = vst [vmem:[#allocation164_spill] sm:$0xff] %v6908_v28  ;;  %v6923_v28 = vmax.f32 %v6250_v36, 1e-24  ;;  %v3022_v36 = vmul.f32 %v6878_v61, %v3021_v51  ;;  %v6952_v51 = vpop.eup %5082  ;;  %v1557_v61 = vsel %vm1353_vm1, %v1381_v8, 0.0  ;;  %v2365_v20 = vmul.f32 %v6813_v54, %v2364_v2 }
 0x1f2   : > { %11184 = vst [vmem:[#allocation165_spill] sm:$0xff] %v6910_v30  ;;  %v6961_v6 = vpop.eup %5084  ;;  %v2101_v47 = vmul.f32 %v6952_v51, %v6874_v25  ;;  %vm2097_vm15 = vweird.f32 %v6929_v62  ;;  %vm2107_vm4 = vweird.f32 %v6952_v51  ;;  %vm2116_vm6 = vweird.f32 %v6958_v59 }
 0x1f3   : > { %11185 = vst [vmem:[#allocation166_spill] sm:$0xff] %v6918_v0  ;;  %5086 = vrsqrt.f32 %v6923_v28  ;;  %v2692_v0 = vmul.f32 %v6887_v14, %v2691_v11  ;;  %v3032_v11 = vmul.f32 %v6910_v30, %v3031_v60  ;;  %v2701_v22 = vmul.f32 %v6961_v6, %v6884_v18  ;;  %v11198_v18 = vld [vmem:[#allocation25_spill] sm:$0xff]  ;;  %v1164_v30 = vpop.f32.mrf.mxu1  ;;  %vm2098_vm2 = vmor %vm2096_vm14, %vm2097_vm15 }
 0x1f4   : > { %11186 = vst [vmem:[#allocation167_spill] sm:$0xff] %v6923_v28  ;;  %5088 = vrsqrt.f32 %v6937_v52  ;;  %v2092_v14 = vmul.f32 %v6929_v62, %v2091_v39  ;;  %v2369_v2 = vsel %vm2368_vm13, %v6813_v54, %v2365_v20  ;;  %v1443_v60 = vmul.f32 %v6969_v45, %v6969_v45  ;;  %v1094_v20 = vpop.f32.mrf.mxu0  ;;  %vm2108_vm5 = vmor %vm2106_vm3, %vm2107_vm4 }
 0x1f5   : > { %11187 = vst [vmem:[#allocation168_spill] sm:$0xff] %v6932_v44  ;;  %1558 = vadd.xlane.f32.xlu1 %v1557_v61  ;;  %5090 = vrsqrt.f32 %v6958_v59  ;;  %v2089_v61 = vsel %vm6977_vm0, %v6804_v12, %v2085_v1  ;;  %v7013_v8 = vmul.f32 0.5, %v3022_v36  ;;  %v7015_v12 = vmul.f32 0.5, %v2692_v0 }
 0x1f6   : > { %11188 = vst [vmem:[#allocation169_spill] sm:$0xff] %v6934_v43  ;;  %5092 = vrsqrt.f32 %v6966_v38  ;;  %v3042_v54 = vmul.f32 %v6945_v21, %v3041_v53  ;;  %v2102_v1 = vmul.f32 %v6952_v51, %v2101_v47  ;;  %v7026_v36 = vmul.f32 0.5, %v3032_v11 }
 0x1f7   : > { %11189 = vst [vmem:[#allocation170_spill] sm:$0xff] %v6945_v21  ;;  %1843 = vadd.xlane.f32.xlu0 %v1842_v19  ;;  %v3297_v19 = vmul.f32 %v2089_v61, %v11198_v18  ;;  %v7024_v61 = vpop.xlane.xlu0 %3571  ;;  %v2702_v0 = vmul.f32 %v6961_v6, %v2701_v22  ;;  %v1743_v47 = vsel %vm1353_vm1, %v1443_v60, 0.0  ;;  %v11207_v22 = vld [vmem:[#allocation77_spill] sm:$0xff] }
 0x1f8   : > { %11190 = vst [vmem:[#allocation171_spill] sm:$0xff] %v6961_v6  ;;  %v7045_v21 = vmax.f32 %v11207_v22, 1e-24  ;;  %v2103_v60 = vmul.f32 0.5, %v2102_v1  ;;  %v7050_v6 = vpop.xlane.xlu1 %1540 }
 0x1f9   : > { %11191 = vst [vmem:[#allocation172_spill] sm:$0xff] %v6966_v38  ;;  %v7005_v57 = vpop.eup %5086  ;;  %v3449_v18 = vmul.f32 %v6229_v37, %v3297_v19  ;;  %v7059_v22 = vmul.f32 0.5, %v2702_v0 }
 0x1fa   : > { %11192 = vst [vmem:[#allocation173_spill] sm:$0xff] %v6969_v45  ;;  %v7011_v50 = vpop.eup %5088  ;;  %v2093_v45 = vmul.f32 0.5, %v2092_v14  ;;  %v2711_v53 = vmul.f32 %v7005_v57, %v6923_v28  ;;  %v7048_v28 = vadd.f32 %v6893_v58, %v1164_v30  ;;  %5094 = vrsqrt.f32 %v7045_v21 }
 0x1fb   : > { %11195 = vst [vmem:[#allocation174_spill] sm:$0xff] %v6987_v10  ;;  %v1332_v10 = vpop.f32.mrf.mxu3  ;;  %v7032_v14 = vpop.eup %5090  ;;  %vm2377_vm4 = vweird.f32 %v7011_v50 }
 0x1fc   : > { %11196 = vst [vmem:[#allocation175_spill] sm:$0xff] %v6989_v56  ;;  %v3325_v56 = vmul.f32 %v2369_v2, %v11199_v26  ;;  %v7020_v39 = vadd.f32 %v6893_v58, %v1332_v10  ;;  %v2371_v10 = vmul.f32 %v7011_v50, %v6937_v52  ;;  %v7037_v2 = vadd.f32 %v6893_v58, %v1094_v20  ;;  %v7041_v19 = vpop.eup %5092 }
 0x1fd   : > { %11197 = vst [vmem:[#allocation176_spill] sm:$0xff] %v7005_v57  ;;  %v7052_v20 = vmul.f32 0.5, %v3042_v54  ;;  %v2712_v30 = vmul.f32 %v7005_v57, %v2711_v53  ;;  %v2111_v1 = vmul.f32 %v7032_v14, %v6958_v59  ;;  %v7071_v54 = vmax.f32 %v6361_v55, 1e-24 }
 0x1fe   : > { %11200 = vst [vmem:[#allocation25_spill] sm:$0xff] %v7013_v8  ;;  %v3477_v26 = vmul.f32 %v6533_v35, %v3325_v56  ;;  %v3591_v56 = vsel %vm1353_vm1, %v3449_v18, 0.0  ;;  %v2094_v18 = vsub.f32 1.5, %v2093_v45  ;;  %v1477_v44 = vmul.f32 %v7020_v39, %v7020_v39 }
 0x1ff   : > { %11201 = vst [vmem:[#allocation26_spill] sm:$0xff] %v7015_v12  ;;  %3592 = vadd.xlane.f32.xlu1 %v3591_v56  ;;  %1744 = vadd.xlane.f32.xlu0 %v1743_v47  ;;  %v7065_v56 = vpop.xlane.xlu2 %1624  ;;  %v2372_v45 = vmul.f32 %v7011_v50, %v2371_v10  ;;  %v1249_v47 = vpop.f32.mrf.mxu2  ;;  %v1382_v0 = vmul.f32 %v7037_v2, %v7037_v2  ;;  %v2104_v53 = vsub.f32 1.5, %v2103_v60  ;;  %v11212_v10 = vld [vmem:[#allocation81_spill] sm:$0xff]  ;;  %v11215_v60 = vld [vmem:[#allocation82_spill] sm:$0xff]  ;;  %vm2117_vm7 = vweird.f32 %v7032_v14 }
 0x200   : > { %11202 = vst [vmem:[#allocation177_spill] sm:$0xff] %v7020_v39  ;;  %v3675_v11 = vsel %vm1353_vm1, %v3477_v26, 0.0  ;;  %v7055_v26 = vmax.f32 %v6292_v48, 1e-24  ;;  %v3051_v48 = vmul.f32 %v7041_v19, %v6966_v38  ;;  %v1410_v39 = vmul.f32 %v7048_v28, %v7048_v28  ;;  %v7086_v43 = vpop.xlane.xlu0 %1825  ;;  %v7109_v27 = vpop.xlane.xlu1 %3574  ;;  %vm7198_vm8 = vmor %vm2116_vm6, %vm2117_vm7  ;;  %v11236_v12 = vld [vmem:[#allocation89_spill] sm:$0xff] }
 0x201   : > { %11203 = vst [vmem:[#allocation178_spill] sm:$0xff] %v7024_v61  ;;  %3676 = vadd.xlane.f32.xlu2 %v3675_v11  ;;  %v7077_v11 = vmax.f32 %v6437_v4, 1e-24  ;;  %v7083_v38 = vmax.f32 %v11212_v10, 1e-24  ;;  %v1845_v57 = vsel %vm1353_vm1, %v1477_v44, 0.0  ;;  %v2112_v4 = vmul.f32 %v7032_v14, %v2111_v1 }
 0x202   : > { %11204 = vst [vmem:[#allocation179_spill] sm:$0xff] %v7026_v36  ;;  %5096 = vrsqrt.f32 %v7055_v26  ;;  %v7097_v10 = vmax.f32 %v11215_v60, 1e-24  ;;  %v7101_v44 = vadd.f32 %v6893_v58, %v1249_v47  ;;  %v1644_v34 = vsel %vm1353_vm1, %v1410_v39, 0.0 }
 0x203   : > { %11205 = vst [vmem:[#allocation180_spill] sm:$0xff] %v7037_v2  ;;  %v1334_v55 = vpop.f32.mrf.mxu3  ;;  %v2095_v2 = vmul.f32 %v6929_v62, %v2094_v18  ;;  %5098 = vrsqrt.f32 %v7071_v54  ;;  %v1560_v18 = vsel %vm1353_vm1, %v1382_v0, 0.0  ;;  %v2105_v60 = vmul.f32 %v6952_v51, %v2104_v53  ;;  %v1167_v53 = vpop.f32.mrf.mxu1  ;;  %v11221_v0 = vld [vmem:[#allocation33_spill] sm:$0xff] }
 0x204   : > { %11206 = vst [vmem:[#allocation181_spill] sm:$0xff] %v7041_v19  ;;  %5100 = vrsqrt.f32 %v7077_v11  ;;  %v1444_v25 = vmul.f32 %v7101_v44, %v7101_v44  ;;  %vm2126_vm9 = vweird.f32 %v7071_v54  ;;  %vm2136_vm12 = vweird.f32 %v7077_v11 }
 0x205   : > { %11208 = vst [vmem:[#allocation77_spill] sm:$0xff] %v7048_v28  ;;  %v2099_v28 = vsel %vm2098_vm2, %v6929_v62, %v2095_v2  ;;  %5102 = vrsqrt.f32 %v7083_v38  ;;  %v7119_v62 = vpop.eup %5094  ;;  %v2109_v39 = vsel %vm2108_vm5, %v6952_v51, %v2105_v60  ;;  %v7137_v51 = vmax.f32 %v6353_v32, 1e-24 }
 0x206   : > { %11209 = vst [vmem:[#allocation182_spill] sm:$0xff] %v7052_v20  ;;  %5104 = vrsqrt.f32 %v7097_v10  ;;  %v3299_v5 = vmul.f32 %v2109_v39, %v11221_v0  ;;  %v2381_v20 = vmul.f32 %v7119_v62, %v7045_v21  ;;  %v7149_v0 = vadd.f32 %v6893_v58, %v1167_v53 }
 0x207   : > { %11210 = vst [vmem:[#allocation183_spill] sm:$0xff] %v7055_v26  ;;  %1846 = vadd.xlane.f32.xlu1 %v1845_v57  ;;  %1645 = vadd.xlane.f32.xlu0 %v1644_v34  ;;  %v2113_v57 = vmul.f32 0.5, %v2112_v4  ;;  %v1252_v34 = vpop.f32.mrf.mxu2  ;;  %v3052_v4 = vmul.f32 %v7041_v19, %v3051_v48  ;;  %v7139_v60 = vpop.xlane.xlu2 %3658  ;;  %v7166_v53 = vadd.f32 %v6893_v58, %v1334_v55  ;;  %5106 = vrsqrt.f32 %v7137_v51 }
 0x208   : > { %11211 = vst [vmem:[#allocation184_spill] sm:$0xff] %v7059_v22  ;;  %v7125_v2 = vpop.eup %5096  ;;  %v3451_v39 = vmul.f32 %v6229_v37, %v3299_v5  ;;  %v7152_v48 = vpop.xlane.xlu0 %1726  ;;  %v1746_v5 = vsel %vm1353_vm1, %v1444_v25, 0.0  ;;  %v2382_v55 = vmul.f32 %v7119_v62, %v2381_v20  ;;  %v11234_v20 = vld [vmem:[#allocation88_spill] sm:$0xff]  ;;  %vm2387_vm3 = vweird.f32 %v7119_v62 }
 0x209   : > { %11213 = vst [vmem:[#allocation81_spill] sm:$0xff] %v7083_v38  ;;  %1561 = vadd.xlane.f32.xlu2 %v1560_v18  ;;  %v7141_v47 = vpop.eup %5098  ;;  %v2721_v19 = vmul.f32 %v7125_v2, %v7055_v26  ;;  %v7192_v22 = vmul.f32 0.5, %v3052_v4  ;;  %vm2386_vm5 = vweird.f32 %v7045_v21  ;;  %vm2376_vm7 = vweird.f32 %v6937_v52 }
 0x20a   : > { %11214 = vst [vmem:[#allocation185_spill] sm:$0xff] %v7086_v43  ;;  %v11217_v43 = vld [vmem:[#allocation27_spill] sm:$0xff]  ;;  %v7154_v32 = vpop.eup %5100  ;;  %vm2127_vm10 = vweird.f32 %v7141_v47 }
 0x20b   : > { %11216 = vst [vmem:[#allocation82_spill] sm:$0xff] %v7101_v44  ;;  %v3298_v1 = vmul.f32 %v2099_v28, %v11217_v43  ;;  %v7122_v43 = vmul.f32 0.5, %v2712_v30  ;;  %v7133_v30 = vmul.f32 0.5, %v2372_v45  ;;  %v1337_v45 = vpop.f32.mrf.mxu3  ;;  %v2114_v44 = vsub.f32 1.5, %v2113_v57  ;;  %v7175_v28 = vpop.xlane.xlu1 %1828  ;;  %vm7332_vm0 = vmor %vm2126_vm9, %vm2127_vm10 }
 0x20c   : > { %11218 = vst [vmem:[#allocation27_spill] sm:$0xff] %v7109_v27  ;;  %v7160_v36 = vadd.f32 %v6893_v58, %v1337_v45  ;;  %v2121_v57 = vmul.f32 %v7141_v47, %v7071_v54  ;;  %v3597_v45 = vsel %vm1353_vm1, %v3451_v39, 0.0  ;;  %v2131_v25 = vmul.f32 %v7154_v32, %v7077_v11  ;;  %vm7614_vm9 = vmor %vm2386_vm5, %vm2387_vm3 }
 0x20d   : > { %11219 = vst [vmem:[#allocation186_spill] sm:$0xff] %v7122_v43  ;;  %v3450_v18 = vmul.f32 %v6229_v37, %v3298_v1  ;;  %v7146_v1 = vmax.f32 %v6355_v7, 1e-24  ;;  %v7162_v7 = vpop.eup %5102  ;;  %vm2137_vm11 = vweird.f32 %v7154_v32  ;;  %v7338_v11 = vmax.f32 %v6552_v40, 1e-24 }
 0x20e   : > { %11220 = vst [vmem:[#allocation187_spill] sm:$0xff] %v7125_v2  ;;  %v7177_v43 = vpop.eup %5104  ;;  %v1479_v39 = vmul.f32 %v7160_v36, %v7160_v36  ;;  %v2122_v4 = vmul.f32 %v7141_v47, %v2121_v57  ;;  %vm7349_vm13 = vmor %vm2136_vm12, %vm2137_vm11 }
 0x20f   : > { %11222 = vst [vmem:[#allocation33_spill] sm:$0xff] %v7137_v51  ;;  %v3594_v8 = vsel %vm1353_vm1, %v3450_v18, 0.0  ;;  %1747 = vadd.xlane.f32.xlu1 %v1746_v5  ;;  %5108 = vrsqrt.f32 %v7146_v1  ;;  %3598 = vadd.xlane.f32.xlu0 %v3597_v45  ;;  %v1411_v18 = vmul.f32 %v7149_v0, %v7149_v0  ;;  %v2722_v5 = vmul.f32 %v7125_v2, %v2721_v19  ;;  %v7213_v26 = vpop.xlane.xlu2 %1543  ;;  %vm7647_vm12 = vmor %vm2376_vm7, %vm2377_vm4 }
 0x210   : > { %11223 = vst [vmem:[#allocation188_spill] sm:$0xff] %v7139_v60  ;;  %v2115_v60 = vmul.f32 %v7032_v14, %v2114_v44  ;;  %v7203_v19 = vmax.f32 %v6486_v9, 1e-24  ;;  %v2391_v44 = vmul.f32 %v7177_v43, %v7097_v10  ;;  %v7219_v9 = vmax.f32 %v11236_v12, 1e-24 }
 0x211   : > { %11224 = vst [vmem:[#allocation189_spill] sm:$0xff] %v7146_v1  ;;  %3595 = vadd.xlane.f32.xlu2 %v3594_v8  ;;  %v3061_v8 = vmul.f32 %v7162_v7, %v7083_v38  ;;  %v7211_v38 = vmax.f32 %v11234_v20, 1e-24  ;;  %v2132_v2 = vmul.f32 %v7154_v32, %v2131_v25  ;;  %v1647_v57 = vsel %vm1353_vm1, %v1411_v18, 0.0  ;;  %v7226_v20 = vpop.eup %5106  ;;  %v11241_v25 = vld [vmem:[#allocation91_spill] sm:$0xff]  ;;  %v7241_v18 = vpop.xlane.xlu0 %1627 }
 0x212   : > { %11225 = vst [vmem:[#allocation190_spill] sm:$0xff] %v7149_v0  ;;  %v2119_v59 = vsel %vm7198_vm8, %v7032_v14, %v2115_v60  ;;  %v1254_v0 = vpop.f32.mrf.mxu2  ;;  %v7230_v13 = vmul.f32 0.5, %v2722_v5  ;;  %v1851_v12 = vsel %vm1353_vm1, %v1479_v39, 0.0  ;;  %v7237_v45 = vmax.f32 %v11241_v25, 1e-24  ;;  %v11246_v25 = vld [vmem:[#allocation96_spill] sm:$0xff] }
 0x213   : > { %11226 = vst [vmem:[#allocation191_spill] sm:$0xff] %v7152_v48  ;;  %v7228_v48 = vmul.f32 0.5, %v2382_v55  ;;  %v3062_v14 = vmul.f32 %v7162_v7, %v3061_v8  ;;  %5110 = vrsqrt.f32 %v7203_v19  ;;  %v3300_v55 = vmul.f32 %v2119_v59, %v11243_v23  ;;  %v7249_v39 = vpop.xlane.xlu1 %1729 }
 0x214   : > { %11227 = vst [vmem:[#allocation192_spill] sm:$0xff] %v7160_v36  ;;  %v1478_v36 = vmul.f32 %v7166_v53, %v7166_v53  ;;  %v2392_v5 = vmul.f32 %v7177_v43, %v2391_v44  ;;  %v2123_v42 = vmul.f32 0.5, %v2122_v4  ;;  %5112 = vrsqrt.f32 %v7211_v38 }
 0x215   : > { %11228 = vst [vmem:[#allocation193_spill] sm:$0xff] %v7162_v7  ;;  %v7234_v60 = vpop.eup %5108  ;;  %v7247_v8 = vadd.f32 %v6893_v58, %v1254_v0  ;;  %5114 = vrsqrt.f32 %v7219_v9  ;;  %v2133_v7 = vmul.f32 0.5, %v2132_v2  ;;  %v3071_v0 = vmul.f32 %v7226_v20, %v7137_v51  ;;  %v1339_v2 = vpop.f32.mrf.mxu3 }
 0x216   : > { %11229 = vst [vmem:[#allocation194_spill] sm:$0xff] %v7166_v53  ;;  %v7223_v53 = vadd.f32 %v6893_v58, %v1252_v34  ;;  %v1848_v34 = vsel %vm1353_vm1, %v1478_v36, 0.0  ;;  %v7253_v36 = vmax.f32 %v11246_v25, 1e-24  ;;  %v2731_v59 = vmul.f32 %v7234_v60, %v7146_v1 }
 0x217   : > { %11230 = vst [vmem:[#allocation195_spill] sm:$0xff] %v7175_v28  ;;  %v1169_v28 = vpop.f32.mrf.mxu1  ;;  %1648 = vadd.xlane.f32.xlu1 %v1647_v57  ;;  %1852 = vadd.xlane.f32.xlu0 %v1851_v12  ;;  %5116 = vrsqrt.f32 %v7237_v45  ;;  %v3452_v12 = vmul.f32 %v6229_v37, %v3300_v55  ;;  %v7268_v25 = vmul.f32 0.5, %v2392_v5  ;;  %v2124_v44 = vsub.f32 1.5, %v2123_v42  ;;  %v7273_v51 = vpop.xlane.xlu2 %3577  ;;  %v11249_v57 = vld [vmem:[#allocation97_spill] sm:$0xff] }
 0x218   : > { %11231 = vst [vmem:[#allocation196_spill] sm:$0xff] %v7192_v22  ;;  %v1445_v23 = vmul.f32 %v7223_v53, %v7223_v53  ;;  %v1446_v4 = vmul.f32 %v7247_v8, %v7247_v8  ;;  %5118 = vrsqrt.f32 %v7253_v36  ;;  %v3072_v42 = vmul.f32 %v7226_v20, %v3071_v0 }
 0x219   : > { %11235 = vst [vmem:[#allocation88_spill] sm:$0xff] %v7211_v38  ;;  %1849 = vadd.xlane.f32.xlu2 %v1848_v34  ;;  %v7264_v34 = vmul.f32 0.5, %v3062_v14  ;;  %v7275_v22 = vpop.eup %5110  ;;  %v2134_v14 = vsub.f32 1.5, %v2133_v7  ;;  %v7295_v7 = vmax.f32 %v6495_v17, 1e-24  ;;  %v3600_v0 = vsel %vm1353_vm1, %v3452_v12, 0.0 }
 0x21a   : > { %11237 = vst [vmem:[#allocation89_spill] sm:$0xff] %v7223_v53  ;;  %v7279_v53 = vmax.f32 %v11249_v57, 1e-24  ;;  %v1749_v55 = vsel %vm1353_vm1, %v1445_v23, 0.0  ;;  %v7282_v1 = vpop.eup %5112  ;;  %v7298_v23 = vadd.f32 %v6893_v58, %v1169_v28  ;;  %v7301_v57 = vadd.f32 %v6893_v58, %v1339_v2  ;;  %v7315_v2 = vpop.xlane.xlu0 %3661 }
 0x21b   : > { %11238 = vst [vmem:[#allocation197_spill] sm:$0xff] %v7226_v20  ;;  %v7292_v46 = vpop.eup %5114  ;;  %v2125_v17 = vmul.f32 %v7141_v47, %v2124_v44  ;;  %v2741_v28 = vmul.f32 %v7282_v1, %v7211_v38  ;;  %v2135_v12 = vmul.f32 %v7154_v32, %v2134_v14  ;;  %v11267_v14 = vld [vmem:[#allocation41_spill] sm:$0xff]  ;;  %vm2147_vm14 = vweird.f32 %v7275_v22 }
 0x21c   : > { %11239 = vst [vmem:[#allocation198_spill] sm:$0xff] %v7230_v13  ;;  %5120 = vrsqrt.f32 %v7279_v53  ;;  %v1480_v20 = vmul.f32 %v7301_v57, %v7301_v57  ;;  %vm2146_vm15 = vweird.f32 %v7203_v19  ;;  %vm2156_vm6 = vweird.f32 %v7338_v11 }
 0x21d   : > { %11240 = vst [vmem:[#allocation199_spill] sm:$0xff] %v7234_v60  ;;  %vm7472_vm2 = vmor %vm2146_vm15, %vm2147_vm14  ;;  %vm2396_vm14 = vweird.f32 %v7097_v10  ;;  %vm2407_vm15 = vweird.f32 %v7292_v46  ;;  %vm2416_vm3 = vweird.f32 %v7253_v36  ;;  %vm2406_vm4 = vweird.f32 %v7219_v9  ;;  %v11343_v10 = vld [vmem:[#allocation42_spill] sm:$0xff] }
 0x21e   : > { %11242 = vst [vmem:[#allocation91_spill] sm:$0xff] %v7237_v45  ;;  %vm2426_vm7 = vweird.f32 %v7295_v7 }
 0x21f   : > { %11244 = vst [vmem:[#allocation36_spill] sm:$0xff] %v7247_v8  ;;  %v1172_v5 = vpop.f32.mrf.mxu1  ;;  %v7287_v8 = vmax.f32 %v6488_v24, 1e-24  ;;  %v2141_v24 = vmul.f32 %v7275_v22, %v7203_v19  ;;  %3601 = vadd.xlane.f32.xlu1 %v3600_v0  ;;  %v7354_v33 = vpop.xlane.xlu2 %1831 }
 0x220   : > { %11245 = vst [vmem:[#allocation200_spill] sm:$0xff] %v7249_v39  ;;  %v2732_v39 = vmul.f32 %v7234_v60, %v2731_v59  ;;  %v7290_v13 = vadd.f32 %v6893_v58, %v1172_v5  ;;  %v1752_v59 = vsel %vm1353_vm1, %v1446_v4, 0.0  ;;  %v7309_v5 = vpop.eup %5116  ;;  %v7324_v4 = vpop.xlane.xlu1 %1630 }
 0x221   : > { %11247 = vst [vmem:[#allocation96_spill] sm:$0xff] %v7264_v34  ;;  %1750 = vadd.xlane.f32.xlu2 %v1749_v55  ;;  %1753 = vadd.xlane.f32.xlu0 %v1752_v59  ;;  %v2401_v55 = vmul.f32 %v7292_v46, %v7219_v9  ;;  %5122 = vrsqrt.f32 %v7287_v8  ;;  %v7326_v0 = vpop.eup %5118  ;;  %v1257_v59 = vpop.f32.mrf.mxu2  ;;  %v3081_v54 = vmul.f32 %v7309_v5, %v7237_v45 }
 0x222   : > { %11248 = vst [vmem:[#allocation201_spill] sm:$0xff] %v7273_v51  ;;  %v1413_v44 = vmul.f32 %v7290_v13, %v7290_v13  ;;  %5124 = vrsqrt.f32 %v7295_v7  ;;  %v2142_v40 = vmul.f32 %v7275_v22, %v2141_v24  ;;  %v7361_v38 = vmul.f32 0.5, %v2732_v39 }
 0x223   : > { %11250 = vst [vmem:[#allocation97_spill] sm:$0xff] %v7279_v53  ;;  %v7364_v45 = vadd.f32 %v6893_v58, %v1257_v59  ;;  %v2139_v34 = vsel %vm7349_vm13, %v7154_v32, %v2135_v12  ;;  %v2742_v51 = vmul.f32 %v7282_v1, %v2741_v28  ;;  %v2402_v24 = vmul.f32 %v7292_v46, %v2401_v55 }
 0x224   : > { %11251 = vst [vmem:[#allocation202_spill] sm:$0xff] %v7282_v1  ;;  %5126 = vrsqrt.f32 %v7338_v11  ;;  %v1854_v39 = vsel %vm1353_vm1, %v1480_v20, 0.0  ;;  %v3082_v12 = vmul.f32 %v7309_v5, %v3081_v54  ;;  %v2143_v55 = vmul.f32 0.5, %v2142_v40 }
 0x225   : > { %11252 = vst [vmem:[#allocation203_spill] sm:$0xff] %v7287_v8  ;;  %v1447_v54 = vmul.f32 %v7364_v45, %v7364_v45  ;;  %v7396_v40 = vmul.f32 0.5, %v2742_v51  ;;  %vm2417_vm13 = vweird.f32 %v7326_v0 }
 0x226   : > { %11253 = vst [vmem:[#allocation204_spill] sm:$0xff] %v7290_v13  ;;  %v1342_v13 = vpop.f32.mrf.mxu3  ;;  %v7412_v20 = vmul.f32 0.5, %v3082_v12 }
 0x227   : > { %11254 = vst [vmem:[#allocation205_spill] sm:$0xff] %v7298_v23  ;;  %1855 = vadd.xlane.f32.xlu1 %v1854_v39  ;;  %v1174_v27 = vpop.f32.mrf.mxu1 }
 0x228   : > { %11255 = vst [vmem:[#allocation206_spill] sm:$0xff] %v7301_v57  ;;  %v2129_v57 = vsel %vm7332_vm0, %v7141_v47, %v2125_v17  ;;  %v1653_v47 = vsel %vm1353_vm1, %v1413_v44, 0.0  ;;  %v11269_v44 = vld [vmem:[#allocation45_spill] sm:$0xff]  ;;  %vm2397_vm0 = vweird.f32 %v7177_v43 }
 0x229   : > { %11256 = vst [vmem:[#allocation207_spill] sm:$0xff] %v7309_v5  ;;  %v3301_v60 = vmul.f32 %v2129_v57, %v11267_v14  ;;  %v3302_v59 = vmul.f32 %v2139_v34, %v11269_v44  ;;  %1654 = vadd.xlane.f32.xlu0 %v1653_v47  ;;  %v7392_v57 = vpop.xlane.xlu0 %1546  ;;  %v7404_v14 = vmul.f32 0.5, %v2402_v24  ;;  %v11273_v47 = vld [vmem:[#allocation110_spill] sm:$0xff]  ;;  %v7419_v24 = vpop.xlane.xlu2 %1732 }
 0x22a   : > { %11257 = vst [vmem:[#allocation208_spill] sm:$0xff] %v7315_v2  ;;  %v1412_v2 = vmul.f32 %v7298_v23, %v7298_v23  ;;  %v7359_v23 = vmul.f32 0.5, %v3072_v42  ;;  %v7374_v42 = vpop.eup %5120  ;;  %v7409_v44 = vmax.f32 %v11273_v47, 1e-24  ;;  %v1259_v12 = vpop.f32.mrf.mxu2 }
 0x22b   : > { %11262 = vst [vmem:[#allocation209_spill] sm:$0xff] %v7354_v33  ;;  %v2411_v33 = vmul.f32 %v7326_v0, %v7253_v36  ;;  %v7380_v32 = vpop.eup %5122  ;;  %v2751_v34 = vmul.f32 %v7374_v42, %v7279_v53  ;;  %v3453_v51 = vmul.f32 %v6229_v37, %v3301_v60  ;;  %v7428_v60 = vadd.f32 %v6893_v58, %v1342_v13 }
 0x22c   : > { %11263 = vst [vmem:[#allocation210_spill] sm:$0xff] %v7359_v23  ;;  %v1650_v17 = vsel %vm1353_vm1, %v1412_v2, 0.0  ;;  %v7385_v1 = vpop.eup %5124  ;;  %v7390_v2 = vmax.f32 %v6680_v16, 1e-24  ;;  %v3091_v16 = vmul.f32 %v7380_v32, %v7287_v8  ;;  %v7417_v23 = vpop.xlane.xlu1 %3664  ;;  %v11278_v8 = vld [vmem:[#allocation119_spill] sm:$0xff] }
 0x22d   : > { %11264 = vst [vmem:[#allocation211_spill] sm:$0xff] %v7361_v38  ;;  %1651 = vadd.xlane.f32.xlu2 %v1650_v17  ;;  %v2412_v39 = vmul.f32 %v7326_v0, %v2411_v33  ;;  %v7402_v17 = vmax.f32 %v6541_v3, 1e-24  ;;  %v2144_v33 = vsub.f32 1.5, %v2143_v55  ;;  %v2421_v28 = vmul.f32 %v7385_v1, %v7295_v7  ;;  %v7421_v5 = vpop.eup %5126 }
 0x22e   : > { %11265 = vst [vmem:[#allocation212_spill] sm:$0xff] %v7364_v45  ;;  %v3454_v3 = vmul.f32 %v6229_v37, %v3302_v59  ;;  %v7424_v47 = vmax.f32 %v11278_v8, 1e-24  ;;  %5128 = vrsqrt.f32 %v7390_v2  ;;  %v1755_v55 = vsel %vm1353_vm1, %v1447_v54, 0.0  ;;  %v1344_v45 = vpop.f32.mrf.mxu3 }
 0x22f   : > { %11266 = vst [vmem:[#allocation213_spill] sm:$0xff] %v7374_v42  ;;  %v7431_v38 = vmul.f32 0.5, %v2412_v39  ;;  %v2752_v59 = vmul.f32 %v7374_v42, %v2751_v34  ;;  %5130 = vrsqrt.f32 %v7402_v17  ;;  %v3092_v8 = vmul.f32 %v7380_v32, %v3091_v16  ;;  %1756 = vadd.xlane.f32.xlu1 %v1755_v55 }
 0x230   : > { %11268 = vst [vmem:[#allocation41_spill] sm:$0xff] %v7380_v32  ;;  %5132 = vrsqrt.f32 %v7409_v44  ;;  %v3603_v13 = vsel %vm1353_vm1, %v3453_v51, 0.0  ;;  %v2151_v54 = vmul.f32 %v7421_v5, %v7338_v11  ;;  %v7445_v39 = vadd.f32 %v6893_v58, %v1344_v45  ;;  %v1177_v45 = vpop.f32.mrf.mxu1 }
 0x231   : > { %11270 = vst [vmem:[#allocation45_spill] sm:$0xff] %v7392_v57  ;;  %v3606_v34 = vsel %vm1353_vm1, %v3454_v3, 0.0  ;;  %v2145_v53 = vmul.f32 %v7275_v22, %v2144_v33  ;;  %v2422_v16 = vmul.f32 %v7385_v1, %v2421_v28  ;;  %5134 = vrsqrt.f32 %v7424_v47  ;;  %v7454_v51 = vpop.xlane.xlu0 %3580 }
 0x232   : > { %11271 = vst [vmem:[#allocation214_spill] sm:$0xff] %v7396_v40  ;;  %3607 = vadd.xlane.f32.xlu0 %v3606_v34  ;;  %v1481_v55 = vmul.f32 %v7428_v60, %v7428_v60  ;;  %v7462_v33 = vmax.f32 %v6678_v49, 1e-24  ;;  %v2152_v3 = vmul.f32 %v7421_v5, %v2151_v54  ;;  %vm2157_vm8 = vweird.f32 %v7421_v5 }
 0x233   : > { %11272 = vst [vmem:[#allocation215_spill] sm:$0xff] %v7402_v17  ;;  %v2149_v34 = vsel %vm7472_vm2, %v7275_v22, %v2145_v53  ;;  %v7490_v40 = vmul.f32 0.5, %v2422_v16  ;;  %v7503_v22 = vmax.f32 %v6761_v63, 1e-24  ;;  %v7508_v16 = vpop.xlane.xlu2 %1633  ;;  %vm7633_vm10 = vmor %vm2156_vm6, %vm2157_vm8  ;;  %vm2166_vm11 = vweird.f32 %v7390_v2 }
 0x234   : > { %11274 = vst [vmem:[#allocation110_spill] sm:$0xff] %v7409_v44  ;;  %v7464_v28 = vpop.eup %5128  ;;  %v7497_v54 = vpop.xlane.xlu1 %1549  ;;  %v2153_v61 = vmul.f32 0.5, %v2152_v3  ;;  %v7534_v3 = vmax.f32 %v6943_v15, 1e-24  ;;  %vm2427_vm6 = vweird.f32 %v7385_v1 }
 0x235   : > { %11275 = vst [vmem:[#allocation216_spill] sm:$0xff] %v7412_v20  ;;  %3604 = vadd.xlane.f32.xlu2 %v3603_v13  ;;  %v7478_v49 = vpop.eup %5130  ;;  %v7480_v13 = vmul.f32 0.5, %v3092_v8  ;;  %v1857_v8 = vsel %vm1353_vm1, %v1481_v55, 0.0  ;;  %v7514_v55 = vmax.f32 %v6783_v31, 1e-24  ;;  %vm2167_vm2 = vweird.f32 %v7464_v28 }
 0x236   : > { %11276 = vst [vmem:[#allocation217_spill] sm:$0xff] %v7417_v23  ;;  %v7439_v23 = vadd.f32 %v6893_v58, %v1174_v27  ;;  %v11283_v27 = vld [vmem:[#allocation120_spill] sm:$0xff]  ;;  %v7488_v20 = vpop.eup %5132  ;;  %vm7723_vm5 = vmor %vm2166_vm11, %vm2167_vm2 }
 0x237   : > { %11277 = vst [vmem:[#allocation218_spill] sm:$0xff] %v7419_v24  ;;  %v7452_v32 = vmax.f32 %v11283_v27, 1e-24  ;;  %v7468_v27 = vmul.f32 0.5, %v2752_v59  ;;  %v1482_v59 = vmul.f32 %v7445_v39, %v7445_v39  ;;  %v1262_v24 = vpop.f32.mrf.mxu2 }
 0x238   : > { %11279 = vst [vmem:[#allocation119_spill] sm:$0xff] %v7424_v47  ;;  %v1414_v19 = vmul.f32 %v7439_v23, %v7439_v23  ;;  %v7506_v53 = vadd.f32 %v6893_v58, %v1262_v24  ;;  %v3101_v24 = vmul.f32 %v7478_v49, %v7402_v17  ;;  %v2154_v17 = vsub.f32 1.5, %v2153_v61 }
 0x239   : > { %11280 = vst [vmem:[#allocation219_spill] sm:$0xff] %v7428_v60  ;;  %5136 = vrsqrt.f32 %v7452_v32  ;;  %v2161_v60 = vmul.f32 %v7464_v28, %v7390_v2  ;;  %v1860_v57 = vsel %vm1353_vm1, %v1482_v59, 0.0 }
 0x23a   : > { %11281 = vst [vmem:[#allocation220_spill] sm:$0xff] %v7439_v23  ;;  %v11291_v23 = vld [vmem:[#allocation124_spill] sm:$0xff]  ;;  %5138 = vrsqrt.f32 %v7462_v33  ;;  %1861 = vadd.xlane.f32.xlu0 %v1860_v57  ;;  %v3102_v31 = vmul.f32 %v7478_v49, %v3101_v24 }
 0x23b   : > { %11282 = vst [vmem:[#allocation221_spill] sm:$0xff] %v7445_v39  ;;  %v7494_v42 = vmax.f32 %v11291_v23, 1e-24  ;;  %v7510_v23 = vpop.eup %5134  ;;  %v7517_v39 = vadd.f32 %v6893_v58, %v1259_v12  ;;  %v2761_v12 = vmul.f32 %v7488_v20, %v7409_v44  ;;  %v2162_v15 = vmul.f32 %v7464_v28, %v2161_v60 }
 0x23c   : > { %11284 = vst [vmem:[#allocation120_spill] sm:$0xff] %v7454_v51  ;;  %v1656_v51 = vsel %vm1353_vm1, %v1414_v19, 0.0  ;;  %v1449_v19 = vmul.f32 %v7506_v53, %v7506_v53  ;;  %v7561_v60 = vadd.f32 %v6893_v58, %v1177_v45 }
 0x23d   : > { %11285 = vst [vmem:[#allocation222_spill] sm:$0xff] %v7468_v27  ;;  %1657 = vadd.xlane.f32.xlu1 %v1656_v51  ;;  %1858 = vadd.xlane.f32.xlu2 %v1857_v8  ;;  %5140 = vrsqrt.f32 %v7494_v42  ;;  %v1448_v8 = vmul.f32 %v7517_v39, %v7517_v39  ;;  %v7575_v45 = vmul.f32 0.5, %v2162_v15  ;;  %v11304_v15 = vsub.f32 1.5, %v7228_v48 }
 0x23e   : > { %11288 = vst [vmem:[#allocation223_spill] sm:$0xff] %v7478_v49  ;;  %5142 = vrsqrt.f32 %v7503_v22  ;;  %v1761_v24 = vsel %vm1353_vm1, %v1449_v19, 0.0 }
 0x23f   : > { %11289 = vst [vmem:[#allocation224_spill] sm:$0xff] %v7480_v13  ;;  %v7545_v59 = vpop.eup %5136  ;;  %5144 = vrsqrt.f32 %v7514_v55  ;;  %v1347_v13 = vpop.f32.mrf.mxu3 }
 0x240   : > { %11290 = vst [vmem:[#allocation225_spill] sm:$0xff] %v7488_v20  ;;  %v2431_v61 = vmul.f32 %v7545_v59, %v7452_v32  ;;  %vm2437_vm8 = vweird.f32 %v7545_v59 }
 0x241   : > { %11292 = vst [vmem:[#allocation124_spill] sm:$0xff] %v7494_v42 }
 0x242   : > { %11293 = vst [vmem:[#allocation226_spill] sm:$0xff] %v7497_v54  ;;  %v11298_v54 = vld [vmem:[#allocation49_spill] sm:$0xff]  ;;  %1762 = vadd.xlane.f32.xlu0 %v1761_v24  ;;  %v2432_v24 = vmul.f32 %v7545_v59, %v2431_v61  ;;  %v7641_v61 = vmax.f32 %v7065_v56, 1e-24 }
 0x243   : > { %11294 = vst [vmem:[#allocation227_spill] sm:$0xff] %v7506_v53  ;;  %v3303_v63 = vmul.f32 %v2149_v34, %v11298_v54  ;;  %v2771_v34 = vmul.f32 %v7510_v23, %v7424_v47  ;;  %v7553_v54 = vpop.eup %5138  ;;  %v2762_v53 = vmul.f32 %v7488_v20, %v2761_v12  ;;  %v7579_v47 = vpop.xlane.xlu1 %3583  ;;  %v7597_v20 = vmul.f32 0.5, %v3102_v31 }
 0x244   : > { %11295 = vst [vmem:[#allocation228_spill] sm:$0xff] %v7508_v16  ;;  %v7524_v16 = vmax.f32 %v6906_v41, 1e-24  ;;  %v7536_v41 = vpop.xlane.xlu0 %1834  ;;  %v7571_v49 = vpop.eup %5140  ;;  %v2441_v12 = vmul.f32 %v7553_v54, %v7462_v33 }
 0x245   : > { %11296 = vst [vmem:[#allocation229_spill] sm:$0xff] %v7510_v23  ;;  %v3455_v57 = vmul.f32 %v6229_v37, %v3303_v63  ;;  %v7564_v63 = vadd.f32 %v6893_v58, %v1347_v13  ;;  %v2772_v51 = vmul.f32 %v7510_v23, %v2771_v34  ;;  %v7581_v27 = vpop.eup %5142  ;;  %v7584_v34 = vmax.f32 %v7050_v6, 1e-24  ;;  %v7589_v23 = vpop.xlane.xlu2 %3667 }
 0x246   : > { %11297 = vst [vmem:[#allocation230_spill] sm:$0xff] %v7517_v39  ;;  %5146 = vrsqrt.f32 %v7524_v16  ;;  %v1179_v39 = vpop.f32.mrf.mxu1  ;;  %v7595_v44 = vpop.eup %5144  ;;  %v1415_v6 = vmul.f32 %v7561_v60, %v7561_v60  ;;  %v7618_v31 = vmul.f32 0.5, %v2762_v53  ;;  %v2442_v53 = vmul.f32 %v7553_v54, %v2441_v12 }
 0x247   : > { %11299 = vst [vmem:[#allocation49_spill] sm:$0xff] %v7536_v41  ;;  %5148 = vrsqrt.f32 %v7534_v3  ;;  %v3609_v13 = vsel %vm1353_vm1, %v3455_v57, 0.0  ;;  %v1758_v41 = vsel %vm1353_vm1, %v1448_v8, 0.0  ;;  %v7587_v19 = vadd.f32 %v6893_v58, %v1179_v39 }
 0x248   : > { %11300 = vst [vmem:[#allocation231_spill] sm:$0xff] %v7561_v60  ;;  %3610 = vadd.xlane.f32.xlu1 %v3609_v13  ;;  %1759 = vadd.xlane.f32.xlu2 %v1758_v41  ;;  %v2385_v57 = vmul.f32 %v7119_v62, %v11304_v15  ;;  %v2155_v8 = vmul.f32 %v7421_v5, %v2154_v17  ;;  %v11307_v39 = vsub.f32 1.5, %v7133_v30  ;;  %v7620_v15 = vmul.f32 0.5, %v2772_v51 }
 0x249   : > { %11301 = vst [vmem:[#allocation232_spill] sm:$0xff] %v7564_v63  ;;  %v1483_v41 = vmul.f32 %v7564_v63, %v7564_v63  ;;  %v7625_v30 = vmul.f32 %v7571_v49, %v7494_v42  ;;  %v2164_v51 = vsub.f32 1.5, %v7575_v45  ;;  %5150 = vrsqrt.f32 %v7584_v34 }
 0x24a   : > { %11302 = vst [vmem:[#allocation233_spill] sm:$0xff] %v7571_v49  ;;  %v2375_v48 = vmul.f32 %v7011_v50, %v11307_v39  ;;  %v1416_v11 = vmul.f32 %v7587_v19, %v7587_v19  ;;  %v2389_v12 = vsel %vm7614_vm9, %v7119_v62, %v2385_v57  ;;  %v2159_v56 = vsel %vm7633_vm10, %v7421_v5, %v2155_v8  ;;  %vm7784_vm9 = vmor %vm2396_vm14, %vm2397_vm0 }
 0x24b   : > { %11303 = vst [vmem:[#allocation234_spill] sm:$0xff] %v7587_v19  ;;  %v2171_v52 = vmul.f32 %v7581_v27, %v7503_v22  ;;  %v1863_v45 = vsel %vm1353_vm1, %v1483_v41, 0.0  ;;  %v1659_v42 = vsel %vm1353_vm1, %v1415_v6, 0.0  ;;  %v7667_v19 = vmul.f32 0.5, %v2432_v24  ;;  %v7681_v63 = vpop.xlane.xlu1 %1837 }
 0x24c   : > { %11305 = vst [vmem:[#allocation235_spill] sm:$0xff] %v7597_v20  ;;  %v7603_v58 = vpop.xlane.xlu0 %1735  ;;  %v7608_v13 = vpop.eup %5146  ;;  %v2379_v60 = vsel %vm7647_vm12, %v7011_v50, %v2375_v48  ;;  %v2451_v62 = vmul.f32 %v7595_v44, %v7514_v55  ;;  %v7676_v8 = vmul.f32 0.5, %v2442_v53  ;;  %v7679_v6 = vmax.f32 %v6704_v29, 1e-24  ;;  %v11319_v50 = vld [vmem:[#allocation34_spill] sm:$0xff]  ;;  %v11320_v48 = vld [vmem:[#allocation51_spill] sm:$0xff]  ;;  %vm7803_vm12 = vmor %vm2416_vm3, %vm2417_vm13 }
 0x24d   : > { %11306 = vst [vmem:[#allocation236_spill] sm:$0xff] %v7603_v58  ;;  %v7627_v39 = vpop.eup %5148  ;;  %v2461_v57 = vmul.f32 %v7608_v13, %v7524_v16  ;;  %v3327_v41 = vmul.f32 %v2389_v12, %v11319_v50  ;;  %v3304_v17 = vmul.f32 %v2159_v56, %v11320_v48  ;;  %5152 = vrsqrt.f32 %v7641_v61  ;;  %v7691_v53 = vpop.xlane.xlu2 %1552  ;;  %v11321_v29 = vld [vmem:[#allocation30_spill] sm:$0xff]  ;;  %vm7821_vm13 = vmor %vm2406_vm4, %vm2407_vm15 }
 0x24e   : > { %11310 = vst [vmem:[#allocation237_spill] sm:$0xff] %v7618_v31  ;;  %v2181_v5 = vmul.f32 %v7627_v39, %v7534_v3  ;;  %v7688_v24 = vmax.f32 %v7213_v26, 1e-24  ;;  %v1662_v21 = vsel %vm1353_vm1, %v1416_v11, 0.0  ;;  %v3326_v58 = vmul.f32 %v2379_v60, %v11321_v29 }
 0x24f   : > { %11311 = vst [vmem:[#allocation238_spill] sm:$0xff] %v7620_v15  ;;  %v2172_v12 = vmul.f32 %v7581_v27, %v2171_v52  ;;  %v7699_v56 = vmax.f32 %v7241_v18, 1e-24  ;;  %1663 = vadd.xlane.f32.xlu0 %v1662_v21  ;;  %v2165_v26 = vmul.f32 %v7464_v28, %v2164_v51  ;;  %v2452_v60 = vmul.f32 %v7595_v44, %v2451_v62  ;;  %v1349_v21 = vpop.f32.mrf.mxu3 }
 0x250   : > { %11312 = vst [vmem:[#allocation239_spill] sm:$0xff] %v7625_v30  ;;  %1864 = vadd.xlane.f32.xlu1 %v1863_v45  ;;  %1660 = vadd.xlane.f32.xlu2 %v1659_v42  ;;  %v7702_v42 = vpop.eup %5150  ;;  %v2462_v11 = vmul.f32 %v7608_v13, %v2461_v57  ;;  %v2182_v45 = vmul.f32 %v7627_v39, %v2181_v5  ;;  %v7709_v50 = vmax.f32 %v7324_v4, 1e-24  ;;  %5154 = vrsqrt.f32 %v7679_v6  ;;  %v1264_v5 = vpop.f32.mrf.mxu2 }
 0x251   : > { %11317 = vst [vmem:[#allocation240_spill] sm:$0xff] %v7679_v6  ;;  %v3479_v51 = vmul.f32 %v6533_v35, %v3327_v41  ;;  %v3456_v48 = vmul.f32 %v6229_v37, %v3304_v17  ;;  %v4084_v57 = vlaneseq  ;;  %5156 = vrsqrt.f32 %v7688_v24 }
 0x252   : > { %11318 = vst [vmem:[#allocation241_spill] sm:$0xff] %v7681_v63  ;;  %v3478_v29 = vmul.f32 %v6533_v35, %v3326_v58  ;;  %v7729_v41 = vmul.f32 0.5, %v2172_v12  ;;  %v2191_v17 = vmul.f32 %v7702_v42, %v7584_v34  ;;  %5158 = vrsqrt.f32 %v7699_v56  ;;  %v5268_v58 = vld [vmem:[%s10641_s3] ss:$0 sm:$0xff] }
 0x253   : > { %v2169_v2 = vsel %vm7723_vm5, %v7464_v28, %v2165_v26  ;;  %v7737_v62 = vpop.eup %5152  ;;  %v7739_v18 = vmul.f32 0.5, %v2452_v60  ;;  %v7741_v63 = vmul.f32 0.5, %v2462_v11  ;;  %v7743_v15 = vmul.f32 0.5, %v2182_v45  ;;  %v7756_v60 = vpop.xlane.xlu1 %1738  ;;  %v11327_v45 = vld [vmem:[#allocation57_spill] sm:$0xff]  ;;  %vm7880_vm5 = vmor %vm2426_vm7, %vm2427_vm6 }
 0x254   : > { %v7711_v52 = vpop.xlane.xlu0 %1636  ;;  %5160 = vrsqrt.f32 %v7709_v50  ;;  %v7750_v12 = vadd.f32 %v5268_v58, %v1264_v5  ;;  %v7752_v4 = vadd.f32 %v5268_v58, %v1349_v21  ;;  %v3681_v28 = vsel %vm1353_vm1, %v3479_v51, 0.0  ;;  %11326 = vst [vmem:[#allocation30_spill] sm:$0xff] %v7756_v60 }
 0x255   : > { %v3612_v26 = vsel %vm1353_vm1, %v3456_v48, 0.0  ;;  %v3678_v11 = vsel %vm1353_vm1, %v3478_v29, 0.0  ;;  %v3305_v31 = vmul.f32 %v2169_v2, %v11327_v45  ;;  %v11328_v49 = vsub.f32 1.5, %v7431_v38  ;;  %v11337_v45 = vld [vmem:[#allocation178_spill] sm:$0xff] }
 0x256   : > { %11324 = vst [vmem:[#allocation34_spill] sm:$0xff] %v7750_v12  ;;  %v11329_v5 = vsub.f32 1.5, %v7268_v25  ;;  %v7766_v58 = vpop.eup %5154  ;;  %v7770_v51 = vand.u32 127, %v4084_v57  ;;  %v2192_v48 = vmul.f32 %v7702_v42, %v2191_v17  ;;  %v2471_v29 = vmul.f32 %v7737_v62, %v7641_v61  ;;  %v11334_v17 = vld [vmem:[#allocation45_spill] sm:$0xff] }
 0x257   : > { %11325 = vst [vmem:[#allocation51_spill] sm:$0xff] %v7752_v4  ;;  %v2415_v30 = vmul.f32 %v7326_v0, %v11328_v49  ;;  %3679 = vadd.xlane.f32.xlu0 %v3678_v11  ;;  %v11331_v38 = vsub.f32 1.5, %v7404_v14  ;;  %v7778_v49 = vpop.eup %5156  ;;  %v2174_v57 = vsub.f32 1.5, %v7729_v41  ;;  %vm2176_vm10 = vweird.f32 %v7503_v22  ;;  %v11363_v22 = vld [vmem:[#allocation54_spill] sm:$0xff] }
 0x258   : > { %3682 = vadd.xlane.f32.xlu1 %v3681_v28  ;;  %3613 = vadd.xlane.f32.xlu2 %v3612_v26  ;;  %v2395_v21 = vmul.f32 %v7177_v43, %v11329_v5  ;;  %11330 = vst [vmem:[#allocation57_spill] sm:$0xff] %v7766_v58  ;;  %vm2177_vm11 = vweird.f32 %v7581_v27  ;;  %v7793_v28 = vmax.f32 %v11334_v17, 1e-24  ;;  %v7795_v26 = vpop.xlane.xlu2 %3586  ;;  %v7797_v11 = vpop.eup %5158  ;;  %vm2436_vm0 = vweird.f32 %v7452_v32 }
 0x259   : > { %v2405_v25 = vmul.f32 %v7292_v46, %v11331_v38  ;;  %v1450_v38 = vmul.f32 %v7750_v12, %v7750_v12  ;;  %v1484_v17 = vmul.f32 %v7752_v4, %v7752_v4  ;;  %v3457_v5 = vmul.f32 %v6229_v37, %v3305_v31  ;;  %vm7898_vm6 = vmor %vm2176_vm10, %vm2177_vm11 }
 0x25a   : > { %v7815_v14 = vpop.eup %5160  ;;  %v2419_v4 = vsel %vm7803_vm12, %v7326_v0, %v2415_v30  ;;  %v2399_v12 = vsel %vm7784_vm9, %v7177_v43, %v2395_v21  ;;  %v7835_v20 = vmul.f32 0.5, %v2192_v48  ;;  %v2472_v9 = vmul.f32 %v7737_v62, %v2471_v29  ;;  %v11340_v43 = vld [vmem:[#allocation226_spill] sm:$0xff]  ;;  %v11342_v29 = vld [vmem:[#allocation37_spill] sm:$0xff]  ;;  %vm7914_vm10 = vmor %vm2436_vm0, %vm2437_vm8 }
 0x25b   : > { %v7839_v58 = vadd.s32 4294967288, %v7770_v51  ;;  %v2409_v41 = vsel %vm7821_vm13, %v7292_v46, %v2405_v25  ;;  %vm10945_vm14 = vcmask 130112   ;;  %v2201_v37 = vmul.f32 %v7778_v49, %v7688_v24  ;;  %v11341_v48 = vld [vmem:[#allocation46_spill] sm:$0xff] }
 0x25c   : > { %v7826_v60 = vpop.xlane.xlu0 %3670  ;;  %v2481_v0 = vmul.f32 %v7797_v11, %v7699_v56  ;;  %5162 = vrsqrt.f32 %v7793_v28  ;;  %v7850_v31 = vmax.f32 %v11340_v43, 1e-24  ;;  %vm2447_vm15 = vweird.f32 %v7553_v54 }
 0x25d   : > { %v1764_v30 = vsel %vm1353_vm1, %v1450_v38, 0.0  ;;  %v1866_v21 = vsel %vm1353_vm1, %v1484_v17, 0.0  ;;  %v3330_v46 = vmul.f32 %v2419_v4, %v11341_v48  ;;  %v3328_v25 = vmul.f32 %v2399_v12, %v11342_v29  ;;  %v11345_v4 = vld [vmem:[#allocation228_spill] sm:$0xff] }
 0x25e   : > { %vm2187_vm2 = vweird.f32 %v7627_v39  ;;  %v3615_v2 = vsel %vm1353_vm1, %v3457_v5, 0.0  ;;  %v3329_v36 = vmul.f32 %v2409_v41, %v11343_v10  ;;  %v2175_v43 = vmul.f32 %v7581_v27, %v2174_v57  ;;  %v7871_v5 = vpop.xlane.xlu1 %1639 }
 0x25f   : > { %v11344_v6 = vsub.f32 1.5, %v7490_v40  ;;  %vm2446_vm3 = vweird.f32 %v7462_v33  ;;  %vm2197_vm4 = vweird.f32 %v7702_v42  ;;  %v2491_v12 = vmul.f32 %v7815_v14, %v7709_v50  ;;  %3616 = vadd.xlane.f32.xlu0 %v3615_v2  ;;  %v11360_v40 = vld [vmem:[#allocation60_spill] sm:$0xff] }
 0x260   : > { %1765 = vadd.xlane.f32.xlu1 %v1764_v30  ;;  %1867 = vadd.xlane.f32.xlu2 %v1866_v21  ;;  %v7869_v17 = vmax.f32 %v11345_v4, 1e-24  ;;  %v11346_v41 = vsub.f32 1.5, %v7667_v19  ;;  %vm2186_vm9 = vweird.f32 %v7534_v3  ;;  %v2202_v21 = vmul.f32 %v7778_v49, %v2201_v37  ;;  %v7892_v29 = vpop.xlane.xlu2 %1840 }
 0x261   : > { %v2425_v38 = vmul.f32 %v7385_v1, %v11344_v6  ;;  %v11349_v6 = vld [vmem:[#allocation27_spill] sm:$0xff]  ;;  %v2482_v48 = vmul.f32 %v7797_v11, %v2481_v0  ;;  %v7890_v19 = vadd.s32 4294967280, %v7770_v51  ;;  %11351 = vst [vmem:[#allocation178_spill] sm:$0xff] %v7892_v29  ;;  %v2194_v2 = vsub.f32 1.5, %v7835_v20 }
 0x262   : > { %v2435_v57 = vmul.f32 %v7545_v59, %v11346_v41  ;;  %v4088_v30 = vperm.slane %v11349_v6, %v7839_v58  ;;  %vm2196_vm7 = vweird.f32 %v7584_v34  ;;  %v7904_v37 = vmul.f32 0.5, %v2472_v9  ;;  %v7908_v4 = vpop.eup %5162  ;;  %v11357_v6 = vld [vmem:[#allocation103_spill] sm:$0xff] }
 0x263   : > { %11350 = vst [vmem:[#allocation45_spill] sm:$0xff] %v7890_v19  ;;  %v3482_v0 = vmul.f32 %v6533_v35, %v3330_v46  ;;  %v3480_v10 = vmul.f32 %v6533_v35, %v3328_v25  ;;  %5164 = vrsqrt.f32 %v7850_v31  ;;  %v3481_v9 = vmul.f32 %v6533_v35, %v3329_v36 }
 0x264   : > { %v7919_v20 = vpop.xlane.xlu0 %1555  ;;  %v2179_v46 = vsel %vm7898_vm6, %v7581_v27, %v2175_v43  ;;  %v2429_v25 = vsel %vm7880_vm5, %v7385_v1, %v2425_v38  ;;  %vm10946_vm11 = vcmask 195712   ;;  %v2492_v32 = vmul.f32 %v7815_v14, %v2491_v12  ;;  %v11358_v27 = vld [vmem:[#allocation201_spill] sm:$0xff] }
 0x265   : > { %11356 = vst [vmem:[#allocation226_spill] sm:$0xff] %v7919_v20  ;;  %5166 = vrsqrt.f32 %v7869_v17  ;;  %v2439_v41 = vsel %vm7914_vm10, %v7545_v59, %v2435_v57  ;;  %vm2627_vm8 = vweird.f32 %v11357_v6  ;;  %v7934_v36 = vmul.f32 0.5, %v2202_v21  ;;  %v11361_v57 = vld [vmem:[#allocation50_spill] sm:$0xff]  ;;  %v11362_v21 = vld [vmem:[#allocation95_spill] sm:$0xff]  ;;  %vm7975_vm10 = vmor %vm2446_vm3, %vm2447_vm15 }
 0x266   : > { %v7936_v29 = vmul.f32 0.5, %v2482_v48  ;;  %v4092_v43 = vperm.slane %v11358_v27, %v7890_v19  ;;  %v7941_v1 = vadd.s32 4294967272, %v7770_v51  ;;  %vm2477_vm12 = vweird.f32 %v7737_v62  ;;  %vm7994_vm3 = vmor %vm2186_vm9, %vm2187_vm2 }
 0x267   : > { %v3690_v38 = vsel %vm1353_vm1, %v3482_v0, 0.0  ;;  %v3684_v12 = vsel %vm1353_vm1, %v3480_v10, 0.0  ;;  %v3306_v59 = vmul.f32 %v2179_v46, %v11360_v40  ;;  %v3331_v7 = vmul.f32 %v2429_v25, %v11361_v57  ;;  %vm8007_vm15 = vmor %vm2196_vm7, %vm2197_vm4 }
 0x268   : > { %11359 = vst [vmem:[#allocation46_spill] sm:$0xff] %v7941_v1  ;;  %vm2626_vm0 = vweird.f32 %v11362_v21  ;;  %vm2457_vm13 = vweird.f32 %v7595_v44  ;;  %3691 = vadd.xlane.f32.xlu1 %v3690_v38  ;;  %3685 = vadd.xlane.f32.xlu2 %v3684_v12  ;;  %v3687_v48 = vsel %vm1353_vm1, %v3481_v9, 0.0  ;;  %v3332_v27 = vmul.f32 %v2439_v41, %v11363_v22  ;;  %v7985_v40 = vpop.xlane.xlu2 %1741 }
 0x269   : > { %v11364_v20 = vsub.f32 1.5, %v7676_v8  ;;  %v11365_v10 = vsub.f32 1.5, %v7743_v15  ;;  %vm2467_vm5 = vweird.f32 %v7608_v13  ;;  %vm2476_vm6 = vweird.f32 %v7641_v61  ;;  %3688 = vadd.xlane.f32.xlu0 %v3687_v48  ;;  %v7969_v15 = vpop.eup %5164  ;;  %11370 = vst [vmem:[#allocation37_spill] sm:$0xff] %v7985_v40  ;;  %v11373_v48 = vld [vmem:[#allocation64_spill] sm:$0xff]  ;;  %vm8053_vm7 = vmor %vm2626_vm0, %vm2627_vm8 }
 0x26a   : > { %v11366_v25 = vperm.slane %v11337_v45, %v7770_v51  ;;  %v7964_v9 = vmul.f32 0.5, %v2492_v32  ;;  %v2211_v8 = vmul.f32 %v7908_v4, %v7793_v28  ;;  %v2474_v45 = vsub.f32 1.5, %v7904_v37  ;;  %vm8073_vm8 = vmor %vm2476_vm6, %vm2477_vm12 }
 0x26b   : > { %v2445_v0 = vmul.f32 %v7553_v54, %v11364_v20  ;;  %v2185_v46 = vmul.f32 %v7627_v39, %v11365_v10  ;;  %v2195_v20 = vmul.f32 %v7702_v42, %v2194_v2  ;;  %v11369_v2 = vld [vmem:[#allocation120_spill] sm:$0xff]  ;;  %v7987_v57 = vpop.eup %5166  ;;  %v3458_v22 = vmul.f32 %v11373_v48, %v3306_v59 }
 0x26c   : > { %v4090_v38 = vsel %vm10945_vm14, %v4088_v30, %v11366_v25  ;;  %vm2456_vm14 = vweird.f32 %v7514_v55  ;;  %v4096_v12 = vperm.slane %v11369_v2, %v7941_v1  ;;  %v3483_v10 = vmul.f32 %v6533_v35, %v3331_v7 }
 0x26d   : > { %v4094_v32 = vsel %vm10946_vm11, %v4092_v43, %v4090_v38  ;;  %vm10947_vm11 = vcmask 261312   ;;  %v7999_v43 = vpop.xlane.xlu1 %3673  ;;  %v8012_v3 = vadd.s32 4294967264, %v7770_v51  ;;  %v8014_v38 = vpop.xlane.xlu0 %3589  ;;  %v3484_v2 = vmul.f32 %v6533_v35, %v3332_v27  ;;  %vm8094_vm12 = vmor %vm2456_vm14, %vm2457_vm13 }
 0x26e   : > { %v2449_v59 = vsel %vm7975_vm10, %v7553_v54, %v2445_v0  ;;  %v2189_v7 = vsel %vm7994_vm3, %v7627_v39, %v2185_v46  ;;  %v2212_v37 = vmul.f32 %v7908_v4, %v2211_v8  ;;  %vm10985_vm2 = vcmask 326912   ;;  %v11377_v0 = vld [vmem:[#allocation117_spill] sm:$0xff] }
 0x26f   : > { %11376 = vst [vmem:[#allocation42_spill] sm:$0xff] %v8012_v3  ;;  %v2199_v30 = vsel %vm8007_vm15, %v7702_v42, %v2195_v20  ;;  %v4098_v40 = vsel %vm10947_vm11, %v4096_v12, %v4094_v32  ;;  %v2221_v27 = vmul.f32 %v7969_v15, %v7850_v31  ;;  %v2501_v54 = vmul.f32 %v7987_v57, %v7869_v17  ;;  %v11379_v42 = vld [vmem:[#allocation58_spill] sm:$0xff]  ;;  %v11380_v32 = vld [vmem:[#allocation67_spill] sm:$0xff] }
 0x270   : > { %v11378_v41 = vsub.f32 1.5, %v11377_v0  ;;  %vm2207_vm4 = vweird.f32 %v7778_v49  ;;  %v3618_v46 = vsel %vm1353_vm1, %v3458_v22, 0.0  ;;  %v3693_v8 = vsel %vm1353_vm1, %v3483_v10, 0.0  ;;  %v11381_v0 = vld [vmem:[#allocation70_spill] sm:$0xff]  ;;  %v11397_v22 = vld [vmem:[#allocation125_spill] sm:$0xff] }
 0x271   : > { %v3333_v20 = vmul.f32 %v2449_v59, %v11379_v42  ;;  %v3307_v12 = vmul.f32 %v2189_v7, %v11380_v32  ;;  %vm2487_vm9 = vweird.f32 %v7797_v11  ;;  %v4100_v33 = vperm.slane %v7579_v47, %v8012_v3  ;;  %3619 = vadd.xlane.f32.xlu1 %v3618_v46  ;;  %3694 = vadd.xlane.f32.xlu2 %v3693_v8 }
 0x272   : > { %v8036_v39 = vmul.f32 %v11357_v6, %v11378_v41  ;;  %v3696_v25 = vsel %vm1353_vm1, %v3484_v2, 0.0  ;;  %v3308_v41 = vmul.f32 %v2199_v30, %v11381_v0  ;;  %v2475_v34 = vmul.f32 %v7737_v62, %v2474_v45 }
 0x273   : > { %vm2206_vm10 = vweird.f32 %v7688_v24  ;;  %v8058_v10 = vmul.f32 0.5, %v2212_v37  ;;  %v8061_v47 = vmax.f32 %v7691_v53, 1e-24  ;;  %3697 = vadd.xlane.f32.xlu0 %v3696_v25  ;;  %v11384_v30 = vsub.f32 1.5, %v7739_v18  ;;  %v8088_v37 = vpop.xlane.xlu2 %1642 }
 0x274   : > { %v11385_v2 = vsub.f32 1.5, %v7741_v63  ;;  %vm2486_vm0 = vweird.f32 %v7699_v56  ;;  %vm2497_vm15 = vweird.f32 %v7815_v14  ;;  %v8080_v53 = vmul.f32 %v7969_v15, %v2221_v27 }
 0x275   : > { %v2455_v45 = vmul.f32 %v7595_v44, %v11384_v30  ;;  %v8083_v18 = vmul.f32 %v7987_v57, %v2501_v54  ;;  %v8086_v63 = vadd.s32 4294967256, %v7770_v51  ;;  %vm10991_vm3 = vcmask 392512   ;;  %v1559_v27 = vpop.xlane.xlu1 %1558  ;;  %v8115_v42 = vpop.xlane.xlu0 %1843 }
 0x276   : > { %v2465_v21 = vmul.f32 %v7608_v13, %v11385_v2  ;;  %v4178_v7 = vperm.slane %v7589_v23, %v7770_v51  ;;  %v3485_v54 = vmul.f32 %v6533_v35, %v3333_v20  ;;  %v3459_v46 = vmul.f32 %v11373_v48, %v3307_v12  ;;  %11394 = vst [vmem:[#allocation27_spill] sm:$0xff] %v8115_v42 }
 0x277   : > { %11388 = vst [vmem:[#allocation228_spill] sm:$0xff] %v8086_v63  ;;  %v2479_v8 = vsel %vm8073_vm8, %v7737_v62, %v2475_v34  ;;  %vm11391_vm6 = vweird.f32 %v7524_v16  ;;  %vm2496_vm13 = vweird.f32 %v7709_v50  ;;  %v4102_v23 = vsel %vm10985_vm2, %v4100_v33, %v4098_v40 }
 0x278   : > { %vm8109_vm14 = vmor %vm11391_vm6, %vm2467_vm5  ;;  %v3460_v20 = vmul.f32 %v11373_v48, %v3308_v41  ;;  %v2459_v62 = vsel %vm8094_vm12, %v7595_v44, %v2455_v45  ;;  %v2629_v16 = vsel %vm8053_vm7, %v11357_v6, %v8036_v39  ;;  %5168 = vrsqrt.f32 %v8061_v47  ;;  %v11395_v39 = vld [vmem:[#allocation73_spill] sm:$0xff] }
 0x279   : > { %v8127_v34 = vmax.f32 %v7711_v52, 1e-24  ;;  %v8130_v40 = vadd.s32 4294967248, %v7770_v51  ;;  %v2469_v32 = vsel %vm8109_vm14, %v7608_v13, %v2465_v21  ;;  %v4104_v44 = vperm.slane %v7795_v26, %v8086_v63  ;;  %v11396_v41 = vld [vmem:[#allocation61_spill] sm:$0xff]  ;;  %vm8168_vm12 = vmor %vm2206_vm10, %vm2207_vm4 }
 0x27a   : > { %v4179_v12 = vperm.slane %v7826_v60, %v7839_v58  ;;  %v8140_v6 = vmax.f32 %v7871_v5, 1e-24  ;;  %v3336_v33 = vmul.f32 %v2479_v8, %v11395_v39  ;;  %v3699_v52 = vsel %vm1353_vm1, %v3485_v54, 0.0  ;;  %v11398_v26 = vld [vmem:[#allocation65_spill] sm:$0xff]  ;;  %vm8184_vm4 = vmor %vm2486_vm0, %vm2487_vm9 }
 0x27b   : > { %v3621_v25 = vsel %vm1353_vm1, %v3459_v46, 0.0  ;;  %v8146_v0 = vadd.s32 4294967240, %v7770_v51  ;;  %v3334_v13 = vmul.f32 %v2459_v62, %v11396_v41  ;;  %vm2637_vm5 = vweird.f32 %v11397_v22  ;;  %3700 = vadd.xlane.f32.xlu1 %v3699_v52  ;;  %v11401_v54 = vld [vmem:[#allocation109_spill] sm:$0xff]  ;;  %vm8207_vm9 = vmor %vm2496_vm13, %vm2497_vm15 }
 0x27c   : > { %3622 = vadd.xlane.f32.xlu2 %v3621_v25  ;;  %v3624_v60 = vsel %vm1353_vm1, %v3460_v20, 0.0  ;;  %v3335_v5 = vmul.f32 %v2469_v32, %v11398_v26  ;;  %v11399_v30 = vsub.f32 1.5, %v7934_v36  ;;  %v11400_v2 = vsub.f32 1.5, %v7936_v29  ;;  %v11416_v29 = vld [vmem:[#allocation142_spill] sm:$0xff] }
 0x27d   : > { %5170 = vrsqrt.f32 %v8127_v34  ;;  %v4181_v59 = vperm.slane %v7999_v43, %v7890_v19  ;;  %vm10990_vm7 = vcmask 458112   ;;  %v4108_v61 = vperm.slane %v8014_v38, %v8130_v40  ;;  %3625 = vadd.xlane.f32.xlu0 %v3624_v60  ;;  %v3593_v62 = vpop.xlane.xlu1 %3592  ;;  %v8194_v39 = vpop.xlane.xlu0 %1744 }
 0x27e   : > { %v2205_v45 = vmul.f32 %v7778_v49, %v11399_v30  ;;  %v2485_v21 = vmul.f32 %v7797_v11, %v11400_v2  ;;  %vm2636_vm8 = vweird.f32 %v11401_v54  ;;  %v4106_v36 = vsel %vm10991_vm3, %v4104_v44, %v4102_v23  ;;  %v8178_v8 = vpop.eup %5168  ;;  %v11408_v23 = vld [vmem:[#allocation226_spill] sm:$0xff]  ;;  %11409 = vst [vmem:[#allocation103_spill] sm:$0xff] %v8194_v39  ;;  %v11415_v2 = vld [vmem:[#allocation80_spill] sm:$0xff] }
 0x27f   : > { %5172 = vrsqrt.f32 %v8140_v6  ;;  %v3488_v43 = vmul.f32 %v6533_v35, %v3336_v33  ;;  %v11404_v46 = vsub.f32 1.5, %v7964_v9  ;;  %vm11407_vm10 = vcmask 130112   ;;  %v3677_v9 = vpop.xlane.xlu2 %3676  ;;  %v11562_v39 = vld [vmem:[#allocation200_spill] sm:$0xff] }
 0x280   : > { %v4180_v55 = vsel %vm11407_vm10, %v4179_v12, %v4178_v7  ;;  %v8190_v20 = vmax.f32 %v11408_v23, 1e-24  ;;  %vm10987_vm6 = vcmask 523712   ;;  %v3486_v32 = vmul.f32 %v6533_v35, %v3334_v13  ;;  %v11413_v13 = vld [vmem:[#allocation7_spill] sm:$0xff]  ;;  %v11424_v12 = vld [vmem:[#allocation85_spill] sm:$0xff] }
 0x281   : > { %v2495_v38 = vmul.f32 %v7815_v14, %v11404_v46  ;;  %v4112_v44 = vperm.slane %v3593_v62, %v8146_v0  ;;  %v3487_v56 = vmul.f32 %v6533_v35, %v3335_v5  ;;  %v2209_v33 = vsel %vm8168_vm12, %v7778_v49, %v2205_v45  ;;  %v11420_v62 = vld [vmem:[#allocation108_spill] sm:$0xff] }
 0x282   : > { %v2489_v7 = vsel %vm8184_vm4, %v7797_v11, %v2485_v21  ;;  %vm11412_vm0 = vcmask 195712   ;;  %v4110_v25 = vsel %vm10990_vm7, %v4108_v61, %v4106_v36  ;;  %v4183_v41 = vperm.slane %v3677_v9, %v7941_v1  ;;  %vm8256_vm4 = vmor %vm2636_vm8, %vm2637_vm5 }
 0x283   : > { %v4182_v52 = vsel %vm11412_vm0, %v4181_v59, %v4180_v55  ;;  %v3351_v49 = vmul.f32 %v2629_v16, %v11413_v13  ;;  %v8215_v60 = vmax.f32 %v1559_v27, 1e-24  ;;  %v8218_v11 = vsel %vm10987_vm6, %v4112_v44, %v4110_v25  ;;  %v8224_v5 = vpop.eup %5170  ;;  %v11414_v27 = vld [vmem:[#allocation79_spill] sm:$0xff] }
 0x284   : > { %v3708_v26 = vsel %vm1353_vm1, %v3488_v43, 0.0  ;;  %v2499_v50 = vsel %vm8207_vm9, %v7815_v14, %v2495_v38  ;;  %vm2216_vm15 = vweird.f32 %v7793_v28  ;;  %v8228_v30 = vsel %vm10947_vm11, %v4183_v41, %v4182_v52  ;;  %v11418_v38 = vld [vmem:[#allocation87_spill] sm:$0xff] }
 0x285   : > { %v3702_v16 = vsel %vm1353_vm1, %v3486_v32, 0.0  ;;  %v3309_v45 = vmul.f32 %v2209_v33, %v11414_v27  ;;  %v3337_v21 = vmul.f32 %v2489_v7, %v11415_v2  ;;  %v8233_v59 = vpop.eup %5172  ;;  %v2223_v61 = vmul.f32 0.5, %v8080_v53  ;;  %3709 = vadd.xlane.f32.xlu1 %v3708_v26  ;;  %v11419_v53 = vld [vmem:[#allocation93_spill] sm:$0xff]  ;;  %v8263_v44 = vpop.xlane.xlu1 %1846  ;;  %v11425_v27 = vld [vmem:[#allocation102_spill] sm:$0xff] }
 0x286   : > { %5174 = vrsqrt.f32 %v8190_v20  ;;  %3703 = vadd.xlane.f32.xlu2 %v3702_v16  ;;  %v3705_v14 = vsel %vm1353_vm1, %v3487_v56, 0.0  ;;  %v11417_v36 = vsub.f32 1.5, %v11416_v29  ;;  %vm2217_vm14 = vweird.f32 %v7908_v4  ;;  %11423 = vst [vmem:[#allocation201_spill] sm:$0xff] %v8263_v44  ;;  %v1646_v25 = vpop.xlane.xlu0 %1645  ;;  %v11528_v44 = vld [vmem:[#allocation195_spill] sm:$0xff] }
 0x287   : > { %vm2226_vm13 = vweird.f32 %v7850_v31  ;;  %v2503_v46 = vmul.f32 0.5, %v8083_v18  ;;  %3706 = vadd.xlane.f32.xlu0 %v3705_v14  ;;  %v3338_v24 = vmul.f32 %v2499_v50, %v11418_v38  ;;  %vm2617_vm12 = vweird.f32 %v11419_v53  ;;  %v1562_v56 = vpop.xlane.xlu2 %1561  ;;  %vm8300_vm0 = vmor %vm2216_vm15, %vm2217_vm14 }
 0x288   : > { %v2635_v43 = vmul.f32 %v11397_v22, %v11417_v36  ;;  %v2231_v55 = vmul.f32 %v8178_v8, %v8061_v47  ;;  %v2511_v23 = vmul.f32 %v8224_v5, %v8127_v34  ;;  %5176 = vrsqrt.f32 %v8215_v60 }
 0x289   : > { %v3503_v9 = vmul.f32 %v11420_v62, %v3351_v49  ;;  %vm2506_vm10 = vweird.f32 %v7869_v17  ;;  %v2521_v32 = vmul.f32 %v8233_v59, %v8140_v6  ;;  %v3461_v33 = vmul.f32 %v11373_v48, %v3309_v45 }
 0x28a   : > { %v3489_v7 = vmul.f32 %v6533_v35, %v3337_v21  ;;  %vm2616_vm9 = vweird.f32 %v11424_v12  ;;  %v2214_v54 = vsub.f32 1.5, %v8058_v10  ;;  %v2224_v52 = vsub.f32 1.5, %v2223_v61  ;;  %v11427_v61 = vld [vmem:[#allocation10_spill] sm:$0xff] }
 0x28b   : > { %v3490_v41 = vmul.f32 %v11420_v62, %v3338_v24  ;;  %v2639_v13 = vsel %vm8256_vm4, %v11397_v22, %v2635_v43  ;;  %vm2227_vm5 = vweird.f32 %v7969_v15  ;;  %v2504_v49 = vsub.f32 1.5, %v2503_v46  ;;  %vm8357_vm14 = vmor %vm2616_vm9, %vm2617_vm12 }
 0x28c   : > { %vm2507_vm8 = vweird.f32 %v7987_v57  ;;  %v8276_v26 = vmax.f32 %v8088_v37, 1e-24  ;;  %v8278_v35 = vpop.eup %5174  ;;  %v2232_v10 = vmul.f32 %v8178_v8, %v2231_v55  ;;  %v2512_v50 = vmul.f32 %v8224_v5, %v2511_v23  ;;  %vm8314_vm4 = vmor %vm2226_vm13, %vm2227_vm5 }
 0x28d   : > { %v3753_v16 = vsel %vm1353_vm1, %v3503_v9, 0.0  ;;  %v11426_v45 = vsub.f32 1.5, %v11425_v27  ;;  %v2522_v2 = vmul.f32 %v8233_v59, %v2521_v32  ;;  %v3627_v21 = vsel %vm1353_vm1, %v3461_v33, 0.0  ;;  %vm8335_vm15 = vmor %vm2506_vm10, %vm2507_vm8  ;;  %v11436_v27 = vld [vmem:[#allocation101_spill] sm:$0xff] }
 0x28e   : > { %v3711_v37 = vsel %vm1353_vm1, %v3489_v7, 0.0  ;;  %v8292_v14 = vmul.f32 %v2639_v13, %v11427_v61  ;;  %v8294_v29 = vpop.eup %5176  ;;  %3628 = vadd.xlane.f32.xlu1 %v3627_v21  ;;  %v3714_v43 = vsel %vm1353_vm1, %v3490_v41, 0.0  ;;  %v8306_v46 = vadd.s32 4294967232, %v7770_v51  ;;  %v8343_v13 = vpop.xlane.xlu1 %1747 }
 0x28f   : > { %v8286_v22 = vmul.f32 %v11419_v53, %v11426_v45  ;;  %3712 = vadd.xlane.f32.xlu2 %v3711_v37  ;;  %v2215_v38 = vmul.f32 %v7908_v4, %v2214_v54  ;;  %v2225_v24 = vmul.f32 %v7969_v15, %v2224_v52  ;;  %v2241_v55 = vmul.f32 %v8278_v35, %v8190_v20  ;;  %v3599_v17 = vpop.xlane.xlu0 %3598 }
 0x290   : > { %5178 = vrsqrt.f32 %v8276_v26  ;;  %3715 = vadd.xlane.f32.xlu0 %v3714_v43  ;;  %v8322_v23 = vadd.s32 4294967224, %v7770_v51  ;;  %v2505_v9 = vmul.f32 %v7987_v57, %v2504_v49  ;;  %v2233_v18 = vmul.f32 0.5, %v2232_v10  ;;  %11434 = vst [vmem:[#allocation60_spill] sm:$0xff] %v8343_v13  ;;  %v11435_v49 = vld [vmem:[#allocation90_spill] sm:$0xff] }
 0x291   : > { %v2513_v32 = vmul.f32 0.5, %v2512_v50  ;;  %v2219_v31 = vsel %vm8300_vm0, %v7908_v4, %v2215_v38  ;;  %v2229_v33 = vsel %vm8314_vm4, %v7969_v15, %v2225_v24  ;;  %v2523_v54 = vmul.f32 0.5, %v2522_v2  ;;  %v3596_v4 = vpop.xlane.xlu2 %3595  ;;  %v11439_v24 = vld [vmem:[#allocation100_spill] sm:$0xff] }
 0x292   : > { %v2251_v52 = vmul.f32 %v8294_v29, %v8215_v60  ;;  %v8341_v41 = vmax.f32 %v1562_v56, 1e-24  ;;  %v3310_v10 = vmul.f32 %v2219_v31, %v11435_v49  ;;  %v8346_v15 = vmax.f32 %v1646_v25, 1e-24  ;;  %v11441_v31 = vld [vmem:[#allocation111_spill] sm:$0xff] }
 0x293   : > { %v4116_v50 = vperm.slane %v3596_v4, %v8306_v46  ;;  %v3311_v45 = vmul.f32 %v2229_v33, %v11436_v27  ;;  %v2509_v2 = vsel %vm8335_vm15, %v7987_v57, %v2505_v9  ;;  %v2242_v25 = vmul.f32 %v8278_v35, %v2241_v55  ;;  %v11440_v55 = vld [vmem:[#allocation126_spill] sm:$0xff] }
 0x294   : > { %vm10970_vm13 = vcmask 589312   ;;  %v4120_v21 = vperm.slane %v3599_v17, %v8322_v23  ;;  %v3462_v37 = vmul.f32 %v11373_v48, %v3310_v10  ;;  %v2234_v61 = vsub.f32 1.5, %v2233_v18 }
 0x295   : > { %v2514_v36 = vsub.f32 1.5, %v2513_v32  ;;  %vm10948_vm10 = vcmask 654912   ;;  %v2619_v57 = vsel %vm8357_vm14, %v11419_v53, %v8286_v22  ;;  %v2524_v43 = vsub.f32 1.5, %v2523_v54 }
 0x296   : > { %v8368_v12 = vpop.eup %5178  ;;  %v2252_v38 = vmul.f32 %v8294_v29, %v2251_v52  ;;  %5180 = vrsqrt.f32 %v8341_v41  ;;  %v3339_v28 = vmul.f32 %v2509_v2, %v11439_v24  ;;  %vm2657_vm12 = vweird.f32 %v11440_v55  ;;  %3754 = vadd.xlane.f32.xlu1 %v3753_v16  ;;  %v11442_v16 = vld [vmem:[#allocation5_spill] sm:$0xff]  ;;  %v1649_v4 = vpop.xlane.xlu1 %1648  ;;  %v11452_v24 = vld [vmem:[#allocation147_spill] sm:$0xff] }
 0x297   : > { %5182 = vrsqrt.f32 %v8346_v15  ;;  %v4118_v9 = vsel %vm10970_vm13, %v4116_v50, %v8218_v11  ;;  %v3630_v18 = vsel %vm1353_vm1, %v3462_v37, 0.0  ;;  %v3463_v53 = vmul.f32 %v11373_v48, %v3311_v45  ;;  %v8407_v45 = vpop.xlane.xlu0 %1852 }
 0x298   : > { %vm2236_vm9 = vweird.f32 %v8061_v47  ;;  %vm2237_vm5 = vweird.f32 %v8178_v8  ;;  %v2243_v22 = vmul.f32 0.5, %v2242_v25  ;;  %v8382_v32 = vsel %vm10948_vm10, %v4120_v21, %v4118_v9  ;;  %3631 = vadd.xlane.f32.xlu2 %v3630_v18  ;;  %11446 = vst [vmem:[#allocation95_spill] sm:$0xff] %v8407_v45  ;;  %v11454_v9 = vld [vmem:[#allocation137_spill] sm:$0xff] }
 0x299   : > { %vm2656_vm8 = vweird.f32 %v11441_v31  ;;  %v2531_v33 = vmul.f32 %v8368_v12, %v8276_v26  ;;  %v3633_v11 = vsel %vm1353_vm1, %v3463_v53, 0.0  ;;  %v3350_v7 = vmul.f32 %v2619_v57, %v11442_v16  ;;  %v8391_v49 = vpop.xlane.xlu2 %1849  ;;  %vm8400_vm4 = vmor %vm2236_vm9, %vm2237_vm5  ;;  %v11455_v53 = vld [vmem:[#allocation123_spill] sm:$0xff] }
 0x29a   : > { %v2235_v54 = vmul.f32 %v8178_v8, %v2234_v61  ;;  %vm2517_vm0 = vweird.f32 %v8224_v5  ;;  %v2253_v52 = vmul.f32 0.5, %v2252_v38  ;;  %3634 = vadd.xlane.f32.xlu0 %v3633_v11  ;;  %11443 = vst [vmem:[#allocation50_spill] sm:$0xff] %v8391_v49  ;;  %v3491_v10 = vmul.f32 %v11420_v62, %v3339_v28 }
 0x29b   : > { %v3504_v50 = vmul.f32 %v11420_v62, %v8292_v14  ;;  %vm2527_vm15 = vweird.f32 %v8233_v59  ;;  %v8405_v27 = vmax.f32 %v1649_v4, 1e-24  ;;  %v2515_v2 = vmul.f32 %v8224_v5, %v2514_v36  ;;  %v11457_v4 = vld [vmem:[#allocation118_spill] sm:$0xff] }
 0x29c   : > { %v2525_v56 = vmul.f32 %v8233_v59, %v2524_v43  ;;  %v8411_v25 = vpop.eup %5180  ;;  %v8414_v14 = vadd.s32 4294967216, %v7770_v51  ;;  %vm2516_vm14 = vweird.f32 %v8127_v34  ;;  %v2244_v47 = vsub.f32 1.5, %v2243_v22 }
 0x29d   : > { %v2239_v21 = vsel %vm8400_vm4, %v8178_v8, %v2235_v54  ;;  %v8420_v37 = vpop.eup %5182  ;;  %vm8424_vm9 = vmor %vm2516_vm14, %vm2517_vm0  ;;  %vm2526_vm5 = vweird.f32 %v8140_v6  ;;  %v2532_v36 = vmul.f32 %v8368_v12, %v2531_v33  ;;  %5184 = vrsqrt.f32 %v8405_v27  ;;  %v11456_v54 = vld [vmem:[#allocation130_spill] sm:$0xff] }
 0x29e   : > { %11447 = vst [vmem:[#allocation54_spill] sm:$0xff] %v8414_v14  ;;  %v3502_v34 = vmul.f32 %v11420_v62, %v3350_v7  ;;  %vm8434_vm11 = vmor %vm2526_vm5, %vm2527_vm15  ;;  %v2254_v57 = vsub.f32 1.5, %v2253_v52  ;;  %v3717_v43 = vsel %vm1353_vm1, %v3491_v10, 0.0  ;;  %v3756_v38 = vsel %vm1353_vm1, %v3504_v50, 0.0  ;;  %v11458_v50 = vld [vmem:[#allocation145_spill] sm:$0xff] }
 0x29f   : > { %v11453_v28 = vsub.f32 1.5, %v11452_v24  ;;  %vm2667_vm0 = vweird.f32 %v11454_v9  ;;  %v2261_v18 = vmul.f32 %v8411_v25, %v8341_v41  ;;  %3718 = vadd.xlane.f32.xlu1 %v3717_v43  ;;  %v3312_v22 = vmul.f32 %v2239_v21, %v11455_v53  ;;  %v8486_v8 = vpop.xlane.xlu0 %1753  ;;  %v11467_v24 = vld [vmem:[#allocation141_spill] sm:$0xff] }
 0x2a0   : > { %v2519_v33 = vsel %vm8424_vm9, %v8224_v5, %v2515_v2  ;;  %v2529_v11 = vsel %vm8434_vm11, %v8233_v59, %v2525_v56  ;;  %v2245_v16 = vmul.f32 %v8278_v35, %v2244_v47  ;;  %vm2247_vm4 = vweird.f32 %v8278_v35  ;;  %3757 = vadd.xlane.f32.xlu2 %v3756_v38  ;;  %vm8466_vm11 = vmor %vm2656_vm8, %vm2657_vm12  ;;  %v11461_v2 = vld [vmem:[#allocation131_spill] sm:$0xff]  ;;  %11465 = vst [vmem:[#allocation64_spill] sm:$0xff] %v8486_v8  ;;  %v11466_v38 = vld [vmem:[#allocation114_spill] sm:$0xff] }
 0x2a1   : > { %v2655_v6 = vmul.f32 %v11440_v55, %v11453_v28  ;;  %v2541_v7 = vmul.f32 %v8420_v37, %v8346_v15  ;;  %v3340_v52 = vmul.f32 %v2519_v33, %v11456_v54  ;;  %vm2666_vm15 = vweird.f32 %v11457_v4  ;;  %v8473_v47 = vpop.xlane.xlu2 %1750  ;;  %v11474_v59 = vld [vmem:[#allocation152_spill] sm:$0xff] }
 0x2a2   : > { %vm2246_vm14 = vweird.f32 %v8190_v20  ;;  %v2533_v10 = vmul.f32 0.5, %v2532_v36  ;;  %v3750_v5 = vsel %vm1353_vm1, %v3502_v34, 0.0  ;;  %v3341_v17 = vmul.f32 %v2529_v11, %v11458_v50  ;;  %v3602_v20 = vpop.xlane.xlu1 %3601  ;;  %11462 = vst [vmem:[#allocation120_spill] sm:$0xff] %v8473_v47  ;;  %v11471_v11 = vld [vmem:[#allocation240_spill] sm:$0xff] }
 0x2a3   : > { %vm2647_vm9 = vweird.f32 %v11461_v2  ;;  %v2255_v56 = vmul.f32 %v8294_v29, %v2254_v57  ;;  %vm2257_vm5 = vweird.f32 %v8294_v29  ;;  %3751 = vadd.xlane.f32.xlu0 %v3750_v5  ;;  %vm10955_vm10 = vcmask 720512   ;;  %v8476_v61 = vpop.eup %5184  ;;  %vm8480_vm12 = vmor %vm2246_vm14, %vm2247_vm4 }
 0x2a4   : > { %v3464_v21 = vmul.f32 %v11373_v48, %v3312_v22  ;;  %v2262_v36 = vmul.f32 %v8411_v25, %v2261_v18  ;;  %v4124_v34 = vperm.slane %v3602_v20, %v8414_v14  ;;  %v3492_v57 = vmul.f32 %v11420_v62, %v3340_v52  ;;  %v11475_v20 = vld [vmem:[#allocation150_spill] sm:$0xff] }
 0x2a5   : > { %v2659_v43 = vsel %vm8466_vm11, %v11440_v55, %v2655_v6  ;;  %vm2646_vm8 = vweird.f32 %v11466_v38  ;;  %v8494_v28 = vmax.f32 %v11467_v24, 1e-24  ;;  %vm2256_vm4 = vweird.f32 %v8215_v60 }
 0x2a6   : > { %v2542_v53 = vmul.f32 %v8420_v37, %v2541_v7  ;;  %v2249_v18 = vsel %vm8480_vm12, %v8278_v35, %v2245_v16  ;;  %vm8503_vm14 = vmor %vm2256_vm4, %vm2257_vm5  ;;  %v2534_v55 = vsub.f32 1.5, %v2533_v10  ;;  %v2551_v6 = vmul.f32 %v8476_v61, %v8405_v27  ;;  %v11472_v7 = vld [vmem:[#allocation57_spill] sm:$0xff] }
 0x2a7   : > { %11468 = vst [vmem:[#allocation117_spill] sm:$0xff] %v8494_v28  ;;  %v8511_v33 = vsel %vm10955_vm10, %v4124_v34, %v8382_v32  ;;  %v3493_v60 = vmul.f32 %v11420_v62, %v3341_v17  ;;  %v2781_v54 = vmul.f32 %v11472_v7, %v11471_v11  ;;  %v3636_v35 = vsel %vm1353_vm1, %v3464_v21, 0.0  ;;  %v11473_v16 = vld [vmem:[#allocation13_spill] sm:$0xff]  ;;  %v11477_v34 = vld [vmem:[#allocation156_spill] sm:$0xff]  ;;  %vm8541_vm5 = vmor %vm2666_vm15, %vm2667_vm0 }
 0x2a8   : > { %v3354_v52 = vmul.f32 %v2659_v43, %v11473_v16  ;;  %v2259_v10 = vsel %vm8503_vm14, %v8294_v29, %v2255_v56  ;;  %v2263_v5 = vmul.f32 0.5, %v2262_v36  ;;  %3637 = vadd.xlane.f32.xlu1 %v3636_v35  ;;  %v3720_v50 = vsel %vm1353_vm1, %v3492_v57, 0.0  ;;  %v11478_v21 = vld [vmem:[#allocation164_spill] sm:$0xff]  ;;  %v11480_v57 = vld [vmem:[#allocation162_spill] sm:$0xff]  ;;  %vm8576_vm15 = vmor %vm2646_vm8, %vm2647_vm9 }
 0x2a9   : > { %v3313_v32 = vmul.f32 %v2249_v18, %v11474_v59  ;;  %v11476_v31 = vsub.f32 1.5, %v11475_v20  ;;  %v8527_v24 = vmax.f32 %v11477_v34, 1e-24  ;;  %v8530_v45 = vmax.f32 %v11478_v21, 1e-24  ;;  %3721 = vadd.xlane.f32.xlu2 %v3720_v50  ;;  %v11485_v35 = vld [vmem:[#allocation148_spill] sm:$0xff]  ;;  %v1655_v59 = vpop.xlane.xlu0 %1654 }
 0x2aa   : > { %vm2537_vm11 = vweird.f32 %v8368_v12  ;;  %v2543_v43 = vmul.f32 0.5, %v2542_v53  ;;  %v2535_v29 = vmul.f32 %v8368_v12, %v2534_v55  ;;  %v2552_v56 = vmul.f32 %v8476_v61, %v2551_v6  ;;  %v8547_v53 = vpop.xlane.xlu1 %1855  ;;  %v1652_v55 = vpop.xlane.xlu2 %1651  ;;  %v11484_v6 = vld [vmem:[#allocation113_spill] sm:$0xff]  ;;  %v11492_v21 = vld [vmem:[#allocation175_spill] sm:$0xff] }
 0x2ab   : > { %v2665_v17 = vmul.f32 %v11454_v9, %v11476_v31  ;;  %11479 = vst [vmem:[#allocation58_spill] sm:$0xff] %v8530_v45  ;;  %v3723_v36 = vsel %vm1353_vm1, %v3493_v60, 0.0  ;;  %v3314_v18 = vmul.f32 %v2259_v10, %v11480_v57  ;;  %5186 = vrsqrt.f32 %v8494_v28  ;;  %v11493_v57 = vld [vmem:[#allocation15_spill] sm:$0xff] }
 0x2ac   : > { %vm2536_vm12 = vweird.f32 %v8276_v26  ;;  %3724 = vadd.xlane.f32.xlu0 %v3723_v36  ;;  %11483 = vst [vmem:[#allocation67_spill] sm:$0xff] %v8547_v53  ;;  %v3506_v60 = vmul.f32 %v11484_v6, %v3354_v52  ;;  %v11486_v16 = vsub.f32 1.5, %v11485_v35  ;;  %v2264_v50 = vsub.f32 1.5, %v2263_v5  ;;  %v11511_v53 = vld [vmem:[#allocation155_spill] sm:$0xff] }
 0x2ad   : > { %v8553_v4 = vmax.f32 %v1652_v55, 1e-24  ;;  %v3465_v20 = vmul.f32 %v11373_v48, %v3313_v32  ;;  %v2669_v26 = vsel %vm8541_vm5, %v11454_v9, %v2665_v17  ;;  %v8560_v31 = vmul.f32 %v11472_v7, %v2781_v54  ;;  %vm8568_vm0 = vmor %vm2536_vm12, %vm2537_vm11 }
 0x2ae   : > { %v2645_v10 = vmul.f32 %v11461_v2, %v11486_v16  ;;  %5188 = vrsqrt.f32 %v8527_v24  ;;  %v8564_v52 = vadd.s32 4294967208, %v7770_v51  ;;  %v2544_v34 = vsub.f32 1.5, %v2543_v43 }
 0x2af   : > { %5190 = vrsqrt.f32 %v8530_v45  ;;  %v2553_v54 = vmul.f32 0.5, %v2552_v56  ;;  %v3466_v32 = vmul.f32 %v11373_v48, %v3314_v18  ;;  %v2539_v17 = vsel %vm8568_vm0, %v8368_v12, %v2535_v29 }
 0x2b0   : > { %11487 = vst [vmem:[#allocation70_spill] sm:$0xff] %v8564_v52  ;;  %v8586_v36 = vmax.f32 %v11492_v21, 1e-24  ;;  %v3762_v43 = vsel %vm1353_vm1, %v3506_v60, 0.0  ;;  %v3355_v38 = vmul.f32 %v2669_v26, %v11493_v57  ;;  %v2649_v22 = vsel %vm8576_vm15, %v11461_v2, %v2645_v10  ;;  %v11496_v2 = vld [vmem:[#allocation163_spill] sm:$0xff]  ;;  %v11497_v10 = vld [vmem:[#allocation12_spill] sm:$0xff] }
 0x2b1   : > { %v2265_v55 = vmul.f32 %v8411_v25, %v2264_v50  ;;  %vm2267_vm9 = vweird.f32 %v8411_v25  ;;  %5192 = vrsqrt.f32 %v8553_v4  ;;  %3763 = vadd.xlane.f32.xlu1 %v3762_v43  ;;  %v3639_v12 = vsel %vm1353_vm1, %v3465_v20, 0.0  ;;  %v8597_v29 = vpop.eup %5186  ;;  %v3608_v21 = vpop.xlane.xlu0 %3607  ;;  %v11504_v57 = vld [vmem:[#allocation157_spill] sm:$0xff]  ;;  %v11509_v26 = vld [vmem:[#allocation180_spill] sm:$0xff] }
 0x2b2   : > { %11494 = vst [vmem:[#allocation73_spill] sm:$0xff] %v8597_v29  ;;  %v8600_v56 = vadd.s32 4294967200, %v7770_v51  ;;  %v2545_v18 = vmul.f32 %v8420_v37, %v2544_v34  ;;  %vm2547_vm8 = vweird.f32 %v8420_v37  ;;  %3640 = vadd.xlane.f32.xlu2 %v3639_v12  ;;  %v3342_v60 = vmul.f32 %v2539_v17, %v11496_v2  ;;  %v8618_v5 = vpop.xlane.xlu1 %1756 }
 0x2b3   : > { %vm2266_vm4 = vweird.f32 %v8341_v41  ;;  %v2554_v35 = vsub.f32 1.5, %v2553_v54  ;;  %v3642_v16 = vsel %vm1353_vm1, %v3466_v32, 0.0  ;;  %v3353_v50 = vmul.f32 %v2649_v22, %v11497_v10  ;;  %11500 = vst [vmem:[#allocation125_spill] sm:$0xff] %v8618_v5  ;;  %v3605_v41 = vpop.xlane.xlu2 %3604  ;;  %v11510_v32 = vld [vmem:[#allocation77_spill] sm:$0xff] }
 0x2b4   : > { %11495 = vst [vmem:[#allocation61_spill] sm:$0xff] %v8600_v56  ;;  %v8608_v20 = vpop.eup %5188  ;;  %5194 = vrsqrt.f32 %v8586_v36  ;;  %vm8613_vm14 = vmor %vm2266_vm4, %vm2267_vm9  ;;  %vm2546_vm11 = vweird.f32 %v8346_v15  ;;  %3643 = vadd.xlane.f32.xlu0 %v3642_v16  ;;  %v3494_v34 = vmul.f32 %v11420_v62, %v3342_v60  ;;  %v3507_v9 = vmul.f32 %v11484_v6, %v3355_v38  ;;  %v11505_v38 = vld [vmem:[#allocation185_spill] sm:$0xff] }
 0x2b5   : > { %v8622_v54 = vpop.eup %5190  ;;  %vm8626_vm5 = vmor %vm2546_vm11, %vm2547_vm8  ;;  %v8630_v17 = vmax.f32 %v1655_v59, 1e-24  ;;  %vm10950_vm12 = vcmask 786112   ;;  %v4128_v15 = vperm.slane %v3605_v41, %v8564_v52  ;;  %v2269_v43 = vsel %vm8613_vm14, %v8411_v25, %v2265_v55  ;;  %v11507_v55 = vld [vmem:[#allocation143_spill] sm:$0xff]  ;;  %v11508_v16 = vld [vmem:[#allocation161_spill] sm:$0xff] }
 0x2b6   : > { %11501 = vst [vmem:[#allocation65_spill] sm:$0xff] %v8622_v54  ;;  %vm2687_vm0 = vweird.f32 %v11504_v57  ;;  %v8638_v22 = vmax.f32 %v11505_v38, 1e-24  ;;  %vm10949_vm15 = vcmask 851712   ;;  %v4132_v12 = vperm.slane %v3608_v21, %v8600_v56 }
 0x2b7   : > { %v2549_v59 = vsel %vm8626_vm5, %v8420_v37, %v2545_v18  ;;  %v8644_v2 = vpop.eup %5192  ;;  %v2555_v60 = vmul.f32 %v8476_v61, %v2554_v35  ;;  %vm2556_vm9 = vweird.f32 %v8405_v27  ;;  %vm2557_vm8 = vweird.f32 %v8476_v61 }
 0x2b8   : > { %11506 = vst [vmem:[#allocation109_spill] sm:$0xff] %v8638_v22  ;;  %v3505_v25 = vmul.f32 %v11420_v62, %v3353_v50  ;;  %vm2686_vm4 = vweird.f32 %v11507_v55  ;;  %vm2697_vm14 = vweird.f32 %v11508_v16  ;;  %v2561_v10 = vmul.f32 %v8644_v2, %v8553_v4  ;;  %vm8677_vm5 = vmor %vm2556_vm9, %vm2557_vm8 }
 0x2b9   : > { %v4130_v37 = vsel %vm10950_vm12, %v4128_v15, %v8511_v33  ;;  %v3726_v18 = vsel %vm1353_vm1, %v3494_v34, 0.0  ;;  %v3315_v35 = vmul.f32 %v2269_v43, %v11509_v26  ;;  %5196 = vrsqrt.f32 %v8630_v17  ;;  %v11513_v15 = vld [vmem:[#allocation239_spill] sm:$0xff]  ;;  %v11514_v34 = vld [vmem:[#allocation233_spill] sm:$0xff]  ;;  %vm8730_vm8 = vmor %vm2686_vm4, %vm2687_vm0 }
 0x2ba   : > { %v8660_v41 = vsel %vm10949_vm15, %v4132_v12, %v4130_v37  ;;  %3727 = vadd.xlane.f32.xlu1 %v3726_v18  ;;  %v3765_v50 = vsel %vm1353_vm1, %v3507_v9, 0.0  ;;  %v3343_v21 = vmul.f32 %v2549_v59, %v11510_v32  ;;  %v8664_v38 = vpop.eup %5194  ;;  %vm2696_vm11 = vweird.f32 %v11511_v53  ;;  %v11515_v43 = vld [vmem:[#allocation191_spill] sm:$0xff]  ;;  %v11518_v59 = vld [vmem:[#allocation153_spill] sm:$0xff]  ;;  %v8701_v9 = vpop.xlane.xlu0 %1861 }
 0x2bb   : > { %v3112_v49 = vmul.f32 %v11514_v34, %v11513_v15  ;;  %v8671_v26 = vmax.f32 %v11515_v43, 1e-24  ;;  %v2562_v12 = vmul.f32 %v8644_v2, %v2561_v10  ;;  %3766 = vadd.xlane.f32.xlu2 %v3765_v50  ;;  %vm2677_vm15 = vweird.f32 %v11518_v59  ;;  %v11519_v37 = vld [vmem:[#allocation237_spill] sm:$0xff]  ;;  %v11520_v43 = vld [vmem:[#allocation238_spill] sm:$0xff]  ;;  %v1658_v50 = vpop.xlane.xlu1 %1657  ;;  %v8694_v34 = vpop.xlane.xlu2 %1858  ;;  %11523 = vst [vmem:[#allocation7_spill] sm:$0xff] %v8701_v9  ;;  %vm8756_vm0 = vmor %vm2696_vm11, %vm2697_vm14 }
 0x2bc   : > { %v8685_v32 = vmul.f32 0.5, %v8560_v31  ;;  %v3759_v15 = vsel %vm1353_vm1, %v3505_v25, 0.0  ;;  %v2559_v27 = vsel %vm8677_vm5, %v8476_v61, %v2555_v60  ;;  %v2791_v5 = vmul.f32 %v8608_v20, %v8527_v24  ;;  %11521 = vst [vmem:[#allocation226_spill] sm:$0xff] %v8694_v34  ;;  %v11522_v31 = vld [vmem:[#allocation139_spill] sm:$0xff]  ;;  %v11524_v60 = vld [vmem:[#allocation190_spill] sm:$0xff] }
 0x2bd   : > { %v2563_v10 = vmul.f32 0.5, %v2562_v12  ;;  %3760 = vadd.xlane.f32.xlu0 %v3759_v15  ;;  %v3467_v18 = vmul.f32 %v11373_v48, %v3315_v35  ;;  %vm2676_vm9 = vweird.f32 %v11522_v31  ;;  %5198 = vrsqrt.f32 %v8638_v22  ;;  %v11526_v15 = vld [vmem:[#allocation169_spill] sm:$0xff] }
 0x2be   : > { %v8699_v25 = vmax.f32 %v1658_v50, 1e-24  ;;  %v3495_v61 = vmul.f32 %v11420_v62, %v3343_v21  ;;  %v3344_v33 = vmul.f32 %v2559_v27, %v11524_v60  ;;  %v8705_v8 = vmul.f32 0.5, %v3112_v49  ;;  %v11533_v50 = vld [vmem:[#allocation187_spill] sm:$0xff] }
 0x2bf   : > { %5200 = vrsqrt.f32 %v8671_v26  ;;  %v2564_v12 = vsub.f32 1.5, %v2563_v10  ;;  %v11527_v34 = vsub.f32 1.5, %v11526_v15  ;;  %v8711_v35 = vpop.eup %5196  ;;  %v3121_v9 = vmul.f32 %v8597_v29, %v8494_v28 }
 0x2c0   : > { %11525 = vst [vmem:[#allocation79_spill] sm:$0xff] %v8705_v8  ;;  %v8717_v21 = vmax.f32 %v11528_v44, 1e-24  ;;  %5202 = vrsqrt.f32 %v8699_v25  ;;  %v2792_v49 = vmul.f32 %v8608_v20, %v2791_v5  ;;  %v3131_v27 = vmul.f32 %v8622_v54, %v8530_v45  ;;  %v11534_v8 = vld [vmem:[#allocation26_spill] sm:$0xff]  ;;  %v11551_v45 = vld [vmem:[#allocation72_spill] sm:$0xff] }
 0x2c1   : > { %v2685_v48 = vmul.f32 %v11504_v57, %v11527_v34  ;;  %v2801_v34 = vmul.f32 %v8664_v38, %v8586_v36  ;;  %v3645_v10 = vsel %vm1353_vm1, %v3467_v18, 0.0  ;;  %v8735_v44 = vadd.s32 4294967192, %v7770_v51 }
 0x2c2   : > { %11529 = vst [vmem:[#allocation80_spill] sm:$0xff] %v8717_v21  ;;  %vm2567_vm5 = vweird.f32 %v8644_v2  ;;  %3646 = vadd.xlane.f32.xlu1 %v3645_v10  ;;  %v3729_v5 = vsel %vm1353_vm1, %v3495_v61, 0.0  ;;  %v3496_v15 = vmul.f32 %v11420_v62, %v3344_v33  ;;  %vm2727_vm12 = vweird.f32 %v11533_v50  ;;  %v11550_v33 = vld [vmem:[#allocation23_spill] sm:$0xff] }
 0x2c3   : > { %11532 = vst [vmem:[#allocation142_spill] sm:$0xff] %v8735_v44  ;;  %v2565_v18 = vmul.f32 %v8644_v2, %v2564_v12  ;;  %v2571_v55 = vmul.f32 %v8711_v35, %v8630_v17  ;;  %3730 = vadd.xlane.f32.xlu2 %v3729_v5  ;;  %v2689_v28 = vsel %vm8730_vm8, %v11504_v57, %v2685_v48  ;;  %v11535_v47 = vsub.f32 1.5, %v11534_v8  ;;  %v8750_v1 = vpop.eup %5198  ;;  %v11539_v12 = vld [vmem:[#allocation19_spill] sm:$0xff]  ;;  %v11540_v48 = vld [vmem:[#allocation168_spill] sm:$0xff]  ;;  %v3611_v53 = vpop.xlane.xlu1 %3610 }
 0x2c4   : > { %11536 = vst [vmem:[#allocation87_spill] sm:$0xff] %v8750_v1  ;;  %5204 = vrsqrt.f32 %v8717_v21  ;;  %v3732_v61 = vsel %vm1353_vm1, %v3496_v15, 0.0  ;;  %v3357_v57 = vmul.f32 %v2689_v28, %v11539_v12  ;;  %v11541_v8 = vsub.f32 1.5, %v11540_v48  ;;  %v11542_v5 = vld [vmem:[#allocation183_spill] sm:$0xff]  ;;  %v8772_v13 = vpop.xlane.xlu2 %1759 }
 0x2c5   : > { %v2695_v10 = vmul.f32 %v11508_v16, %v11535_v47  ;;  %v8766_v60 = vpop.eup %5200  ;;  %vm2726_vm4 = vweird.f32 %v11542_v5  ;;  %v8769_v42 = vmul.f32 0.5, %v2792_v49  ;;  %vm2566_vm14 = vweird.f32 %v8553_v4  ;;  %3733 = vadd.xlane.f32.xlu0 %v3732_v61  ;;  %11543 = vst [vmem:[#allocation93_spill] sm:$0xff] %v8772_v13  ;;  %v8788_v61 = vpop.xlane.xlu0 %1762  ;;  %v11561_v49 = vld [vmem:[#allocation176_spill] sm:$0xff] }
 0x2c6   : > { %v2675_v47 = vmul.f32 %v11518_v59, %v11541_v8  ;;  %vm10969_vm11 = vcmask 917312   ;;  %v8777_v15 = vpop.eup %5202  ;;  %v3132_v12 = vmul.f32 %v8622_v54, %v3131_v27  ;;  %v2802_v48 = vmul.f32 %v8664_v38, %v2801_v34  ;;  %vm8783_vm8 = vmor %vm2566_vm14, %vm2567_vm5  ;;  %11546 = vst [vmem:[#allocation108_spill] sm:$0xff] %v8788_v61  ;;  %v11549_v27 = vld [vmem:[#allocation171_spill] sm:$0xff] }
 0x2c7   : > { %v2699_v28 = vsel %vm8756_vm0, %v11508_v16, %v2695_v10  ;;  %v4136_v4 = vperm.slane %v3611_v53, %v8735_v44  ;;  %v3509_v8 = vmul.f32 %v11484_v6, %v3357_v57  ;;  %vm8795_vm0 = vmor %vm2676_vm9, %vm2677_vm15  ;;  %vm2707_vm10 = vweird.f32 %v11549_v27 }
 0x2c8   : > { %v2572_v34 = vmul.f32 %v8711_v35, %v2571_v55  ;;  %v2581_v10 = vmul.f32 %v8777_v15, %v8699_v25  ;;  %v3358_v53 = vmul.f32 %v2699_v28, %v11550_v33  ;;  %v2569_v57 = vsel %vm8783_vm8, %v8644_v2, %v2565_v18  ;;  %v11558_v18 = vld [vmem:[#allocation17_spill] sm:$0xff]  ;;  %v11559_v2 = vld [vmem:[#allocation198_spill] sm:$0xff]  ;;  %vm8858_vm14 = vmor %vm2726_vm4, %vm2727_vm12 }
 0x2c9   : > { %v3141_v31 = vmul.f32 %v8750_v1, %v8638_v22  ;;  %v2811_v61 = vmul.f32 %v8766_v60, %v8671_v26  ;;  %v8813_v13 = vsel %vm10969_vm11, %v4136_v4, %v8660_v41  ;;  %v2679_v55 = vsel %vm8795_vm0, %v11518_v59, %v2675_v47  ;;  %v11557_v47 = vld [vmem:[#allocation205_spill] sm:$0xff] }
 0x2ca   : > { %vm2706_vm15 = vweird.f32 %v11551_v45  ;;  %v8820_v28 = vmul.f32 %v8597_v29, %v3121_v9  ;;  %v2582_v22 = vmul.f32 %v8777_v15, %v2581_v10  ;;  %v8827_v54 = vpop.eup %5204  ;;  %v8829_v41 = vmul.f32 0.5, %v3132_v12  ;;  %v11575_v45 = vld [vmem:[#allocation236_spill] sm:$0xff] }
 0x2cb   : > { %11555 = vst [vmem:[#allocation102_spill] sm:$0xff] %v8827_v54  ;;  %v8831_v4 = vmul.f32 0.5, %v2802_v48  ;;  %v3771_v59 = vsel %vm1353_vm1, %v3509_v8, 0.0  ;;  %v3345_v16 = vmul.f32 %v2569_v57, %v11557_v47  ;;  %v2573_v9 = vmul.f32 0.5, %v2572_v34  ;;  %vm2708_vm12 = vmor %vm2706_vm15, %vm2707_vm10 }
 0x2cc   : > { %11552 = vst [vmem:[#allocation85_spill] sm:$0xff] %v8820_v28  ;;  %3772 = vadd.xlane.f32.xlu1 %v3771_v59  ;;  %v3510_v29 = vmul.f32 %v11484_v6, %v3358_v53  ;;  %v3356_v28 = vmul.f32 %v2679_v55, %v11558_v18  ;;  %v11560_v33 = vsub.f32 1.5, %v11559_v2  ;;  %vm2717_vm9 = vweird.f32 %v11561_v49  ;;  %v8851_v18 = vpop.xlane.xlu1 %1864  ;;  %v11564_v59 = vld [vmem:[#allocation167_spill] sm:$0xff] }
 0x2cd   : > { %11556 = vst [vmem:[#allocation10_spill] sm:$0xff] %v8829_v41  ;;  %v3142_v48 = vmul.f32 %v8750_v1, %v3141_v31  ;;  %v2812_v8 = vmul.f32 %v8766_v60, %v2811_v61  ;;  %v8845_v57 = vmax.f32 %v11562_v39, 1e-24  ;;  %v3151_v34 = vmul.f32 %v8827_v54, %v8717_v21  ;;  %v11568_v21 = vld [vmem:[#allocation184_spill] sm:$0xff] }
 0x2ce   : > { %v2725_v10 = vmul.f32 %v11533_v50, %v11560_v33  ;;  %v2583_v53 = vmul.f32 0.5, %v2582_v22  ;;  %v3774_v55 = vsel %vm1353_vm1, %v3510_v29, 0.0  ;;  %v3508_v2 = vmul.f32 %v11484_v6, %v3356_v28  ;;  %11563 = vst [vmem:[#allocation90_spill] sm:$0xff] %v8851_v18  ;;  %v1661_v33 = vpop.xlane.xlu2 %1660  ;;  %v1664_v28 = vpop.xlane.xlu0 %1663  ;;  %v11586_v22 = vld [vmem:[#allocation213_spill] sm:$0xff] }
 0x2cf   : > { %vm2716_vm5 = vweird.f32 %v11564_v59  ;;  %3775 = vadd.xlane.f32.xlu2 %v3774_v55  ;;  %v8865_v31 = vmax.f32 %v1661_v33, 1e-24  ;;  %v3497_v47 = vmul.f32 %v11420_v62, %v3345_v16  ;;  %v2574_v18 = vsub.f32 1.5, %v2573_v9  ;;  %v11585_v55 = vld [vmem:[#allocation189_spill] sm:$0xff] }
 0x2d0   : > { %v2729_v5 = vsel %vm8858_vm14, %v11533_v50, %v2725_v10  ;;  %v11569_v1 = vsub.f32 1.5, %v11568_v21  ;;  %v8875_v41 = vmul.f32 0.5, %v3142_v48  ;;  %5206 = vrsqrt.f32 %v8845_v57  ;;  %v11573_v10 = vld [vmem:[#allocation35_spill] sm:$0xff]  ;;  %vm8933_vm11 = vmor %vm2716_vm5, %vm2717_vm9 }
 0x2d1   : > { %v3768_v16 = vsel %vm1353_vm1, %v3508_v2, 0.0  ;;  %v8881_v29 = vmul.f32 0.5, %v2812_v8  ;;  %v3152_v9 = vmul.f32 %v8827_v54, %v3151_v34  ;;  %v8885_v39 = vadd.s32 4294967184, %v7770_v51  ;;  %v11574_v8 = vld [vmem:[#allocation218_spill] sm:$0xff] }
 0x2d2   : > { %v2705_v61 = vmul.f32 %v11549_v27, %v11569_v1  ;;  %11570 = vst [vmem:[#allocation101_spill] sm:$0xff] %v8875_v41  ;;  %v2584_v50 = vsub.f32 1.5, %v2583_v53  ;;  %3769 = vadd.xlane.f32.xlu0 %v3768_v16  ;;  %5208 = vrsqrt.f32 %v8865_v31  ;;  %v8892_v1 = vmax.f32 %v1664_v28, 1e-24  ;;  %v11594_v41 = vld [vmem:[#allocation30_spill] sm:$0xff] }
 0x2d3   : > { %11572 = vst [vmem:[#allocation100_spill] sm:$0xff] %v8885_v39  ;;  %v3735_v21 = vsel %vm1353_vm1, %v3497_v47, 0.0  ;;  %v3361_v48 = vmul.f32 %v2729_v5, %v11573_v10  ;;  %v8897_v34 = vmax.f32 %v11574_v8, 1e-24  ;;  %v2575_v2 = vmul.f32 %v8711_v35, %v2574_v18  ;;  %v11576_v47 = vld [vmem:[#allocation28_spill] sm:$0xff]  ;;  %v11577_v5 = vld [vmem:[#allocation199_spill] sm:$0xff] }
 0x2d4   : > { %vm2577_vm4 = vweird.f32 %v8711_v35  ;;  %3736 = vadd.xlane.f32.xlu1 %v3735_v21  ;;  %v2709_v53 = vsel %vm2708_vm12, %v11549_v27, %v2705_v61  ;;  %v8903_v16 = vmax.f32 %v11575_v45, 1e-24  ;;  %5210 = vrsqrt.f32 %v8892_v1  ;;  %v8911_v18 = vpop.xlane.xlu1 %3682  ;;  %v11578_v27 = vld [vmem:[#allocation186_spill] sm:$0xff] }
 0x2d5   : > { %v3513_v28 = vmul.f32 %v11484_v6, %v3361_v48  ;;  %v3359_v33 = vmul.f32 %v2709_v53, %v11576_v47  ;;  %vm2737_vm10 = vweird.f32 %v11577_v5  ;;  %vm2576_vm8 = vweird.f32 %v8630_v17  ;;  %v11580_v45 = vld [vmem:[#allocation202_spill] sm:$0xff] }
 0x2d6   : > { %vm2587_vm0 = vweird.f32 %v8777_v15  ;;  %vm10986_vm15 = vcmask 982912   ;;  %v3614_v21 = vpop.xlane.xlu2 %3613  ;;  %v11579_v61 = vsub.f32 1.5, %v11578_v27  ;;  %v8916_v8 = vpop.eup %5206  ;;  %vm2747_vm14 = vweird.f32 %v11580_v45  ;;  %vm8921_vm12 = vmor %vm2576_vm8, %vm2577_vm4 }
 0x2d7   : > { %v2585_v17 = vmul.f32 %v8777_v15, %v2584_v50  ;;  %v3783_v53 = vsel %vm1353_vm1, %v3513_v28, 0.0  ;;  %v3511_v47 = vmul.f32 %v11484_v6, %v3359_v33  ;;  %v4140_v27 = vperm.slane %v3614_v21, %v8885_v39  ;;  %v3680_v12 = vpop.xlane.xlu0 %3679  ;;  %v11588_v28 = vld [vmem:[#allocation88_spill] sm:$0xff] }
 0x2d8   : > { %v2715_v10 = vmul.f32 %v11561_v49, %v11579_v61  ;;  %vm2736_vm4 = vweird.f32 %v11585_v55  ;;  %vm2757_vm8 = vweird.f32 %v11586_v22  ;;  %v8939_v50 = vmul.f32 0.5, %v3152_v9  ;;  %3784 = vadd.xlane.f32.xlu2 %v3783_v53  ;;  %v8946_v59 = vpop.eup %5208  ;;  %v11589_v53 = vld [vmem:[#allocation97_spill] sm:$0xff] }
 0x2d9   : > { %5212 = vrsqrt.f32 %v8897_v34  ;;  %vm2586_vm13 = vweird.f32 %v8699_v25  ;;  %v2579_v33 = vsel %vm8921_vm12, %v8711_v35, %v2575_v2  ;;  %vm2746_vm9 = vweird.f32 %v11588_v28  ;;  %v11595_v2 = vld [vmem:[#allocation220_spill] sm:$0xff] }
 0x2da   : > { %11587 = vst [vmem:[#allocation126_spill] sm:$0xff] %v8939_v50  ;;  %v3777_v21 = vsel %vm1353_vm1, %v3511_v47, 0.0  ;;  %v4142_v54 = vsel %vm10986_vm15, %v4140_v27, %v8813_v13  ;;  %v4185_v9 = vperm.slane %v3680_v12, %v8012_v3  ;;  %v2719_v25 = vsel %vm8933_vm11, %v11561_v49, %v2715_v10  ;;  %vm8963_vm12 = vmor %vm2586_vm13, %vm2587_vm0  ;;  %v8969_v49 = vpop.eup %5210  ;;  %v11592_v10 = vld [vmem:[#allocation31_spill] sm:$0xff]  ;;  %v11593_v27 = vld [vmem:[#allocation204_spill] sm:$0xff] }
 0x2db   : > { %vm2756_vm5 = vweird.f32 %v11589_v53  ;;  %v2821_v35 = vmul.f32 %v8916_v8, %v8845_v57  ;;  %5214 = vrsqrt.f32 %v8903_v16  ;;  %v2591_v13 = vmul.f32 %v8946_v59, %v8865_v31  ;;  %3778 = vadd.xlane.f32.xlu0 %v3777_v21  ;;  %vm9033_vm0 = vmor %vm2746_vm9, %vm2747_vm14  ;;  %v11616_v53 = vld [vmem:[#allocation119_spill] sm:$0xff] }
 0x2dc   : > { %v4186_v12 = vsel %vm10985_vm2, %v4185_v9, %v8228_v30  ;;  %v3360_v47 = vmul.f32 %v2719_v25, %v11592_v10  ;;  %v3346_v61 = vmul.f32 %v2579_v33, %v11593_v27  ;;  %v2589_v48 = vsel %vm8963_vm12, %v8777_v15, %v2585_v17  ;;  %v8998_v3 = vpop.xlane.xlu1 %1765  ;;  %vm9019_vm2 = vmor %vm2736_vm4, %vm2737_vm10 }
 0x2dd   : > { %vm2787_vm13 = vweird.f32 %v11472_v7  ;;  %v8981_v44 = vmax.f32 %v11594_v41, 1e-24  ;;  %v2592_v21 = vmul.f32 %v8946_v59, %v2591_v13  ;;  %v2601_v30 = vmul.f32 %v8969_v49, %v8892_v1  ;;  %11597 = vst [vmem:[#allocation5_spill] sm:$0xff] %v8998_v3  ;;  %vm9046_vm15 = vmor %vm2756_vm5, %vm2757_vm8 }
 0x2de   : > { %v3512_v33 = vmul.f32 %v11484_v6, %v3360_v47  ;;  %v3498_v25 = vmul.f32 %v11420_v62, %v3346_v61  ;;  %v3347_v15 = vmul.f32 %v2589_v48, %v11595_v2  ;;  %vm2786_vm11 = vweird.f32 %v11471_v11  ;;  %v9000_v9 = vpop.xlane.xlu2 %1867  ;;  %v11599_v47 = vld [vmem:[#allocation225_spill] sm:$0xff] }
 0x2df   : > { %v8990_v17 = vpop.eup %5212  ;;  %v2822_v41 = vmul.f32 %v8916_v8, %v2821_v35  ;;  %v8995_v10 = vadd.s32 4294967176, %v7770_v51  ;;  %v2593_v13 = vmul.f32 0.5, %v2592_v21  ;;  %v2602_v27 = vmul.f32 %v8969_v49, %v2601_v30  ;;  %11598 = vst [vmem:[#allocation147_spill] sm:$0xff] %v9000_v9  ;;  %v3617_v50 = vpop.xlane.xlu0 %3616  ;;  %v11600_v35 = vld [vmem:[#allocation214_spill] sm:$0xff]  ;;  %v11602_v30 = vld [vmem:[#allocation209_spill] sm:$0xff] }
 0x2e0   : > { %v3780_v48 = vsel %vm1353_vm1, %v3512_v33, 0.0  ;;  %v3738_v61 = vsel %vm1353_vm1, %v3498_v25, 0.0  ;;  %v3499_v2 = vmul.f32 %v11420_v62, %v3347_v15  ;;  %v11601_v56 = vsub.f32 1.5, %v11600_v35 }
 0x2e1   : > { %11596 = vst [vmem:[#allocation111_spill] sm:$0xff] %v8995_v10  ;;  %v9009_v21 = vpop.eup %5214  ;;  %v9012_v19 = vmax.f32 %v11602_v30, 1e-24  ;;  %5216 = vrsqrt.f32 %v8981_v44  ;;  %v2594_v9 = vsub.f32 1.5, %v2593_v13  ;;  %3781 = vadd.xlane.f32.xlu1 %v3780_v48  ;;  %3739 = vadd.xlane.f32.xlu2 %v3738_v61  ;;  %vm4145_vm12 = vcmask 1048512   ;;  %v11608_v48 = vld [vmem:[#allocation229_spill] sm:$0xff] }
 0x2e2   : > { %v2745_v39 = vmul.f32 %v11580_v45, %v11601_v56  ;;  %v11605_v56 = vld [vmem:[#allocation110_spill] sm:$0xff]  ;;  %v2831_v25 = vmul.f32 %v8990_v17, %v8897_v34  ;;  %vm2597_vm6 = vweird.f32 %v8946_v59  ;;  %v3741_v15 = vsel %vm1353_vm1, %v3499_v2, 0.0  ;;  %v11614_v30 = vld [vmem:[#allocation211_spill] sm:$0xff] }
 0x2e3   : > { %v4144_v13 = vperm.slane %v3617_v50, %v8995_v10  ;;  %vm2777_vm10 = vweird.f32 %v11608_v48  ;;  %v2595_v61 = vmul.f32 %v8946_v59, %v2594_v9  ;;  %vm2596_vm4 = vweird.f32 %v8865_v31  ;;  %3742 = vadd.xlane.f32.xlu0 %v3741_v15  ;;  %v11612_v9 = vld [vmem:[#allocation222_spill] sm:$0xff] }
 0x2e4   : > { %v2603_v35 = vmul.f32 0.5, %v2602_v27  ;;  %v4187_v2 = vperm.slane %v8911_v18, %v8086_v63  ;;  %v2749_v31 = vsel %vm9033_vm0, %v11580_v45, %v2745_v39  ;;  %v11613_v27 = vsub.f32 1.5, %v11612_v9  ;;  %vm9068_vm8 = vmor %vm2596_vm4, %vm2597_vm6  ;;  %v11619_v39 = vld [vmem:[#allocation43_spill] sm:$0xff] }
 0x2e5   : > { %v9051_v28 = vsel %vm4145_vm12, %v4144_v13, %v4142_v54  ;;  %v11615_v15 = vsub.f32 1.5, %v11614_v30  ;;  %vm2776_vm14 = vweird.f32 %v11616_v53  ;;  %5218 = vrsqrt.f32 %v9012_v19 }
 0x2e6   : > { %11611 = vst [vmem:[#allocation137_spill] sm:$0xff] %v9051_v28  ;;  %v2755_v18 = vmul.f32 %v11586_v22, %v11613_v27  ;;  %v2841_v54 = vmul.f32 %v9009_v21, %v8903_v16  ;;  %v3363_v45 = vmul.f32 %v2749_v31, %v11619_v39  ;;  %v4188_v55 = vsel %vm10991_vm3, %v4187_v2, %v4186_v12  ;;  %v11621_v2 = vld [vmem:[#allocation47_spill] sm:$0xff]  ;;  %v3692_v39 = vpop.xlane.xlu1 %3691  ;;  %v3686_v33 = vpop.xlane.xlu2 %3685 }
 0x2e7   : > { %v2735_v3 = vmul.f32 %v11577_v5, %v11615_v15  ;;  %v2599_v30 = vsel %vm9068_vm8, %v8946_v59, %v2595_v61  ;;  %v11620_v15 = vsub.f32 1.5, %v8685_v32  ;;  %v9086_v63 = vpop.eup %5216  ;;  %v2604_v31 = vsub.f32 1.5, %v2603_v35  ;;  %v3689_v61 = vpop.xlane.xlu0 %3688 }
 0x2e8   : > { %v2759_v9 = vsel %vm9046_vm15, %v11586_v22, %v2755_v18  ;;  %v3515_v12 = vmul.f32 %v11484_v6, %v3363_v45  ;;  %v11622_v22 = vld [vmem:[#allocation39_spill] sm:$0xff]  ;;  %vm2797_vm6 = vweird.f32 %v8608_v20  ;;  %v9100_v32 = vmul.f32 0.5, %v2822_v41 }
 0x2e9   : > { %v2739_v27 = vsel %vm9019_vm2, %v11577_v5, %v2735_v3  ;;  %v2785_v28 = vmul.f32 %v11472_v7, %v11620_v15  ;;  %v3364_v50 = vmul.f32 %v2759_v9, %v11621_v2  ;;  %vm9095_vm2 = vmor %vm2786_vm11, %vm2787_vm13  ;;  %v2832_v5 = vmul.f32 %v8990_v17, %v2831_v25  ;;  %v11626_v9 = vld [vmem:[#allocation231_spill] sm:$0xff]  ;;  %v11633_v3 = vld [vmem:[#allocation52_spill] sm:$0xff] }
 0x2ea   : > { %v3362_v18 = vmul.f32 %v2739_v27, %v11622_v22  ;;  %v4189_v59 = vperm.slane %v3686_v33, %v8130_v40  ;;  %v11625_v35 = vsub.f32 1.5, %v11519_v37  ;;  %v3789_v45 = vsel %vm1353_vm1, %v3515_v12, 0.0 }
 0x2eb   : > { %v3516_v11 = vmul.f32 %v11484_v6, %v3364_v50  ;;  %v3348_v27 = vmul.f32 %v2599_v30, %v11626_v9  ;;  %v2789_v41 = vsel %vm9095_vm2, %v11472_v7, %v2785_v28  ;;  %vm2796_vm15 = vweird.f32 %v8527_v24  ;;  %3790 = vadd.xlane.f32.xlu1 %v3789_v45  ;;  %v9120_v2 = vpop.eup %5218  ;;  %v11631_v50 = vld [vmem:[#allocation59_spill] sm:$0xff] }
 0x2ec   : > { %v2765_v13 = vmul.f32 %v11599_v47, %v11625_v35  ;;  %vm2807_vm9 = vweird.f32 %v8664_v38  ;;  %v2842_v25 = vmul.f32 %v9009_v21, %v2841_v54  ;;  %v2851_v37 = vmul.f32 %v9086_v63, %v8981_v44 }
 0x2ed   : > { %v3514_v15 = vmul.f32 %v11484_v6, %v3362_v18  ;;  %v4190_v12 = vsel %vm10990_vm7, %v4189_v59, %v4188_v55  ;;  %vm11627_vm5 = vweird.f32 %v11599_v47  ;;  %vm11628_vm13 = vweird.f32 %v11605_v56 }
 0x2ee   : > { %vm9126_vm11 = vmor %vm11628_vm13, %vm11627_vm5  ;;  %v2605_v28 = vmul.f32 %v8969_v49, %v2604_v31  ;;  %vm2607_vm0 = vweird.f32 %v8969_v49  ;;  %v3792_v54 = vsel %vm1353_vm1, %v3516_v11, 0.0  ;;  %v4191_v30 = vperm.slane %v3689_v61, %v8146_v0  ;;  %v3620_v9 = vpop.xlane.xlu1 %3619  ;;  %v11651_v11 = vld [vmem:[#allocation63_spill] sm:$0xff] }
 0x2ef   : > { %vm2806_vm4 = vweird.f32 %v8586_v36  ;;  %vm2817_vm8 = vweird.f32 %v8766_v60  ;;  %3793 = vadd.xlane.f32.xlu2 %v3792_v54  ;;  %v3786_v55 = vsel %vm1353_vm1, %v3514_v15, 0.0  ;;  %v4193_v56 = vperm.slane %v3692_v39, %v8306_v46  ;;  %vm9153_vm13 = vmor %vm2776_vm14, %vm2777_vm10 }
 0x2f0   : > { %v3367_v22 = vmul.f32 %v2789_v41, %v11631_v50  ;;  %v2769_v31 = vsel %vm9126_vm11, %v11599_v47, %v2765_v13  ;;  %vm2827_vm2 = vweird.f32 %v8916_v8  ;;  %3787 = vadd.xlane.f32.xlu0 %v3786_v55  ;;  %vm11632_vm5 = vcmask 523712   ;;  %v11640_v41 = vld [vmem:[#allocation49_spill] sm:$0xff] }
 0x2f1   : > { %v4192_v18 = vsel %vm11632_vm5, %v4191_v30, %v4190_v12  ;;  %v3500_v33 = vmul.f32 %v11420_v62, %v3348_v27  ;;  %v3365_v59 = vmul.f32 %v2769_v31, %v11633_v3  ;;  %v11634_v61 = vsub.f32 1.5, %v11520_v43  ;;  %v3698_v12 = vpop.xlane.xlu0 %3697  ;;  %v11646_v3 = vld [vmem:[#allocation234_spill] sm:$0xff] }
 0x2f2   : > { %vm2816_vm11 = vweird.f32 %v8671_v26  ;;  %v2824_v47 = vsub.f32 1.5, %v9100_v32  ;;  %v2852_v13 = vmul.f32 %v9086_v63, %v2851_v37  ;;  %vm2606_vm5 = vweird.f32 %v8892_v1  ;;  %v3695_v1 = vpop.xlane.xlu2 %3694 }
 0x2f3   : > { %v2775_v35 = vmul.f32 %v11608_v48, %v11634_v61  ;;  %vm11637_vm7 = vcmask 589312   ;;  %vm2826_vm3 = vweird.f32 %v8845_v57  ;;  %v9165_v45 = vmul.f32 %v9120_v2, %v9012_v19  ;;  %vm9171_vm10 = vmor %vm2606_vm5, %vm2607_vm0  ;;  %v11659_v57 = vld [vmem:[#allocation68_spill] sm:$0xff] }
 0x2f4   : > { %v4194_v43 = vsel %vm11637_vm7, %v4193_v56, %v4192_v18  ;;  %v9167_v53 = vmul.f32 0.5, %v2832_v5  ;;  %v3519_v32 = vmul.f32 %v11484_v6, %v3367_v22  ;;  %v9180_v37 = vmax.f32 %v11640_v41, 1e-24  ;;  %v11641_v56 = vld [vmem:[#allocation55_spill] sm:$0xff]  ;;  %v11642_v22 = vld [vmem:[#allocation37_spill] sm:$0xff]  ;;  %vm2798_vm0 = vmor %vm2796_vm15, %vm2797_vm6 }
 0x2f5   : > { %v2779_v27 = vsel %vm9153_vm13, %v11608_v48, %v2775_v35  ;;  %v3517_v5 = vmul.f32 %v11484_v6, %v3365_v59  ;;  %v4195_v15 = vperm.slane %v3695_v1, %v8322_v23  ;;  %v2609_v7 = vsel %vm9171_vm10, %v8969_v49, %v2605_v28  ;;  %vm9223_vm6 = vmor %vm2806_vm4, %vm2807_vm9  ;;  %v11652_v1 = vld [vmem:[#allocation241_spill] sm:$0xff]  ;;  %v11653_v41 = vld [vmem:[#allocation178_spill] sm:$0xff] }
 0x2f6   : > { %v9187_v54 = vmul.f32 0.5, %v2842_v25  ;;  %v3744_v30 = vsel %vm1353_vm1, %v3500_v33, 0.0  ;;  %v4197_v55 = vperm.slane %v3698_v12, %v8414_v14  ;;  %v3366_v48 = vmul.f32 %v2779_v27, %v11641_v56  ;;  %vm9245_vm15 = vmor %vm2816_vm11, %vm2817_vm8 }
 0x2f7   : > { %vm2837_vm7 = vweird.f32 %v8990_v17  ;;  %v9193_v50 = vmul.f32 0.5, %v2852_v13  ;;  %v9196_v31 = vmax.f32 %v11642_v22, 1e-24  ;;  %3745 = vadd.xlane.f32.xlu1 %v3744_v30  ;;  %vm11643_vm14 = vcmask 654912   ;;  %vm9257_vm9 = vmor %vm2826_vm3, %vm2827_vm2 }
 0x2f8   : > { %v4196_v18 = vsel %vm11643_vm14, %v4195_v15, %v4194_v43  ;;  %v11644_v49 = vsub.f32 1.5, %v8769_v42  ;;  %v3801_v28 = vsel %vm1353_vm1, %v3519_v32, 0.0  ;;  %vm11645_vm13 = vcmask 720512  }
 0x2f9   : > { %v4198_v33 = vsel %vm11645_vm13, %v4197_v55, %v4196_v18  ;;  %v3349_v59 = vmul.f32 %v2609_v7, %v11646_v3  ;;  %v11647_v61 = vsub.f32 1.5, %v8831_v4  ;;  %v2834_v39 = vsub.f32 1.5, %v9167_v53  ;;  %3802 = vadd.xlane.f32.xlu2 %v3801_v28  ;;  %v11661_v28 = vld [vmem:[#allocation103_spill] sm:$0xff]  ;;  %v11667_v4 = vld [vmem:[#allocation121_spill] sm:$0xff] }
 0x2fa   : > { %v2795_v25 = vmul.f32 %v8608_v20, %v11644_v49  ;;  %vm2836_vm5 = vweird.f32 %v8897_v34  ;;  %v3795_v42 = vsel %vm1353_vm1, %v3517_v5, 0.0  ;;  %v11648_v13 = vsub.f32 1.5, %v8881_v29  ;;  %v3623_v30 = vpop.xlane.xlu2 %3622 }
 0x2fb   : > { %v2805_v35 = vmul.f32 %v8664_v38, %v11647_v61  ;;  %5220 = vrsqrt.f32 %v9180_v37  ;;  %3796 = vadd.xlane.f32.xlu0 %v3795_v42  ;;  %v3518_v53 = vmul.f32 %v11484_v6, %v3366_v48  ;;  %v2844_v29 = vsub.f32 1.5, %v9187_v54  ;;  %v3701_v54 = vpop.xlane.xlu1 %3700  ;;  %v3626_v48 = vpop.xlane.xlu0 %3625  ;;  %vm9301_vm13 = vmor %vm2836_vm5, %vm2837_vm7 }
 0x2fc   : > { %v2799_v24 = vsel %vm2798_vm0, %v8608_v20, %v2795_v25  ;;  %v2815_v43 = vmul.f32 %v8766_v60, %v11648_v13  ;;  %v2825_v20 = vmul.f32 %v8916_v8, %v2824_v47  ;;  %v9233_v27 = vmax.f32 %v11652_v1, 1e-24  ;;  %v11660_v25 = vld [vmem:[#allocation115_spill] sm:$0xff] }
 0x2fd   : > { %v3368_v32 = vmul.f32 %v2799_v24, %v11651_v11  ;;  %v9236_v36 = vmax.f32 %v11653_v41, 1e-24  ;;  %v2809_v5 = vsel %vm9223_vm6, %v8664_v38, %v2805_v35  ;;  %v2854_v47 = vsub.f32 1.5, %v9193_v50  ;;  %v11658_v50 = vld [vmem:[#allocation45_spill] sm:$0xff]  ;;  %v11665_v24 = vld [vmem:[#allocation76_spill] sm:$0xff] }
 0x2fe   : > { %5222 = vrsqrt.f32 %v9196_v31  ;;  %v4147_v12 = vperm.slane %v3620_v9, %v7770_v51  ;;  %v3501_v7 = vmul.f32 %v11420_v62, %v3349_v59  ;;  %v4199_v55 = vperm.slane %v3701_v54, %v8564_v52  ;;  %v11760_v52 = vld [vmem:[#allocation50_spill] sm:$0xff] }
 0x2ff   : > { %v3520_v26 = vmul.f32 %v11484_v6, %v3368_v32  ;;  %v4148_v56 = vperm.slane %v3623_v30, %v7839_v58  ;;  %v2819_v62 = vsel %vm9245_vm15, %v8766_v60, %v2815_v43  ;;  %v3798_v9 = vsel %vm1353_vm1, %v3518_v53, 0.0  ;;  %v11666_v43 = vld [vmem:[#allocation104_spill] sm:$0xff] }
 0x300   : > { %v4150_v22 = vperm.slane %v3626_v48, %v11658_v50  ;;  %v3369_v18 = vmul.f32 %v2809_v5, %v11659_v57  ;;  %v2829_v49 = vsel %vm9257_vm9, %v8916_v8, %v2825_v20  ;;  %vm2977_vm3 = vweird.f32 %v11660_v25  ;;  %3799 = vadd.xlane.f32.xlu1 %v3798_v9  ;;  %v11669_v20 = vld [vmem:[#allocation134_spill] sm:$0xff]  ;;  %v11672_v5 = vld [vmem:[#allocation107_spill] sm:$0xff]  ;;  %v11682_v9 = vld [vmem:[#allocation61_spill] sm:$0xff] }
 0x301   : > { %v9275_v3 = vmax.f32 %v11661_v28, 1e-24  ;;  %vm11662_vm4 = vcmask 786112   ;;  %vm11663_vm8 = vcmask 130112   ;;  %v2835_v61 = vmul.f32 %v8990_v17, %v2834_v39  ;;  %v9280_v35 = vpop.eup %5220  ;;  %v11668_v39 = vld [vmem:[#allocation83_spill] sm:$0xff]  ;;  %v11693_v48 = vld [vmem:[#allocation133_spill] sm:$0xff] }
 0x302   : > { %v4200_v59 = vsel %vm11662_vm4, %v4199_v55, %v4198_v33  ;;  %v4149_v60 = vsel %vm11663_vm8, %v4148_v56, %v4147_v12  ;;  %5224 = vrsqrt.f32 %v9233_v27  ;;  %v3747_v42 = vsel %vm1353_vm1, %v3501_v7, 0.0  ;;  %v11673_v12 = vld [vmem:[#allocation116_spill] sm:$0xff] }
 0x303   : > { %vm11664_vm2 = vcmask 195712   ;;  %v3370_v13 = vmul.f32 %v2819_v62, %v11665_v24  ;;  %vm2976_vm11 = vweird.f32 %v11666_v43  ;;  %vm2987_vm10 = vweird.f32 %v11667_v4  ;;  %3748 = vadd.xlane.f32.xlu2 %v3747_v42  ;;  %v11674_v7 = vld [vmem:[#allocation100_spill] sm:$0xff]  ;;  %v3710_v55 = vpop.xlane.xlu1 %3709  ;;  %v3707_v57 = vpop.xlane.xlu0 %3706  ;;  %v11685_v24 = vld [vmem:[#allocation65_spill] sm:$0xff] }
 0x304   : > { %v9285_v8 = vsel %vm11664_vm2, %v4150_v22, %v4149_v60  ;;  %vm2847_vm14 = vweird.f32 %v9009_v21  ;;  %v3804_v33 = vsel %vm1353_vm1, %v3520_v26, 0.0  ;;  %v3371_v53 = vmul.f32 %v2829_v49, %v11668_v39  ;;  %v9294_v32 = vpop.eup %5222  ;;  %v11684_v60 = vld [vmem:[#allocation94_spill] sm:$0xff]  ;;  %v11687_v39 = vld [vmem:[#allocation135_spill] sm:$0xff] }
 0x305   : > { %v2845_v11 = vmul.f32 %v9009_v21, %v2844_v29  ;;  %vm2997_vm0 = vweird.f32 %v11669_v20  ;;  %vm2857_vm6 = vweird.f32 %v9086_v63  ;;  %5226 = vrsqrt.f32 %v9236_v36  ;;  %3805 = vadd.xlane.f32.xlu0 %v3804_v33 }
 0x306   : > { %v3521_v41 = vmul.f32 %v11484_v6, %v3369_v18  ;;  %v2855_v29 = vmul.f32 %v9086_v63, %v2854_v47  ;;  %vm2986_vm15 = vweird.f32 %v11672_v5  ;;  %v3171_v15 = vmul.f32 %v9280_v35, %v9180_v37  ;;  %v11711_v6 = vld [vmem:[#allocation9_spill] sm:$0xff] }
 0x307   : > { %vm2846_vm9 = vweird.f32 %v8903_v16  ;;  %5228 = vrsqrt.f32 %v9275_v3  ;;  %v2839_v34 = vsel %vm9301_vm13, %v8990_v17, %v2835_v61  ;;  %vm2996_vm7 = vweird.f32 %v11673_v12  ;;  %v11679_v16 = vld [vmem:[#allocation127_spill] sm:$0xff]  ;;  %v3704_v17 = vpop.xlane.xlu2 %3703 }
 0x308   : > { %vm9324_vm5 = vmor %vm2846_vm9, %vm2847_vm14  ;;  %vm2856_vm4 = vweird.f32 %v8981_v44  ;;  %v3522_v26 = vmul.f32 %v11679_v16, %v3370_v13  ;;  %v3162_v56 = vmul.f32 %v9120_v2, %v9165_v45  ;;  %v3523_v62 = vmul.f32 %v11679_v16, %v3371_v53  ;;  %v9343_v18 = vpop.eup %5224  ;;  %v11683_v45 = vld [vmem:[#allocation142_spill] sm:$0xff] }
 0x309   : > { %vm9334_vm8 = vmor %vm2856_vm4, %vm2857_vm6  ;;  %v4201_v22 = vperm.slane %v3704_v17, %v11682_v9  ;;  %v2849_v44 = vsel %vm9324_vm5, %v9009_v21, %v2845_v11  ;;  %v3807_v49 = vsel %vm1353_vm1, %v3521_v41, 0.0  ;;  %v4203_v28 = vperm.slane %v3707_v57, %v11683_v45  ;;  %v11745_v9 = vld [vmem:[#allocation22_spill] sm:$0xff] }
 0x30a   : > { %v3372_v61 = vmul.f32 %v2839_v34, %v11684_v60  ;;  %v2859_v42 = vsel %vm9334_vm8, %v9086_v63, %v2855_v29  ;;  %vm3137_vm2 = vweird.f32 %v11685_v24  ;;  %v3172_v13 = vmul.f32 %v9280_v35, %v3171_v15  ;;  %3808 = vadd.xlane.f32.xlu1 %v3807_v49  ;;  %v11690_v34 = vld [vmem:[#allocation112_spill] sm:$0xff]  ;;  %vm9379_vm4 = vmor %vm2976_vm11, %vm2977_vm3 }
 0x30b   : > { %v4205_v33 = vperm.slane %v3710_v55, %v11674_v7  ;;  %vm11686_vm14 = vcmask 851712   ;;  %v11688_v53 = vsub.f32 1.5, %v11687_v39  ;;  %v9358_v1 = vpop.eup %5226  ;;  %v2861_v41 = vmul.f32 %v9294_v32, %v9196_v31  ;;  %v11691_v55 = vld [vmem:[#allocation58_spill] sm:$0xff]  ;;  %v11695_v49 = vld [vmem:[#allocation140_spill] sm:$0xff]  ;;  %v11701_v39 = vld [vmem:[#allocation149_spill] sm:$0xff]  ;;  %v9430_v30 = vpop.xlane.xlu0 %3715 }
 0x30c   : > { %v4202_v21 = vsel %vm11686_vm14, %v4201_v22, %v4200_v59  ;;  %v3810_v63 = vsel %vm1353_vm1, %v3522_v26, 0.0  ;;  %vm11689_vm13 = vcmask 917312   ;;  %v3373_v15 = vmul.f32 %v2849_v44, %v11690_v34  ;;  %v11692_v59 = vld [vmem:[#allocation87_spill] sm:$0xff]  ;;  %vm9407_vm3 = vmor %vm2986_vm15, %vm2987_vm10  ;;  %v11712_v7 = vld [vmem:[#allocation102_spill] sm:$0xff] }
 0x30d   : > { %v2975_v11 = vmul.f32 %v11660_v25, %v11688_v53  ;;  %v4204_v29 = vsel %vm11689_vm13, %v4203_v28, %v4202_v21  ;;  %v9365_v38 = vpop.eup %5228  ;;  %vm3136_vm6 = vweird.f32 %v11691_v55  ;;  %vm3147_vm9 = vweird.f32 %v11692_v59  ;;  %3811 = vadd.xlane.f32.xlu2 %v3810_v63  ;;  %v11699_v28 = vld [vmem:[#allocation144_spill] sm:$0xff]  ;;  %vm9423_vm10 = vmor %vm2996_vm7, %vm2997_vm0 }
 0x30e   : > { %v3813_v17 = vsel %vm1353_vm1, %v3523_v62, 0.0  ;;  %v3374_v22 = vmul.f32 %v2859_v42, %v11693_v48  ;;  %vm11694_vm5 = vcmask 982912   ;;  %v11696_v60 = vsub.f32 1.5, %v11695_v49  ;;  %v11700_v62 = vld [vmem:[#allocation60_spill] sm:$0xff]  ;;  %v11707_v49 = vld [vmem:[#allocation27_spill] sm:$0xff] }
 0x30f   : > { %v4206_v57 = vsel %vm11694_vm5, %v4205_v33, %v4204_v29  ;;  %vm3007_vm8 = vweird.f32 %v11699_v28  ;;  %v9384_v21 = vmul.f32 0.5, %v3162_v56  ;;  %v9387_v42 = vmax.f32 %v11700_v62, 1e-24  ;;  %3814 = vadd.xlane.f32.xlu0 %v3813_v17  ;;  %v11703_v29 = vld [vmem:[#allocation109_spill] sm:$0xff]  ;;  %v3713_v44 = vpop.xlane.xlu2 %3712  ;;  %vm9466_vm5 = vmor %vm3136_vm6, %vm3137_vm2  ;;  %v11728_v55 = vld [vmem:[#allocation120_spill] sm:$0xff] }
 0x310   : > { %v2985_v26 = vmul.f32 %v11667_v4, %v11696_v60  ;;  %v3524_v33 = vmul.f32 %v11679_v16, %v3372_v61  ;;  %v11702_v53 = vsub.f32 1.5, %v11701_v39  ;;  %vm3146_vm14 = vweird.f32 %v11703_v29  ;;  %v11710_v39 = vld [vmem:[#allocation46_spill] sm:$0xff] }
 0x311   : > { %v9394_v43 = vmul.f32 0.5, %v3172_v13  ;;  %v3181_v34 = vmul.f32 %v9343_v18, %v9233_v27  ;;  %v3191_v56 = vmul.f32 %v9358_v1, %v9236_v36  ;;  %v2979_v17 = vsel %vm9379_vm4, %v11660_v25, %v2975_v11  ;;  %v11706_v13 = vld [vmem:[#allocation136_spill] sm:$0xff]  ;;  %v3629_v11 = vpop.xlane.xlu1 %3628  ;;  %vm9492_vm6 = vmor %vm3146_vm14, %vm3147_vm9 }
 0x312   : > { %v2995_v63 = vmul.f32 %v11669_v20, %v11702_v53  ;;  %vm3006_vm11 = vweird.f32 %v11706_v13  ;;  %v2862_v48 = vmul.f32 %v9294_v32, %v2861_v41  ;;  %v9414_v60 = vmax.f32 %v11707_v49, 1e-24 }
 0x313   : > { %v2871_v62 = vmul.f32 %v9365_v38, %v9275_v3  ;;  %v3525_v25 = vmul.f32 %v11679_v16, %v3373_v15  ;;  %v3526_v41 = vmul.f32 %v11679_v16, %v3374_v22  ;;  %v4152_v53 = vperm.slane %v3629_v11, %v11710_v39 }
 0x314   : > { %v4207_v49 = vperm.slane %v3713_v44, %v8995_v10  ;;  %v2989_v15 = vsel %vm9407_vm3, %v11667_v4, %v2985_v26  ;;  %5230 = vrsqrt.f32 %v9387_v42  ;;  %v3816_v12 = vsel %vm1353_vm1, %v3524_v33, 0.0  ;;  %v11715_v26 = vld [vmem:[#allocation10_spill] sm:$0xff]  ;;  %v11718_v10 = vld [vmem:[#allocation80_spill] sm:$0xff]  ;;  %vm9506_vm3 = vmor %vm3006_vm11, %vm3007_vm8 }
 0x315   : > { %v3386_v47 = vmul.f32 %v2979_v17, %v11711_v6  ;;  %v2999_v22 = vsel %vm9423_vm10, %v11669_v20, %v2995_v63  ;;  %vm3157_vm0 = vweird.f32 %v11712_v7  ;;  %v3182_v11 = vmul.f32 %v9343_v18, %v3181_v34  ;;  %3817 = vadd.xlane.f32.xlu1 %v3816_v12  ;;  %v11717_v63 = vld [vmem:[#allocation11_spill] sm:$0xff] }
 0x316   : > { %vm11713_vm15 = vcmask 261312   ;;  %v9446_v4 = vsel %vm4145_vm12, %v4207_v49, %v4206_v57  ;;  %v11716_v61 = vsub.f32 1.5, %v11715_v26  ;;  %v3192_v6 = vmul.f32 %v9358_v1, %v3191_v56  ;;  %v11719_v57 = vld [vmem:[#allocation14_spill] sm:$0xff]  ;;  %v11720_v49 = vld [vmem:[#allocation101_spill] sm:$0xff] }
 0x317   : > { %v4153_v44 = vsel %vm11713_vm15, %v4152_v53, %v9285_v8  ;;  %11714 = vst [vmem:[#allocation123_spill] sm:$0xff] %v9446_v4  ;;  %v2863_v17 = vmul.f32 0.5, %v2862_v48  ;;  %v3819_v20 = vsel %vm1353_vm1, %v3525_v25, 0.0  ;;  %v3387_v5 = vmul.f32 %v2989_v15, %v11717_v63 }
 0x318   : > { %v3135_v33 = vmul.f32 %v11685_v24, %v11716_v61  ;;  %vm3156_vm7 = vweird.f32 %v11718_v10  ;;  %v2872_v34 = vmul.f32 %v9365_v38, %v2871_v62  ;;  %3820 = vadd.xlane.f32.xlu2 %v3819_v20  ;;  %v3822_v8 = vsel %vm1353_vm1, %v3526_v41, 0.0  ;;  %v11722_v61 = vld [vmem:[#allocation146_spill] sm:$0xff]  ;;  %v11725_v62 = vld [vmem:[#allocation129_spill] sm:$0xff] }
 0x319   : > { %v3388_v53 = vmul.f32 %v2999_v22, %v11719_v57  ;;  %v11721_v12 = vsub.f32 1.5, %v11720_v49  ;;  %vm3017_vm13 = vweird.f32 %v11722_v61  ;;  %5232 = vrsqrt.f32 %v9414_v60  ;;  %3823 = vadd.xlane.f32.xlu0 %v3822_v8  ;;  %v11726_v41 = vld [vmem:[#allocation74_spill] sm:$0xff]  ;;  %vm9551_vm15 = vmor %vm3156_vm7, %vm3157_vm0 }
 0x31a   : > { %v3538_v25 = vmul.f32 %v11725_v62, %v3386_v47  ;;  %v11727_v15 = vsub.f32 1.5, %v11726_v41  ;;  %v9477_v63 = vmul.f32 0.5, %v3182_v11  ;;  %v9480_v57 = vmax.f32 %v11728_v55, 1e-24  ;;  %v11729_v8 = vld [vmem:[#allocation138_spill] sm:$0xff]  ;;  %v3632_v55 = vpop.xlane.xlu2 %3631 }
 0x31b   : > { %v3145_v26 = vmul.f32 %v11692_v59, %v11721_v12  ;;  %v3139_v49 = vsel %vm9466_vm5, %v11685_v24, %v3135_v33  ;;  %v9485_v12 = vpop.eup %5230  ;;  %vm3016_vm2 = vweird.f32 %v11729_v8  ;;  %v9496_v11 = vmul.f32 0.5, %v3192_v6  ;;  %v9500_v24 = vpop.xlane.xlu1 %3754  ;;  %v11736_v20 = vld [vmem:[#allocation42_spill] sm:$0xff]  ;;  %v11743_v33 = vld [vmem:[#allocation75_spill] sm:$0xff] }
 0x31c   : > { %v3005_v22 = vmul.f32 %v11699_v28, %v11727_v15  ;;  %v2864_v41 = vsub.f32 1.5, %v2863_v17  ;;  %vm2866_vm4 = vweird.f32 %v9196_v31  ;;  %v3539_v56 = vmul.f32 %v11725_v62, %v3387_v5  ;;  %11732 = vst [vmem:[#allocation130_spill] sm:$0xff] %v9500_v24  ;;  %v11735_v15 = vld [vmem:[#allocation201_spill] sm:$0xff]  ;;  %v11737_v24 = vld [vmem:[#allocation66_spill] sm:$0xff] }
 0x31d   : > { %v9510_v29 = vmul.f32 0.5, %v2872_v34  ;;  %v9513_v6 = vmax.f32 %v11735_v15, 1e-24  ;;  %v3540_v17 = vmul.f32 %v11725_v62, %v3388_v53  ;;  %v3149_v5 = vsel %vm9492_vm6, %v11692_v59, %v3145_v26  ;;  %v11738_v15 = vld [vmem:[#allocation64_spill] sm:$0xff]  ;;  %v3635_v59 = vpop.xlane.xlu0 %3634  ;;  %v11739_v26 = vld [vmem:[#allocation126_spill] sm:$0xff]  ;;  %vm9589_vm6 = vmor %vm3016_vm2, %vm3017_vm13 }
 0x31e   : > { %vm3167_vm9 = vweird.f32 %v9120_v2  ;;  %v3858_v13 = vsel %vm1353_vm1, %v3538_v25, 0.0  ;;  %v4154_v48 = vperm.slane %v3632_v55, %v11736_v20  ;;  %v3402_v4 = vmul.f32 %v3139_v49, %v11737_v24  ;;  %v11742_v49 = vld [vmem:[#allocation228_spill] sm:$0xff] }
 0x31f   : > { %v3009_v34 = vsel %vm9506_vm3, %v11699_v28, %v3005_v22  ;;  %v2881_v53 = vmul.f32 %v9485_v12, %v9387_v42  ;;  %5234 = vrsqrt.f32 %v9480_v57  ;;  %v9530_v47 = vmax.f32 %v11738_v15, 1e-24  ;;  %3859 = vadd.xlane.f32.xlu1 %v3858_v13  ;;  %v9535_v54 = vpop.eup %5232 }
 0x320   : > { %v11740_v25 = vsub.f32 1.5, %v11739_v26  ;;  %vm3166_vm8 = vweird.f32 %v9012_v19  ;;  %v3861_v28 = vsel %vm1353_vm1, %v3539_v56, 0.0  ;;  %vm11741_vm14 = vcmask 326912   ;;  %v11744_v26 = vld [vmem:[#allocation16_spill] sm:$0xff] }
 0x321   : > { %v4155_v22 = vsel %vm11741_vm14, %v4154_v48, %v4153_v44  ;;  %v4156_v24 = vperm.slane %v3635_v59, %v11742_v49  ;;  %v3403_v45 = vmul.f32 %v3149_v5, %v11743_v33  ;;  %v2865_v15 = vmul.f32 %v9294_v32, %v2864_v41  ;;  %3862 = vadd.xlane.f32.xlu2 %v3861_v28  ;;  %v11749_v41 = vld [vmem:[#allocation132_spill] sm:$0xff]  ;;  %v11752_v33 = vld [vmem:[#allocation154_spill] sm:$0xff]  ;;  %vm9634_vm3 = vmor %vm3166_vm8, %vm3167_vm9 }
 0x322   : > { %v3155_v55 = vmul.f32 %v11712_v7, %v11740_v25  ;;  %vm2867_vm11 = vweird.f32 %v9294_v32  ;;  %v3864_v13 = vsel %vm1353_vm1, %v3540_v17, 0.0  ;;  %v3389_v25 = vmul.f32 %v3009_v34, %v11744_v26  ;;  %v11750_v17 = vld [vmem:[#allocation21_spill] sm:$0xff] }
 0x323   : > { %vm3027_vm10 = vweird.f32 %v11745_v9  ;;  %5236 = vrsqrt.f32 %v9513_v6  ;;  %3865 = vadd.xlane.f32.xlu0 %v3864_v13  ;;  %vm11748_vm5 = vcmask 392512   ;;  %v3554_v56 = vmul.f32 %v11749_v41, %v3402_v4  ;;  %vm9577_vm7 = vmor %vm2866_vm4, %vm2867_vm11  ;;  %v3719_v26 = vpop.xlane.xlu1 %3718 }
 0x324   : > { %v9557_v48 = vsel %vm11748_vm5, %v4156_v24, %v4155_v22  ;;  %v11751_v5 = vsub.f32 1.5, %v11750_v17  ;;  %v3201_v59 = vmul.f32 %v9535_v54, %v9414_v60  ;;  %v2882_v10 = vmul.f32 %v9485_v12, %v2881_v53  ;;  %v9597_v17 = vpop.xlane.xlu2 %3757 }
 0x325   : > { %5238 = vrsqrt.f32 %v9530_v47  ;;  %v3159_v28 = vsel %vm9551_vm15, %v11712_v7, %v3155_v55  ;;  %vm3026_vm0 = vweird.f32 %v11752_v33  ;;  %v2874_v53 = vsub.f32 1.5, %v9510_v29  ;;  %v9583_v7 = vpop.eup %5234  ;;  %11757 = vst [vmem:[#allocation118_spill] sm:$0xff] %v9597_v17 }
 0x326   : > { %v3015_v34 = vmul.f32 %v11722_v61, %v11751_v5  ;;  %v3555_v13 = vmul.f32 %v11749_v41, %v3403_v45  ;;  %v4209_v31 = vperm.slane %v9430_v30, %v7770_v51  ;;  %v3541_v44 = vmul.f32 %v11725_v62, %v3389_v25  ;;  %v11758_v5 = vld [vmem:[#allocation78_spill] sm:$0xff]  ;;  %vm9672_vm5 = vmor %vm3026_vm0, %vm3027_vm10 }
 0x327   : > { %v4210_v29 = vperm.slane %v3719_v26, %v7839_v58  ;;  %v2869_v45 = vsel %vm9577_vm7, %v9294_v32, %v2865_v15  ;;  %vm3177_vm4 = vweird.f32 %v9280_v35  ;;  %v3906_v8 = vsel %vm1353_vm1, %v3554_v56, 0.0  ;;  %v9616_v15 = vpop.xlane.xlu0 %3751 }
 0x328   : > { %v3404_v4 = vmul.f32 %v3159_v28, %v11758_v5  ;;  %v3019_v30 = vsel %vm9589_vm6, %v11722_v61, %v3015_v34  ;;  %v11759_v25 = vsub.f32 1.5, %v9384_v21  ;;  %v3202_v22 = vmul.f32 %v9535_v54, %v3201_v59  ;;  %3907 = vadd.xlane.f32.xlu1 %v3906_v8  ;;  %11762 = vst [vmem:[#allocation145_spill] sm:$0xff] %v9616_v15  ;;  %v11763_v61 = vld [vmem:[#allocation125_spill] sm:$0xff] }
 0x329   : > { %v2883_v17 = vmul.f32 0.5, %v2882_v10  ;;  %v9613_v24 = vmax.f32 %v11760_v52, 1e-24  ;;  %vm11761_vm13 = vcmask 130112   ;;  %v9618_v56 = vpop.eup %5236  ;;  %vm3176_vm2 = vweird.f32 %v9180_v37  ;;  %v11764_v10 = vld [vmem:[#allocation158_spill] sm:$0xff] }
 0x32a   : > { %v3165_v26 = vmul.f32 %v9120_v2, %v11759_v25  ;;  %v4211_v32 = vsel %vm11761_vm13, %v4210_v29, %v4209_v31  ;;  %v2891_v21 = vmul.f32 %v9583_v7, %v9480_v57  ;;  %v9624_v34 = vmax.f32 %v11763_v61, 1e-24  ;;  %v11769_v25 = vld [vmem:[#allocation25_spill] sm:$0xff]  ;;  %vm9708_vm13 = vmor %vm3176_vm2, %vm3177_vm4 }
 0x32b   : > { %v3909_v59 = vsel %vm1353_vm1, %v3555_v13, 0.0  ;;  %v3375_v52 = vmul.f32 %v2869_v45, %v11764_v10  ;;  %v9628_v28 = vpop.eup %5238  ;;  %v2875_v31 = vmul.f32 %v9365_v38, %v2874_v53  ;;  %vm2877_vm14 = vweird.f32 %v9365_v38  ;;  %v11767_v13 = vld [vmem:[#allocation18_spill] sm:$0xff]  ;;  %v11768_v45 = vld [vmem:[#allocation165_spill] sm:$0xff] }
 0x32c   : > { %3910 = vadd.xlane.f32.xlu2 %v3909_v59  ;;  %v3867_v29 = vsel %vm1353_vm1, %v3541_v44, 0.0  ;;  %v3390_v8 = vmul.f32 %v3019_v30, %v11767_v13  ;;  %vm3037_vm11 = vweird.f32 %v11768_v45  ;;  %vm2876_vm15 = vweird.f32 %v9275_v3  ;;  %v11771_v3 = vld [vmem:[#allocation69_spill] sm:$0xff]  ;;  %v11776_v13 = vld [vmem:[#allocation86_spill] sm:$0xff] }
 0x32d   : > { %3868 = vadd.xlane.f32.xlu0 %v3867_v29  ;;  %v3556_v19 = vmul.f32 %v11749_v41, %v3404_v4  ;;  %v3169_v5 = vsel %vm9634_vm3, %v9120_v2, %v3165_v26  ;;  %v11770_v53 = vsub.f32 1.5, %v11769_v25  ;;  %v9651_v59 = vmul.f32 0.5, %v3202_v22  ;;  %vm9659_vm8 = vmor %vm2876_vm15, %vm2877_vm14  ;;  %v3722_v29 = vpop.xlane.xlu2 %3721  ;;  %v11778_v4 = vld [vmem:[#allocation95_spill] sm:$0xff] }
 0x32e   : > { %v3211_v44 = vmul.f32 %v9618_v56, %v9513_v6  ;;  %v2884_v30 = vsub.f32 1.5, %v2883_v17  ;;  %5240 = vrsqrt.f32 %v9613_v24  ;;  %vm3036_vm9 = vweird.f32 %v11771_v3  ;;  %v3638_v17 = vpop.xlane.xlu1 %3637 }
 0x32f   : > { %v3025_v61 = vmul.f32 %v11745_v9, %v11770_v53  ;;  %v2892_v2 = vmul.f32 %v9583_v7, %v2891_v21  ;;  %v2901_v22 = vmul.f32 %v9628_v28, %v9530_v47  ;;  %5242 = vrsqrt.f32 %v9624_v34 }
 0x330   : > { %v3527_v26 = vmul.f32 %v11679_v16, %v3375_v52  ;;  %v3542_v55 = vmul.f32 %v11725_v62, %v3390_v8  ;;  %v4158_v21 = vperm.slane %v3638_v17, %v8130_v40  ;;  %v3405_v25 = vmul.f32 %v3169_v5, %v11776_v13  ;;  %v11785_v13 = vld [vmem:[#allocation170_spill] sm:$0xff] }
 0x331   : > { %v2879_v52 = vsel %vm9659_vm8, %v9365_v38, %v2875_v31  ;;  %v3912_v53 = vsel %vm1353_vm1, %v3556_v19, 0.0  ;;  %v4212_v15 = vperm.slane %v3722_v29, %v11658_v50  ;;  %v3029_v33 = vsel %vm9672_vm5, %v11745_v9, %v3025_v61  ;;  %v3725_v19 = vpop.xlane.xlu0 %3724  ;;  %v11781_v61 = vld [vmem:[#allocation173_spill] sm:$0xff] }
 0x332   : > { %v11777_v14 = vsub.f32 1.5, %v9394_v43  ;;  %vm3187_vm10 = vweird.f32 %v9343_v18  ;;  %v2885_v5 = vmul.f32 %v9485_v12, %v2884_v30  ;;  %vm2887_vm0 = vweird.f32 %v9485_v12  ;;  %3913 = vadd.xlane.f32.xlu1 %v3912_v53  ;;  %v11795_v30 = vld [vmem:[#allocation105_spill] sm:$0xff] }
 0x333   : > { %v9694_v38 = vmax.f32 %v11778_v4, 1e-24  ;;  %vm11779_vm7 = vcmask 458112   ;;  %v3825_v9 = vsel %vm1353_vm1, %v3527_v26, 0.0  ;;  %vm11780_vm6 = vcmask 195712  }
 0x334   : > { %v3175_v8 = vmul.f32 %v9280_v35, %v11777_v14  ;;  %v4159_v31 = vsel %vm11779_vm7, %v4158_v21, %v9557_v48  ;;  %v4213_v43 = vsel %vm11780_vm6, %v4212_v15, %v4211_v32  ;;  %v4214_v14 = vperm.slane %v3725_v19, %v11710_v39  ;;  %v9702_v10 = vpop.eup %5240  ;;  %3826 = vadd.xlane.f32.xlu2 %v3825_v9  ;;  %v11784_v15 = vld [vmem:[#allocation20_spill] sm:$0xff]  ;;  %v11789_v19 = vld [vmem:[#allocation93_spill] sm:$0xff]  ;;  %vm9753_vm7 = vmor %vm3036_vm9, %vm3037_vm11 }
 0x335   : > { %v3376_v17 = vmul.f32 %v2879_v52, %v11781_v61  ;;  %vm3186_vm3 = vweird.f32 %v9233_v27  ;;  %v2893_v48 = vmul.f32 0.5, %v2892_v2  ;;  %v2902_v26 = vmul.f32 %v9628_v28, %v2901_v22  ;;  %v9716_v29 = vpop.eup %5242  ;;  %v11787_v22 = vld [vmem:[#allocation179_spill] sm:$0xff]  ;;  %v3641_v61 = vpop.xlane.xlu2 %3640 }
 0x336   : > { %v3870_v32 = vsel %vm1353_vm1, %v3542_v55, 0.0  ;;  %v3391_v21 = vmul.f32 %v3029_v33, %v11784_v15  ;;  %vm3047_vm14 = vweird.f32 %v11785_v13  ;;  %vm11786_vm15 = vcmask 261312  }
 0x337   : > { %3871 = vadd.xlane.f32.xlu0 %v3870_v32  ;;  %v9720_v37 = vsel %vm11786_vm15, %v4214_v14, %v4213_v43  ;;  %v3557_v52 = vmul.f32 %v11749_v41, %v3405_v25  ;;  %v3179_v2 = vsel %vm9708_vm13, %v9280_v35, %v3175_v8  ;;  %v11788_v53 = vsub.f32 1.5, %v11787_v22  ;;  %v11790_v43 = vld [vmem:[#allocation71_spill] sm:$0xff]  ;;  %vm9795_vm13 = vmor %vm3186_vm3, %vm3187_vm10 }
 0x338   : > { %v3204_v33 = vsub.f32 1.5, %v9651_v59  ;;  %v3212_v4 = vmul.f32 %v9618_v56, %v3211_v44  ;;  %vm2886_vm4 = vweird.f32 %v9387_v42  ;;  %v9733_v9 = vmax.f32 %v11789_v19, 1e-24  ;;  %v9747_v59 = vpop.xlane.xlu1 %3763  ;;  %v11799_v19 = vld [vmem:[#allocation82_spill] sm:$0xff] }
 0x339   : > { %v3035_v55 = vmul.f32 %v11768_v45, %v11788_v53  ;;  %vm3046_vm2 = vweird.f32 %v11790_v43  ;;  %vm9738_vm8 = vmor %vm2886_vm4, %vm2887_vm0  ;;  %v3221_v35 = vmul.f32 %v9702_v10, %v9613_v24  ;;  %5244 = vrsqrt.f32 %v9694_v38 }
 0x33a   : > { %vm2897_vm5 = vweird.f32 %v9583_v7  ;;  %v3528_v42 = vmul.f32 %v11679_v16, %v3376_v17  ;;  %v2894_v8 = vsub.f32 1.5, %v2893_v48  ;;  %v3543_v14 = vmul.f32 %v11725_v62, %v3391_v21  ;;  %v11796_v21 = vld [vmem:[#allocation108_spill] sm:$0xff] }
 0x33b   : > { %v3406_v32 = vmul.f32 %v3179_v2, %v11795_v30  ;;  %v2889_v17 = vsel %vm9738_vm8, %v9485_v12, %v2885_v5  ;;  %v9762_v15 = vmul.f32 0.5, %v2902_v26  ;;  %v3915_v22 = vsel %vm1353_vm1, %v3557_v52, 0.0  ;;  %v3644_v12 = vpop.xlane.xlu0 %3643  ;;  %vm9835_vm8 = vmor %vm3046_vm2, %vm3047_vm14 }
 0x33c   : > { %v4160_v3 = vperm.slane %v3641_v61, %v8146_v0  ;;  %v3039_v53 = vsel %vm9753_vm7, %v11768_v45, %v3035_v55  ;;  %vm3197_vm11 = vweird.f32 %v9358_v1  ;;  %v2911_v48 = vmul.f32 %v9716_v29, %v9624_v34  ;;  %3916 = vadd.xlane.f32.xlu1 %v3915_v22 }
 0x33d   : > { %5246 = vrsqrt.f32 %v9733_v9  ;;  %v9774_v2 = vmax.f32 %v11796_v21, 1e-24  ;;  %v11797_v5 = vsub.f32 1.5, %v9477_v63  ;;  %v3828_v52 = vsel %vm1353_vm1, %v3528_v42, 0.0  ;;  %v11800_v63 = vld [vmem:[#allocation24_spill] sm:$0xff]  ;;  %v11801_v42 = vld [vmem:[#allocation181_spill] sm:$0xff] }
 0x33e   : > { %vm11798_vm9 = vcmask 523712   ;;  %v4162_v55 = vperm.slane %v3644_v12, %v8306_v46  ;;  %v3377_v25 = vmul.f32 %v2889_v17, %v11799_v19  ;;  %vm3196_vm0 = vweird.f32 %v9236_v36  ;;  %3829 = vadd.xlane.f32.xlu2 %v3828_v52  ;;  %v11805_v17 = vld [vmem:[#allocation182_spill] sm:$0xff] }
 0x33f   : > { %v3185_v26 = vmul.f32 %v9343_v18, %v11797_v5  ;;  %v4161_v45 = vsel %vm11798_vm9, %v4160_v3, %v4159_v31  ;;  %v2895_v44 = vmul.f32 %v9583_v7, %v2894_v8  ;;  %v3873_v61 = vsel %vm1353_vm1, %v3543_v14, 0.0  ;;  %v9788_v21 = vpop.eup %5244  ;;  %v11813_v31 = vld [vmem:[#allocation122_spill] sm:$0xff]  ;;  %v11817_v5 = vld [vmem:[#allocation89_spill] sm:$0xff] }
 0x340   : > { %v3558_v30 = vmul.f32 %v11749_v41, %v3406_v32  ;;  %v3392_v22 = vmul.f32 %v3039_v53, %v11800_v63  ;;  %vm3057_vm6 = vweird.f32 %v11801_v42  ;;  %v9800_v8 = vmul.f32 %v9535_v54, %v3204_v33  ;;  %3874 = vadd.xlane.f32.xlu0 %v3873_v61 }
 0x341   : > { %v9802_v14 = vmul.f32 0.5, %v3212_v4  ;;  %vm11804_vm15 = vcmask 589312   ;;  %v11806_v3 = vsub.f32 1.5, %v11805_v17  ;;  %v3222_v12 = vmul.f32 %v9702_v10, %v3221_v35  ;;  %v11807_v4 = vld [vmem:[#allocation172_spill] sm:$0xff] }
 0x342   : > { %v9805_v32 = vsel %vm11804_vm15, %v4162_v55, %v4161_v45  ;;  %vm2896_vm10 = vweird.f32 %v9480_v57  ;;  %v2912_v27 = vmul.f32 %v9716_v29, %v2911_v48  ;;  %v3189_v33 = vsel %vm9795_vm13, %v9343_v18, %v3185_v26  ;;  %v11810_v45 = vld [vmem:[#allocation67_spill] sm:$0xff]  ;;  %v3728_v48 = vpop.xlane.xlu1 %3727  ;;  %vm9881_vm15 = vmor %vm3196_vm0, %vm3197_vm11 }
 0x343   : > { %v3045_v53 = vmul.f32 %v11785_v13, %v11806_v3  ;;  %vm3056_vm3 = vweird.f32 %v11807_v4  ;;  %vm9819_vm4 = vmor %vm2896_vm10, %vm2897_vm5  ;;  %v2904_v52 = vsub.f32 1.5, %v9762_v15  ;;  %v9825_v35 = vmax.f32 %v11810_v45, 1e-24  ;;  %v9829_v55 = vpop.eup %5246  ;;  %v11830_v4 = vld [vmem:[#allocation151_spill] sm:$0xff] }
 0x344   : > { %5248 = vrsqrt.f32 %v9774_v2  ;;  %v3529_v57 = vmul.f32 %v11679_v16, %v3377_v25  ;;  %vm3207_vm5 = vweird.f32 %v9535_v54  ;;  %v3918_v15 = vsel %vm1353_vm1, %v3558_v30, 0.0  ;;  %v3767_v25 = vpop.xlane.xlu2 %3766 }
 0x345   : > { %v3544_v26 = vmul.f32 %v11725_v62, %v3392_v22  ;;  %v4216_v19 = vperm.slane %v3728_v48, %v11736_v20  ;;  %v2899_v61 = vsel %vm9819_vm4, %v9583_v7, %v2895_v44  ;;  %v4240_v43 = vperm.slane %v9747_v59, %v7770_v51  ;;  %3919 = vadd.xlane.f32.xlu1 %v3918_v15  ;;  %v9858_v44 = vpop.xlane.xlu0 %3760 }
 0x346   : > { %v4241_v63 = vperm.slane %v3767_v25, %v7839_v58  ;;  %v3407_v17 = vmul.f32 %v3189_v33, %v11813_v31  ;;  %v3049_v30 = vsel %vm9835_vm8, %v11785_v13, %v3045_v53  ;;  %vm3206_vm14 = vweird.f32 %v9414_v60  ;;  %v11822_v25 = vld [vmem:[#allocation196_spill] sm:$0xff]  ;;  %v11824_v31 = vld [vmem:[#allocation5_spill] sm:$0xff]  ;;  %vm9914_vm8 = vmor %vm3056_vm3, %vm3057_vm6 }
 0x347   : > { %v3231_v22 = vmul.f32 %v9788_v21, %v9694_v38  ;;  %v2913_v3 = vmul.f32 0.5, %v2912_v27  ;;  %vm11814_vm2 = vcmask 326912   ;;  %v11815_v59 = vsub.f32 1.5, %v9496_v11  ;;  %v11818_v11 = vld [vmem:[#allocation29_spill] sm:$0xff]  ;;  %vm9944_vm3 = vmor %vm3206_vm14, %vm3207_vm5 }
 0x348   : > { %v4217_v7 = vsel %vm11814_vm2, %v4216_v19, %v9720_v37  ;;  %vm2907_vm7 = vweird.f32 %v9628_v28  ;;  %v3831_v13 = vsel %vm1353_vm1, %v3529_v57, 0.0  ;;  %vm11816_vm9 = vcmask 130112   ;;  %v11819_v19 = vld [vmem:[#allocation193_spill] sm:$0xff] }
 0x349   : > { %v3195_v33 = vmul.f32 %v9358_v1, %v11815_v59  ;;  %v9866_v53 = vsel %vm11816_vm9, %v4241_v63, %v4240_v43  ;;  %v3378_v45 = vmul.f32 %v2899_v61, %v11817_v5  ;;  %v2905_v27 = vmul.f32 %v9628_v28, %v2904_v52  ;;  %3832 = vadd.xlane.f32.xlu2 %v3831_v13 }
 0x34a   : > { %v2921_v37 = vmul.f32 %v9829_v55, %v9733_v9  ;;  %v3876_v48 = vsel %vm1353_vm1, %v3544_v26, 0.0  ;;  %v3393_v18 = vmul.f32 %v3049_v30, %v11818_v11  ;;  %v9874_v15 = vpop.eup %5248  ;;  %vm3067_vm13 = vweird.f32 %v11819_v19 }
 0x34b   : > { %v3214_v52 = vsub.f32 1.5, %v9802_v14  ;;  %5250 = vrsqrt.f32 %v9825_v35  ;;  %3877 = vadd.xlane.f32.xlu0 %v3876_v48  ;;  %v3559_v26 = vmul.f32 %v11749_v41, %v3407_v17  ;;  %v11823_v61 = vsub.f32 1.5, %v11822_v25  ;;  %v11825_v14 = vld [vmem:[#allocation81_spill] sm:$0xff] }
 0x34c   : > { %vm2906_vm10 = vweird.f32 %v9530_v47  ;;  %v2914_v63 = vsub.f32 1.5, %v2913_v3  ;;  %v9893_v36 = vmax.f32 %v11824_v31, 1e-24  ;;  %v3199_v30 = vsel %vm9881_vm15, %v9358_v1, %v3195_v33  ;;  %v3647_v3 = vpop.xlane.xlu1 %3646  ;;  %v3731_v5 = vpop.xlane.xlu2 %3730 }
 0x34d   : > { %v3055_v43 = vmul.f32 %v11801_v42, %v11823_v61  ;;  %vm3066_vm11 = vweird.f32 %v11825_v14  ;;  %v9899_v59 = vmul.f32 0.5, %v3222_v12  ;;  %v3232_v17 = vmul.f32 %v9788_v21, %v3231_v22  ;;  %vm9904_vm0 = vmor %vm2906_vm10, %vm2907_vm7 }
 0x34e   : > { %vm2917_vm4 = vweird.f32 %v9716_v29  ;;  %v3530_v47 = vmul.f32 %v11679_v16, %v3378_v45  ;;  %v2922_v12 = vmul.f32 %v9829_v55, %v2921_v37  ;;  %v3545_v22 = vmul.f32 %v11725_v62, %v3393_v18 }
 0x34f   : > { %v4164_v33 = vperm.slane %v3647_v3, %v8322_v23  ;;  %v2909_v45 = vsel %vm9904_vm0, %v9628_v28, %v2905_v27  ;;  %v3921_v48 = vsel %vm1353_vm1, %v3559_v26, 0.0  ;;  %v4218_v11 = vperm.slane %v3731_v5, %v11742_v49  ;;  %v3734_v27 = vpop.xlane.xlu0 %3733  ;;  %v11836_v3 = vld [vmem:[#allocation32_spill] sm:$0xff] }
 0x350   : > { %v3408_v57 = vmul.f32 %v3199_v30, %v11830_v4  ;;  %v3059_v25 = vsel %vm9914_vm8, %v11801_v42, %v3055_v43  ;;  %v2915_v37 = vmul.f32 %v9716_v29, %v2914_v63  ;;  %v2931_v18 = vmul.f32 %v9874_v15, %v9774_v2  ;;  %3922 = vadd.xlane.f32.xlu1 %v3921_v48  ;;  %v11835_v63 = vld [vmem:[#allocation36_spill] sm:$0xff]  ;;  %vm9992_vm8 = vmor %vm3066_vm11, %vm3067_vm13 }
 0x351   : > { %5252 = vrsqrt.f32 %v9893_v36  ;;  %vm11831_vm6 = vcmask 654912   ;;  %v9938_v26 = vpop.eup %5250  ;;  %vm3216_vm2 = vweird.f32 %v9513_v6  ;;  %v3834_v61 = vsel %vm1353_vm1, %v3530_v47, 0.0  ;;  %v11839_v5 = vld [vmem:[#allocation96_spill] sm:$0xff] }
 0x352   : > { %v9936_v28 = vsel %vm11831_vm6, %v4164_v33, %v9805_v32  ;;  %vm11834_vm7 = vcmask 392512   ;;  %v4220_v32 = vperm.slane %v3734_v27, %v8130_v40  ;;  %v3379_v31 = vmul.f32 %v2909_v45, %v11835_v63  ;;  %3835 = vadd.xlane.f32.xlu2 %v3834_v61  ;;  %v11837_v33 = vld [vmem:[#allocation197_spill] sm:$0xff] }
 0x353   : > { %v4219_v43 = vsel %vm11834_vm7, %v4218_v11, %v4217_v7  ;;  %v2923_v30 = vmul.f32 0.5, %v2922_v12  ;;  %v3879_v13 = vsel %vm1353_vm1, %v3545_v22, 0.0  ;;  %v3394_v60 = vmul.f32 %v3059_v25, %v11836_v3  ;;  %v11842_v11 = vld [vmem:[#allocation33_spill] sm:$0xff] }
 0x354   : > { %v3209_v1 = vsel %vm9944_vm3, %v9535_v54, %v9800_v8  ;;  %vm3077_vm5 = vweird.f32 %v11837_v33  ;;  %v3224_v47 = vsub.f32 1.5, %v9899_v59  ;;  %3880 = vadd.xlane.f32.xlu0 %v3879_v13  ;;  %vm11838_vm14 = vcmask 458112   ;;  %v11841_v54 = vld [vmem:[#allocation226_spill] sm:$0xff] }
 0x355   : > { %v9962_v7 = vsel %vm11838_vm14, %v4220_v32, %v4219_v43  ;;  %v3560_v12 = vmul.f32 %v11749_v41, %v3408_v57  ;;  %v11840_v45 = vsub.f32 1.5, %v11839_v5  ;;  %v3241_v48 = vmul.f32 %v9938_v26, %v9825_v35  ;;  %v3773_v43 = vpop.xlane.xlu1 %3772  ;;  %v11849_v5 = vld [vmem:[#allocation212_spill] sm:$0xff] }
 0x356   : > { %vm2916_vm9 = vweird.f32 %v9624_v34  ;;  %v9972_v8 = vmax.f32 %v11841_v54, 1e-24  ;;  %v2932_v59 = vmul.f32 %v9874_v15, %v2931_v18  ;;  %vm3076_vm15 = vweird.f32 %v11842_v11  ;;  %v11845_v34 = vld [vmem:[#allocation166_spill] sm:$0xff] }
 0x357   : > { %v3065_v22 = vmul.f32 %v11819_v19, %v11840_v45  ;;  %v3215_v4 = vmul.f32 %v9618_v56, %v3214_v52  ;;  %vm3217_vm10 = vweird.f32 %v9618_v56  ;;  %vm9980_vm0 = vmor %vm2916_vm9, %vm2917_vm4  ;;  %v3531_v25 = vmul.f32 %v11679_v16, %v3379_v31  ;;  %v9986_v42 = vpop.eup %5252  ;;  %v11848_v31 = vld [vmem:[#allocation7_spill] sm:$0xff] }
 0x358   : > { %v3409_v27 = vmul.f32 %v3209_v1, %v11845_v34  ;;  %vm3226_vm6 = vweird.f32 %v9613_v24  ;;  %vm3227_vm4 = vweird.f32 %v9702_v10  ;;  %v2924_v18 = vsub.f32 1.5, %v2923_v30  ;;  %vm10025_vm13 = vmor %vm3216_vm2, %vm3217_vm10  ;;  %v11865_v24 = vld [vmem:[#allocation159_spill] sm:$0xff] }
 0x359   : > { %v3546_v61 = vmul.f32 %v11725_v62, %v3394_v60  ;;  %v2919_v32 = vsel %vm9980_vm0, %v9716_v29, %v2915_v37  ;;  %v10002_v63 = vmul.f32 0.5, %v3232_v17  ;;  %v10005_v14 = vmax.f32 %v11848_v31, 1e-24  ;;  %v3776_v37 = vpop.xlane.xlu2 %3775  ;;  %vm10063_vm10 = vmor %vm3076_vm15, %vm3077_vm5 }
 0x35a   : > { %v3924_v13 = vsel %vm1353_vm1, %v3560_v12, 0.0  ;;  %v3069_v3 = vsel %vm9992_vm8, %v11819_v19, %v3065_v22  ;;  %v10012_v30 = vmul.f32 %v9702_v10, %v3224_v47  ;;  %v3242_v60 = vmul.f32 %v9938_v26, %v3241_v48  ;;  %v11852_v48 = vld [vmem:[#allocation38_spill] sm:$0xff]  ;;  %vm10077_vm0 = vmor %vm3226_vm6, %vm3227_vm4 }
 0x35b   : > { %5254 = vrsqrt.f32 %v9972_v8  ;;  %v2933_v1 = vmul.f32 0.5, %v2932_v59  ;;  %3925 = vadd.xlane.f32.xlu1 %v3924_v13  ;;  %v2941_v29 = vmul.f32 %v9986_v42, %v9893_v36  ;;  %v3837_v17 = vsel %vm1353_vm1, %v3531_v25, 0.0  ;;  %v11853_v59 = vld [vmem:[#allocation207_spill] sm:$0xff]  ;;  %v11854_v25 = vld [vmem:[#allocation210_spill] sm:$0xff] }
 0x35c   : > { %v3561_v12 = vmul.f32 %v11749_v41, %v3409_v27  ;;  %v3380_v45 = vmul.f32 %v2919_v32, %v11849_v5  ;;  %v2925_v47 = vmul.f32 %v9829_v55, %v2924_v18  ;;  %vm2927_vm11 = vweird.f32 %v9829_v55  ;;  %3838 = vadd.xlane.f32.xlu2 %v3837_v17  ;;  %v11856_v32 = vld [vmem:[#allocation91_spill] sm:$0xff]  ;;  %v11861_v17 = vld [vmem:[#allocation177_spill] sm:$0xff] }
 0x35d   : > { %v3882_v22 = vsel %vm1353_vm1, %v3546_v61, 0.0  ;;  %v3395_v54 = vmul.f32 %v3069_v3, %v11852_v48  ;;  %vm3087_vm3 = vweird.f32 %v11853_v59  ;;  %v3234_v57 = vsub.f32 1.5, %v10002_v63  ;;  %v3770_v61 = vpop.xlane.xlu0 %3769 }
 0x35e   : > { %5256 = vrsqrt.f32 %v10005_v14  ;;  %3883 = vadd.xlane.f32.xlu0 %v3882_v22  ;;  %v3219_v6 = vsel %vm10025_vm13, %v9618_v56, %v3215_v4  ;;  %v11855_v34 = vsub.f32 1.5, %v11854_v25  ;;  %v10042_v52 = vmul.f32 0.5, %v3242_v60 }
 0x35f   : > { %vm2926_vm2 = vweird.f32 %v9733_v9  ;;  %v2934_v18 = vsub.f32 1.5, %v2933_v1  ;;  %vm2937_vm7 = vweird.f32 %v9874_v15  ;;  %vm3086_vm14 = vweird.f32 %v11856_v32 }
 0x360   : > { %v3075_v27 = vmul.f32 %v11837_v33, %v11855_v34  ;;  %vm10049_vm9 = vmor %vm2926_vm2, %vm2927_vm11  ;;  %v2942_v56 = vmul.f32 %v9986_v42, %v2941_v29  ;;  %v4243_v4 = vperm.slane %v3770_v61, %v11658_v50  ;;  %v3927_v31 = vsel %vm1353_vm1, %v3561_v12, 0.0  ;;  %v3737_v29 = vpop.xlane.xlu1 %3736  ;;  %v11873_v61 = vld [vmem:[#allocation40_spill] sm:$0xff] }
 0x361   : > { %v3532_v9 = vmul.f32 %v11679_v16, %v3380_v45  ;;  %v10057_v13 = vpop.eup %5254  ;;  %v4245_v60 = vperm.slane %v3773_v43, %v11710_v39  ;;  %v3547_v1 = vmul.f32 %v11725_v62, %v3395_v54  ;;  %v3410_v5 = vmul.f32 %v3219_v6, %v11861_v17 }
 0x362   : > { %v2929_v12 = vsel %vm10049_vm9, %v9829_v55, %v2925_v47  ;;  %v4247_v45 = vperm.slane %v3776_v37, %v11736_v20  ;;  %vm11864_vm5 = vcmask 195712   ;;  %v4222_v19 = vperm.slane %v3737_v29, %v8146_v0  ;;  %v11866_v47 = vld [vmem:[#allocation54_spill] sm:$0xff] }
 0x363   : > { %v4244_v43 = vsel %vm11864_vm5, %v4243_v4, %v9866_v53  ;;  %v3079_v22 = vsel %vm10063_vm10, %v11837_v33, %v3075_v27  ;;  %vm3237_vm15 = vweird.f32 %v9788_v21  ;;  %v2935_v55 = vmul.f32 %v9874_v15, %v2934_v18  ;;  %3928 = vadd.xlane.f32.xlu1 %v3927_v31  ;;  %v11872_v27 = vld [vmem:[#allocation230_spill] sm:$0xff]  ;;  %v11874_v4 = vld [vmem:[#allocation41_spill] sm:$0xff] }
 0x364   : > { %v11867_v48 = vperm.slane %v11865_v24, %v11866_v47  ;;  %vm11868_vm8 = vcmask 720512   ;;  %vm11869_vm6 = vcmask 261312   ;;  %v3229_v53 = vsel %vm10077_vm0, %v9702_v10, %v10012_v30  ;;  %v10100_v6 = vpop.eup %5256  ;;  %v10112_v30 = vpop.xlane.xlu2 %3784  ;;  %v11876_v31 = vld [vmem:[#allocation70_spill] sm:$0xff] }
 0x365   : > { %v4246_v37 = vsel %vm11869_vm6, %v4245_v60, %v4244_v43  ;;  %v3840_v33 = vsel %vm1353_vm1, %v3532_v9, 0.0  ;;  %vm11870_vm4 = vcmask 523712   ;;  %vm11871_vm13 = vcmask 326912   ;;  %v11879_v29 = vld [vmem:[#allocation194_spill] sm:$0xff]  ;;  %v3779_v24 = vpop.xlane.xlu0 %3778 }
 0x366   : > { %v4167_v54 = vsel %vm11868_vm8, %v11867_v48, %v9936_v28  ;;  %v10105_v25 = vsel %vm11870_vm4, %v4222_v19, %v9962_v7  ;;  %v4248_v34 = vsel %vm11871_vm13, %v4247_v45, %v4246_v37  ;;  %v3381_v28 = vmul.f32 %v2929_v12, %v11872_v27  ;;  %3841 = vadd.xlane.f32.xlu2 %v3840_v33  ;;  %v11875_v7 = vld [vmem:[#allocation160_spill] sm:$0xff]  ;;  %v11884_v19 = vld [vmem:[#allocation90_spill] sm:$0xff]  ;;  %v11886_v48 = vld [vmem:[#allocation147_spill] sm:$0xff] }
 0x367   : > { %vm3236_vm11 = vweird.f32 %v9694_v38  ;;  %vm2936_vm2 = vweird.f32 %v9774_v2  ;;  %v2943_v18 = vmul.f32 0.5, %v2942_v56  ;;  %v3885_v10 = vsel %vm1353_vm1, %v3547_v1, 0.0  ;;  %v11880_v56 = vld [vmem:[#allocation216_spill] sm:$0xff] }
 0x368   : > { %v3396_v63 = vmul.f32 %v3079_v22, %v11873_v61  ;;  %vm3097_vm9 = vweird.f32 %v11874_v4  ;;  %v11877_v9 = vperm.slane %v11875_v7, %v11876_v31  ;;  %vm11878_vm10 = vcmask 786112   ;;  %3886 = vadd.xlane.f32.xlu0 %v3885_v10  ;;  %vm10136_vm0 = vmor %vm2936_vm2, %vm2937_vm7  ;;  %v11889_v61 = vld [vmem:[#allocation174_spill] sm:$0xff]  ;;  %v11890_v7 = vld [vmem:[#allocation61_spill] sm:$0xff] }
 0x369   : > { %v3562_v60 = vmul.f32 %v11749_v41, %v3410_v5  ;;  %v3411_v17 = vmul.f32 %v3229_v53, %v11879_v29  ;;  %v11881_v12 = vsub.f32 1.5, %v11880_v56  ;;  %v10126_v11 = vmul.f32 %v9788_v21, %v3234_v57  ;;  %v11885_v57 = vld [vmem:[#allocation203_spill] sm:$0xff]  ;;  %vm10156_vm7 = vmor %vm3086_vm14, %vm3087_vm3  ;;  %v3782_v5 = vpop.xlane.xlu1 %3781 }
 0x36a   : > { %v4169_v3 = vsel %vm11878_vm10, %v11877_v9, %v4167_v54  ;;  %v3251_v45 = vmul.f32 %v10057_v13, %v9972_v8  ;;  %v3261_v43 = vmul.f32 %v10100_v6, %v10005_v14  ;;  %v10141_v22 = vmax.f32 %v11884_v19, 1e-24 }
 0x36b   : > { %v3085_v1 = vmul.f32 %v11853_v59, %v11881_v12  ;;  %vm3096_vm5 = vweird.f32 %v11885_v57  ;;  %v10145_v54 = vmax.f32 %v11886_v48, 1e-24  ;;  %v4249_v37 = vperm.slane %v3779_v24, %v11742_v49  ;;  %v11900_v24 = vld [vmem:[#allocation44_spill] sm:$0xff] }
 0x36c   : > { %v3533_v53 = vmul.f32 %v11679_v16, %v3381_v28  ;;  %v2939_v2 = vsel %vm10136_vm0, %v9874_v15, %v2935_v55  ;;  %v3244_v27 = vsub.f32 1.5, %v10042_v52  ;;  %v2944_v10 = vsub.f32 1.5, %v2943_v18  ;;  %v3740_v19 = vpop.xlane.xlu2 %3739  ;;  %v11922_v57 = vld [vmem:[#allocation192_spill] sm:$0xff] }
 0x36d   : > { %v11891_v9 = vperm.slane %v11889_v61, %v11890_v7  ;;  %vm11892_vm8 = vcmask 851712   ;;  %v3548_v29 = vmul.f32 %v11725_v62, %v3396_v63  ;;  %vm11893_vm6 = vcmask 392512   ;;  %v11895_v63 = vld [vmem:[#allocation92_spill] sm:$0xff] }
 0x36e   : > { %v4250_v15 = vsel %vm11893_vm6, %v4249_v37, %v4248_v34  ;;  %v3930_v55 = vsel %vm1353_vm1, %v3562_v60, 0.0  ;;  %v3563_v32 = vmul.f32 %v11749_v41, %v3411_v17  ;;  %v3089_v56 = vsel %vm10156_vm7, %v11853_v59, %v3085_v1  ;;  %v11896_v34 = vld [vmem:[#allocation188_spill] sm:$0xff]  ;;  %v11897_v60 = vld [vmem:[#allocation142_spill] sm:$0xff]  ;;  %vm10195_vm7 = vmor %vm3236_vm11, %vm3237_vm15 }
 0x36f   : > { %v4171_v28 = vsel %vm11892_vm8, %v11891_v9, %v4169_v3  ;;  %v3252_v52 = vmul.f32 %v10057_v13, %v3251_v45  ;;  %v3262_v18 = vmul.f32 %v10100_v6, %v3261_v43  ;;  %5258 = vrsqrt.f32 %v10141_v22  ;;  %3931 = vadd.xlane.f32.xlu1 %v3930_v55  ;;  %v11894_v3 = vld [vmem:[#allocation227_spill] sm:$0xff]  ;;  %v11901_v37 = vld [vmem:[#allocation84_spill] sm:$0xff]  ;;  %vm10236_vm15 = vmor %vm3096_vm5, %vm3097_vm9 }
 0x370   : > { %v3382_v12 = vmul.f32 %v2939_v2, %v11894_v3  ;;  %vm2957_vm3 = vweird.f32 %v11895_v63  ;;  %vm2946_vm14 = vweird.f32 %v9893_v36  ;;  %5260 = vrsqrt.f32 %v10145_v54  ;;  %v11902_v2 = vld [vmem:[#allocation223_spill] sm:$0xff]  ;;  %v11905_v9 = vld [vmem:[#allocation224_spill] sm:$0xff] }
 0x371   : > { %v11898_v17 = vperm.slane %v11896_v34, %v11897_v60  ;;  %vm11899_vm4 = vcmask 917312   ;;  %v3843_v1 = vsel %vm1353_vm1, %v3533_v53, 0.0  ;;  %vm3246_vm13 = vweird.f32 %v9825_v35  ;;  %v11907_v55 = vld [vmem:[#allocation208_spill] sm:$0xff]  ;;  %v11920_v53 = vld [vmem:[#allocation98_spill] sm:$0xff]  ;;  %v11940_v35 = vld [vmem:[#allocation85_spill] sm:$0xff] }
 0x372   : > { %v2945_v45 = vmul.f32 %v9986_v42, %v2944_v10  ;;  %vm2947_vm2 = vweird.f32 %v9986_v42  ;;  %3844 = vadd.xlane.f32.xlu2 %v3843_v1  ;;  %v3888_v43 = vsel %vm1353_vm1, %v3548_v29, 0.0  ;;  %v3397_v48 = vmul.f32 %v3089_v56, %v11900_v24  ;;  %v11908_v56 = vld [vmem:[#allocation100_spill] sm:$0xff] }
 0x373   : > { %v4173_v59 = vsel %vm11899_vm4, %v11898_v17, %v4171_v28  ;;  %vm2956_vm10 = vweird.f32 %v11901_v37  ;;  %vm3107_vm0 = vweird.f32 %v11902_v2  ;;  %3889 = vadd.xlane.f32.xlu0 %v3888_v43  ;;  %v4251_v33 = vperm.slane %v3782_v5, %v8130_v40  ;;  %v3743_v17 = vpop.xlane.xlu0 %3742  ;;  %v11911_v43 = vld [vmem:[#allocation106_spill] sm:$0xff]  ;;  %v11912_v5 = vld [vmem:[#allocation215_spill] sm:$0xff]  ;;  %vm10222_vm6 = vmor %vm2946_vm14, %vm2947_vm2 }
 0x374   : > { %v4224_v10 = vperm.slane %v3740_v19, %v8306_v46  ;;  %v3933_v61 = vsel %vm1353_vm1, %v3563_v32, 0.0  ;;  %v11906_v28 = vsub.f32 1.5, %v11905_v9  ;;  %v11909_v3 = vperm.slane %v11907_v55, %v11908_v56  ;;  %v11923_v9 = vld [vmem:[#allocation217_spill] sm:$0xff] }
 0x375   : > { %vm11910_vm8 = vcmask 982912   ;;  %v4253_v34 = vperm.slane %v10112_v30, %v8146_v0  ;;  %v3534_v1 = vmul.f32 %v11679_v16, %v3382_v12  ;;  %v3239_v32 = vsel %vm10195_vm7, %v9788_v21, %v10126_v11  ;;  %v10230_v21 = vpop.eup %5258 }
 0x376   : > { %v3095_v29 = vmul.f32 %v11874_v4, %v11906_v28  ;;  %v4175_v38 = vsel %vm11910_vm8, %v11909_v3, %v4173_v59  ;;  %vm3106_vm11 = vweird.f32 %v11912_v5  ;;  %vm11915_vm4 = vcmask 458112   ;;  %v10245_v24 = vpop.eup %5260  ;;  %v11924_v28 = vld [vmem:[#allocation111_spill] sm:$0xff]  ;;  %v11927_v59 = vld [vmem:[#allocation34_spill] sm:$0xff] }
 0x377   : > { %v4252_v30 = vsel %vm11915_vm4, %v4251_v33, %v4250_v15  ;;  %vm11916_vm8 = vcmask 589312   ;;  %v4226_v19 = vperm.slane %v3743_v17, %v8322_v23  ;;  %vm4364_vm7 = vcmask 1041409   ;;  %3934 = vadd.xlane.f32.xlu1 %v3933_v61  ;;  %v11931_v61 = vld [vmem:[#allocation48_spill] sm:$0xff] }
 0x378   : > { %v4225_v12 = vsel %vm11916_vm8, %v4224_v10, %v10105_v25  ;;  %v3549_v11 = vmul.f32 %v11725_v62, %v3397_v48  ;;  %vm11919_vm14 = vcmask 523712   ;;  %v2949_v25 = vsel %vm10222_vm6, %v9986_v42, %v2945_v45  ;;  %vm10295_vm6 = vmor %vm2956_vm10, %vm2957_vm3 }
 0x379   : > { %v4254_v15 = vsel %vm11919_vm14, %v4253_v34, %v4252_v30  ;;  %vm4366_vm2 = vcmask 1042434   ;;  %vm2966_vm4 = vweird.f32 %v11920_v53  ;;  %vm11921_vm8 = vcmask 654912   ;;  %v11926_v34 = vld [vmem:[#allocation137_spill] sm:$0xff]  ;;  %vm10319_vm3 = vmor %vm3106_vm11, %vm3107_vm0 }
 0x37a   : > { %v10249_v33 = vsel %vm11921_vm8, %v4226_v19, %v4225_v12  ;;  %v3412_v10 = vmul.f32 %v3239_v32, %v11922_v57  ;;  %v3099_v48 = vsel %vm10236_vm15, %v11874_v4, %v3095_v29  ;;  %v11925_v55 = vperm.slane %v11923_v9, %v11924_v28  ;;  %v11928_v12 = vld [vmem:[#allocation99_spill] sm:$0xff]  ;;  %vm11951_vm14 = vmmov %vm11921_vm8 }
 0x37b   : > { %v3245_v42 = vmul.f32 %v9938_v26, %v3244_v27  ;;  %vm3247_vm9 = vweird.f32 %v9938_v26  ;;  %v3253_v45 = vmul.f32 0.5, %v3252_v52  ;;  %v3846_v32 = vsel %vm1353_vm1, %v3534_v1, 0.0  ;;  %v11930_v19 = vld [vmem:[#allocation123_spill] sm:$0xff] }
 0x37c   : > { %v4177_v3 = vsel %vm4145_vm12, %v11925_v55, %v4175_v38  ;;  %v3383_v30 = vmul.f32 %v2949_v25, %v11927_v59  ;;  %v11929_v4 = vsub.f32 1.5, %v11928_v12  ;;  %v10271_v38 = vmul.f32 0.5, %v3262_v18  ;;  %3847 = vadd.xlane.f32.xlu2 %v3846_v32  ;;  %v11932_v1 = vld [vmem:[#allocation79_spill] sm:$0xff]  ;;  %v11933_v25 = vld [vmem:[#allocation233_spill] sm:$0xff]  ;;  %vm10283_vm15 = vmor %vm3246_vm13, %vm3247_vm9  ;;  %v3791_v18 = vpop.xlane.xlu1 %3790 }
 0x37d   : > { %v4365_v17 = vsel %vm4364_vm7, %v4177_v3, %v11926_v34  ;;  %v3271_v27 = vmul.f32 %v10230_v21, %v10141_v22  ;;  %v3891_v52 = vsel %vm1353_vm1, %v3549_v11, 0.0  ;;  %v3398_v57 = vmul.f32 %v3099_v48, %v11931_v61  ;;  %v11936_v34 = vld [vmem:[#allocation235_spill] sm:$0xff] }
 0x37e   : > { %v2955_v29 = vmul.f32 %v11895_v63, %v11929_v4  ;;  %v10269_v36 = vsel %vm4366_vm2, %v11930_v19, %v4365_v17  ;;  %v3114_v9 = vsub.f32 1.5, %v11932_v1  ;;  %vm3117_vm5 = vweird.f32 %v11933_v25  ;;  %3892 = vadd.xlane.f32.xlu0 %v3891_v52  ;;  %v3794_v4 = vpop.xlane.xlu2 %3793  ;;  %v11941_v52 = vld [vmem:[#allocation128_spill] sm:$0xff]  ;;  %v11949_v17 = vld [vmem:[#allocation6_spill] sm:$0xff] }
 0x37f   : > { %v3564_v3 = vmul.f32 %v11749_v41, %v3412_v10  ;;  %v11937_v11 = vsub.f32 1.5, %v11936_v34  ;;  %v10300_v32 = vmul.f32 0.5, %v11940_v35  ;;  %v3254_v59 = vsub.f32 1.5, %v3253_v45  ;;  %v11945_v34 = vld [vmem:[#allocation206_spill] sm:$0xff] }
 0x380   : > { %v3281_v12 = vmul.f32 %v10245_v24, %v10145_v54  ;;  %v3249_v10 = vsel %vm10283_vm15, %v9938_v26, %v3245_v42  ;;  %vm3256_vm13 = vweird.f32 %v9972_v8  ;;  %v3535_v37 = vmul.f32 %v11679_v16, %v3383_v30  ;;  %v3788_v30 = vpop.xlane.xlu0 %3787 }
 0x381   : > { %v3105_v48 = vmul.f32 %v11902_v2, %v11937_v11  ;;  %v2959_v19 = vsel %vm10295_vm6, %v11895_v63, %v2955_v29  ;;  %v11942_v61 = vsub.f32 1.5, %v11941_v52  ;;  %vm3257_vm10 = vweird.f32 %v10057_v13 }
 0x382   : > { %v3264_v26 = vsub.f32 1.5, %v10271_v38  ;;  %v3272_v42 = vmul.f32 %v10230_v21, %v3271_v27  ;;  %v3550_v63 = vmul.f32 %v11725_v62, %v3398_v57  ;;  %v4255_v29 = vperm.slane %v3788_v30, %v8306_v46  ;;  %vm10359_vm2 = vmor %vm3256_vm13, %vm3257_vm10 }
 0x383   : > { %v2965_v45 = vmul.f32 %v11911_v43, %v11942_v61  ;;  %v3936_v55 = vsel %vm1353_vm1, %v3564_v3, 0.0  ;;  %v3413_v11 = vmul.f32 %v3249_v10, %v11945_v34  ;;  %v3109_v5 = vsel %vm10319_vm3, %v11902_v2, %v3105_v48 }
 0x384   : > { %vm11946_vm0 = vweird.f32 %v11911_v43  ;;  %v3255_v27 = vmul.f32 %v10057_v13, %v3254_v59  ;;  %v3282_v57 = vmul.f32 %v10245_v24, %v3281_v12  ;;  %v4257_v3 = vperm.slane %v3791_v18, %v8322_v23  ;;  %3937 = vadd.xlane.f32.xlu1 %v3936_v55  ;;  %v11952_v12 = vld [vmem:[#allocation53_spill] sm:$0xff]  ;;  %v11959_v55 = vld [vmem:[#allocation8_spill] sm:$0xff] }
 0x385   : > { %vm10337_vm11 = vmor %vm2966_vm4, %vm11946_vm0  ;;  %v3384_v35 = vmul.f32 %v2959_v19, %v11949_v17  ;;  %v4259_v10 = vperm.slane %v3794_v4, %v11866_v47  ;;  %vm11950_vm7 = vcmask 589312   ;;  %v3849_v48 = vsel %vm1353_vm1, %v3535_v37, 0.0  ;;  %v11961_v17 = vld [vmem:[#allocation219_spill] sm:$0xff] }
 0x386   : > { %v4256_v2 = vsel %vm11950_vm7, %v4255_v29, %v4254_v15  ;;  %v2969_v53 = vsel %vm10337_vm11, %v11911_v43, %v2965_v45  ;;  %3850 = vadd.xlane.f32.xlu2 %v3849_v48  ;;  %v3894_v59 = vsel %vm1353_vm1, %v3550_v63, 0.0  ;;  %v3399_v18 = vmul.f32 %v3109_v5, %v11952_v12  ;;  %v3746_v43 = vpop.xlane.xlu1 %3745  ;;  %v11956_v45 = vld [vmem:[#allocation124_spill] sm:$0xff]  ;;  %v3803_v63 = vpop.xlane.xlu2 %3802 }
 0x387   : > { %v4258_v52 = vsel %vm11951_vm14, %v4257_v3, %v4256_v2  ;;  %v3115_v61 = vmul.f32 %v11933_v25, %v3114_v9  ;;  %v3273_v4 = vmul.f32 0.5, %v3272_v42  ;;  %3895 = vadd.xlane.f32.xlu0 %v3894_v59  ;;  %vm11955_vm4 = vcmask 720512  }
 0x388   : > { %v4260_v37 = vsel %vm11955_vm4, %v4259_v10, %v4258_v52  ;;  %v3565_v19 = vmul.f32 %v11749_v41, %v3413_v11  ;;  %vm3116_vm8 = vweird.f32 %v11956_v45  ;;  %v3283_v1 = vmul.f32 0.5, %v3282_v57  ;;  %vm11960_vm6 = vmmov %vm11955_vm4  ;;  %v3797_v5 = vpop.xlane.xlu0 %3796  ;;  %v11962_v10 = vld [vmem:[#allocation117_spill] sm:$0xff] }
 0x389   : > { %v4228_v9 = vperm.slane %v3746_v43, %v11866_v47  ;;  %v3259_v8 = vsel %vm10359_vm2, %v10057_v13, %v3255_v27  ;;  %vm10372_vm9 = vmor %vm3116_vm8, %vm3117_vm5  ;;  %v3124_v42 = vsub.f32 1.5, %v10300_v32  ;;  %vm3267_vm15 = vweird.f32 %v10100_v6  ;;  %v11968_v43 = vld [vmem:[#allocation130_spill] sm:$0xff] }
 0x38a   : > { %v3536_v29 = vmul.f32 %v11679_v16, %v3384_v35  ;;  %v3385_v34 = vmul.f32 %v2969_v53, %v11959_v55  ;;  %v3265_v11 = vmul.f32 %v10100_v6, %v3264_v26  ;;  %v3551_v38 = vmul.f32 %v11725_v62, %v3399_v18  ;;  %v11963_v26 = vld [vmem:[#allocation73_spill] sm:$0xff]  ;;  %v11965_v53 = vld [vmem:[#allocation56_spill] sm:$0xff] }
 0x38b   : > { %v4229_v13 = vsel %vm11960_vm6, %v4228_v9, %v10249_v33  ;;  %v3119_v27 = vsel %vm10372_vm9, %v11933_v25, %v3115_v61  ;;  %v3274_v32 = vsub.f32 1.5, %v3273_v4  ;;  %v4261_v57 = vperm.slane %v3797_v5, %v11876_v31  ;;  %v11975_v5 = vld [vmem:[#allocation221_spill] sm:$0xff] }
 0x38c   : > { %v3939_v3 = vsel %vm1353_vm1, %v3565_v19, 0.0  ;;  %v3414_v35 = vmul.f32 %v3259_v8, %v11961_v17  ;;  %vm3126_vm5 = vweird.f32 %v11962_v10  ;;  %vm3127_vm13 = vweird.f32 %v11963_v26 }
 0x38d   : > { %vm3266_vm3 = vweird.f32 %v10005_v14  ;;  %v3284_v33 = vsub.f32 1.5, %v3283_v1  ;;  %3940 = vadd.xlane.f32.xlu1 %v3939_v3  ;;  %vm11964_vm10 = vcmask 786112   ;;  %v3852_v48 = vsel %vm1353_vm1, %v3536_v29, 0.0  ;;  %vm10422_vm4 = vmor %vm3126_vm5, %vm3127_vm13  ;;  %v11971_v1 = vld [vmem:[#allocation145_spill] sm:$0xff]  ;;  %v11977_v3 = vld [vmem:[#allocation118_spill] sm:$0xff] }
 0x38e   : > { %v4262_v2 = vsel %vm11964_vm10, %v4261_v57, %v4260_v37  ;;  %v3537_v25 = vmul.f32 %v11679_v16, %v3385_v34  ;;  %v3400_v52 = vmul.f32 %v3119_v27, %v11965_v53  ;;  %vm10399_vm0 = vmor %vm3266_vm3, %vm3267_vm15  ;;  %vm3276_vm11 = vweird.f32 %v10141_v22  ;;  %3853 = vadd.xlane.f32.xlu2 %v3852_v48  ;;  %v3800_v16 = vpop.xlane.xlu1 %3799  ;;  %v3749_v8 = vpop.xlane.xlu2 %3748 }
 0x38f   : > { %vm3277_vm7 = vweird.f32 %v10230_v21  ;;  %v3897_v14 = vsel %vm1353_vm1, %v3551_v38, 0.0  ;;  %v3125_v12 = vmul.f32 %v11963_v26, %v3124_v42  ;;  %v3275_v18 = vmul.f32 %v10230_v21, %v3274_v32  ;;  %vm11978_vm6 = vmmov %vm11964_vm10 }
 0x390   : > { %vm3286_vm14 = vweird.f32 %v10145_v54  ;;  %3898 = vadd.xlane.f32.xlu0 %v3897_v14  ;;  %v3566_v61 = vmul.f32 %v11749_v41, %v3414_v35  ;;  %v3269_v15 = vsel %vm10399_vm0, %v10100_v6, %v3265_v11  ;;  %v3285_v4 = vmul.f32 %v10245_v24, %v3284_v33  ;;  %vm10435_vm8 = vmor %vm3276_vm11, %vm3277_vm7  ;;  %v3806_v11 = vpop.xlane.xlu0 %3805 }
 0x391   : > { %vm3287_vm2 = vweird.f32 %v10245_v24  ;;  %v4234_v37 = vperm.slane %v11968_v43, %v11897_v60  ;;  %v4263_v19 = vperm.slane %v3800_v16, %v11890_v7  ;;  %v4232_v6 = vperm.slane %v11971_v1, %v11890_v7 }
 0x392   : > { %v4265_v9 = vperm.slane %v3803_v63, %v11897_v60  ;;  %v3855_v30 = vsel %vm1353_vm1, %v3537_v25, 0.0  ;;  %v3552_v42 = vmul.f32 %v11725_v62, %v3400_v52  ;;  %vm11974_vm9 = vcmask 851712   ;;  %vm10467_vm0 = vmor %vm3286_vm14, %vm3287_vm2 }
 0x393   : > { %v4264_v55 = vsel %vm11974_vm9, %v4263_v19, %v4262_v2  ;;  %v4230_v34 = vperm.slane %v3749_v8, %v11876_v31  ;;  %v3415_v63 = vmul.f32 %v3269_v15, %v11975_v5  ;;  %v3129_v38 = vsel %vm10422_vm4, %v11963_v26, %v3125_v12  ;;  %vm11979_vm5 = vmmov %vm11974_vm9  ;;  %v11981_v2 = vld [vmem:[#allocation62_spill] sm:$0xff] }
 0x394   : > { %vm11976_vm15 = vcmask 917312   ;;  %v4267_v32 = vperm.slane %v3806_v11, %v11908_v56  ;;  %v3942_v22 = vsel %vm1353_vm1, %v3566_v61, 0.0  ;;  %v3279_v57 = vsel %vm10435_vm8, %v10230_v21, %v3275_v18 }
 0x395   : > { %v4266_v27 = vsel %vm11976_vm15, %v4265_v9, %v4264_v55  ;;  %v4236_v17 = vperm.slane %v11977_v3, %v11908_v56  ;;  %v4238_v35 = vperm.slane %v9858_v44, %v11924_v28  ;;  %v4231_v10 = vsel %vm11978_vm6, %v4230_v34, %v4229_v13  ;;  %3943 = vadd.xlane.f32.xlu1 %v3942_v22  ;;  %vm11982_vm10 = vmmov %vm11976_vm15  ;;  %v11983_v44 = vld [vmem:[#allocation232_spill] sm:$0xff] }
 0x396   : > { %v4233_v26 = vsel %vm11979_vm5, %v4232_v6, %v4231_v10  ;;  %vm11980_vm13 = vcmask 982912   ;;  %vm4368_vm3 = vcmask 1043459   ;;  %v3401_v48 = vmul.f32 %v3129_v38, %v11981_v2  ;;  %3856 = vadd.xlane.f32.xlu2 %v3855_v30  ;;  %v3809_v12 = vpop.xlane.xlu1 %3808  ;;  %v3812_v15 = vpop.xlane.xlu2 %3811 }
 0x397   : > { %v4268_v33 = vsel %vm11980_vm13, %v4267_v32, %v4266_v27  ;;  %v5333_v25 = vmov 0   ;;  %v4235_v21 = vsel %vm11982_vm10, %v4234_v37, %v4233_v26  ;;  %v3900_v53 = vsel %vm1353_vm1, %v3552_v42, 0.0  ;;  %vm11986_vm11 = vmmov %vm11980_vm13 }
 0x398   : > { %5002 = vset.pattern.permute.xlu0 %v5333_v25  ;;  %v3567_v52 = vmul.f32 %v11749_v41, %v3415_v63  ;;  %v3416_v59 = vmul.f32 %v3279_v57, %v11983_v44  ;;  %v4237_v14 = vsel %vm11986_vm11, %v4236_v17, %v4235_v21  ;;  %vm4370_vm7 = vcmask 1044484   ;;  %v3815_v19 = vpop.xlane.xlu0 %3814  ;;  %v4381_v25 = vld [vmem:[%s339_s8] sm:$0xff]  ;;  %s5283_s8 = sshra.s32 %s4422_s20, 4  ;;  %s5284_s8 = int_to_ptr.hbm [resolvable:$true] %s5283_s8 }
 0x399   : > { %3901 = vadd.xlane.f32.xlu0 %v3900_v53  ;;  %v4239_v18 = vsel %vm4145_vm12, %v4238_v35, %v4237_v14  ;;  %v4269_v16 = vperm.slane %v3809_v12, %v11924_v28  ;;  %v3289_v61 = vsel %vm10467_vm0, %v10245_v24, %v3285_v4  ;;  %v3553_v43 = vmul.f32 %v11725_v62, %v3401_v48  ;;  %v11987_v24 = vld [vmem:[#allocation51_spill] sm:$0xff]  ;;  %s5285_s28 = scalar_lea.hbm %s5284_s8, 8  ;;  %p5290_p1 = scmp.lt.s32.totalorder %s5284_s8, %s10644_s6 }
 0x39a   : > { %v4369_v54 = vsel %vm4368_vm3, %v4239_v18, %v10269_v36  ;;  %v3945_v45 = vsel %vm1353_vm1, %v3567_v52, 0.0  ;;  %v3568_v1 = vmul.f32 %v11749_v41, %v3416_v59  ;;  %v4271_v9 = vperm.slane %v3812_v15, %v7770_v51  ;;  %p5286_p12 = scmp.ne.s32.totalorder %s5284_s8, %s5285_s28  ;;  %p5291_p2 = scmp.lt.s32.totalorder %s5289_s16, %s5285_s28 }
 0x39b   : > { %v4270_v37 = vsel %vm4145_vm12, %v4269_v16, %v4268_v33  ;;  %v4272_v8 = vperm.slane %v3815_v19, %v7839_v58  ;;  %v3417_v4 = vmul.f32 %v3289_v61, %v11987_v24  ;;  %vm11988_vm14 = vcmask 130112  }
 0x39c   : > { %v10483_v6 = vsel %vm4370_vm7, %v4270_v37, %v4369_v54  ;;  %v3903_v62 = vsel %vm1353_vm1, %v3553_v43, 0.0  ;;  %v3948_v30 = vsel %vm1353_vm1, %v3568_v1, 0.0  ;;  %vm11989_vm2 = vcmask 195712   ;;  %vm11992_vm9 = vmmov %vm11988_vm14  ;;  %p5287_p13 = pnand %p5286_p12, %p5409_p5  ;;  %p5292_p3 = por %p5291_p2, %p5290_p1 }
 0x39d   : > { %3946 = vadd.xlane.f32.xlu1 %v3945_v45  ;;  %v4273_v36 = vsel %vm11988_vm14, %v4272_v8, %v4271_v9  ;;  %v3569_v29 = vmul.f32 %v11749_v41, %v3417_v4  ;;  %vm11990_vm4 = vcmask 261312   ;;  %vm11991_vm8 = vcmask 326912   ;;  %vm11994_vm15 = vmmov %vm11992_vm9 }
 0x39e   : > { %3904 = vadd.xlane.f32.xlu2 %v3903_v62  ;;  %v3818_v42 = vpop.xlane.xlu1 %3817  ;;  %v3821_v34 = vpop.xlane.xlu2 %3820  ;;  %vm11995_vm6 = vmmov %vm11990_vm4  ;;  %vm11997_vm13 = vcmask 392512   ;;  %vm12000_vm0 = vcmask 458112   ;;  %vm12003_vm14 = vcmask 523712   ;;  %p5288_p0 = pneg %p5287_p13 }
 0x39f   : > { %v4274_v55 = vperm.slane %v3818_v42, %v11658_v50  ;;  %v4276_v5 = vperm.slane %v3821_v34, %v11710_v39  ;;  %v3951_v27 = vsel %vm1353_vm1, %v3569_v29, 0.0  ;;  %vm11993_vm1 = vmmov %vm11989_vm2 }
 0x3a0   : > { %v3824_v63 = vpop.xlane.xlu0 %3823  ;;  %vm11996_vm5 = vmmov %vm11993_vm1  ;;  %p5293_p4 = pnand %p5292_p3, %p5288_p0 }
 0x3a1   : > { %3949 = vadd.xlane.f32.xlu0 %v3948_v30  ;;  %v4275_v11 = vsel %vm11989_vm2, %v4274_v55, %v4273_v36  ;;  %v4278_v38 = vperm.slane %v3824_v63, %v11736_v20  ;;  %vm11998_vm3 = vmmov %vm11991_vm8  ;;  %vm12004_vm2 = vcmask 589312  }
 0x3a2   : > { %v4277_v32 = vsel %vm11990_vm4, %v4276_v5, %v4275_v11  ;;  %vm11999_vm10 = vmmov %vm11990_vm4  ;;  %vm12005_vm4 = vcmask 654912  }
 0x3a3   : > { %v4279_v22 = vsel %vm11991_vm8, %v4278_v38, %v4277_v32  ;;  %vm12001_vm11 = vmmov %vm11997_vm13  ;;  %vm12006_vm8 = vcmask 720512  }
 0x3a4   : > { %vm12002_vm7 = vmmov %vm11998_vm3 }
 0x3a5   : > { %3952 = vadd.xlane.f32.xlu1 %v3951_v27 }
 0x3a6   : > { %v3860_v57 = vpop.xlane.xlu1 %3859  ;;  %v3863_v3 = vpop.xlane.xlu2 %3862 }
 0x3a7   : > { %v4302_v41 = vperm.slane %v3860_v57, %v7770_v51  ;;  %v4303_v17 = vperm.slane %v3863_v3, %v7839_v58 }
 0x3a8   : > { %v3866_v35 = vpop.xlane.xlu0 %3865 }
 0x3a9   : > { %v4305_v10 = vperm.slane %v3866_v35, %v11658_v50  ;;  %v4304_v26 = vsel %vm11992_vm9, %v4303_v17, %v4302_v41  ;;  %vm12007_vm9 = vcmask 786112  }
 0x3ab   : > { %v4306_v33 = vsel %vm11993_vm1, %v4305_v10, %v4304_v26  ;;  %vm12008_vm1 = vmmov %vm12000_vm0 }
 0x3ae   : > { %v3908_v2 = vpop.xlane.xlu1 %3907  ;;  %v3911_v21 = vpop.xlane.xlu2 %3910 }
 0x3af   : > { %v4333_v48 = vperm.slane %v3908_v2, %v7770_v51  ;;  %v4334_v53 = vperm.slane %v3911_v21, %v7839_v58 }
 0x3b0   : > { %v3869_v52 = vpop.xlane.xlu0 %3868 }
 0x3b1   : > { %v4307_v44 = vperm.slane %v3869_v52, %v11710_v39  ;;  %v4335_v59 = vsel %vm11994_vm15, %v4334_v53, %v4333_v48  ;;  %vm12009_vm15 = vcmask 851712  }
 0x3b3   : > { %v4308_v13 = vsel %vm11995_vm6, %v4307_v44, %v4306_v33  ;;  %vm12010_vm6 = vcmask 917312  }
 0x3b5   : > { %4393 = vperm.xlu0 %5002, %v4381_v25  }
 0x3b6   : > { %v3914_v14 = vpop.xlane.xlu1 %3913  ;;  %v3827_v18 = vpop.xlane.xlu2 %3826 }
 0x3b7   : > { %v4336_v12 = vperm.slane %v3914_v14, %v11658_v50  ;;  %v4280_v61 = vperm.slane %v3827_v18, %v11742_v49 }
 0x3b8   : > { %v3872_v54 = vpop.xlane.xlu0 %3871 }
 0x3b9   : > { %v4337_v16 = vsel %vm11996_vm5, %v4336_v12, %v4335_v59  ;;  %v4309_v15 = vperm.slane %v3872_v54, %v11736_v20  ;;  %v4281_v58 = vsel %vm11997_vm13, %v4280_v61, %v4279_v22  ;;  %vm4372_vm5 = vcmask 1045509   ;;  %vm12011_vm13 = vmmov %vm12001_vm11 }
 0x3bb   : > { %v4310_v43 = vsel %vm11998_vm3, %v4309_v15, %v4308_v13  ;;  %vm12012_vm3 = vcmask 982912  }
 0x3be   : > { %v3917_v37 = vpop.xlane.xlu1 %3916  ;;  %v3830_v45 = vpop.xlane.xlu2 %3829 }
 0x3bf   : > { %v4338_v19 = vperm.slane %v3917_v37, %v11710_v39  ;;  %v4282_v50 = vperm.slane %v3830_v45, %v8130_v40 }
 0x3c0   : > { %v3875_v9 = vpop.xlane.xlu0 %3874 }
 0x3c1   : > { %v4339_v1 = vsel %vm11999_vm10, %v4338_v19, %v4337_v16  ;;  %v4311_v8 = vperm.slane %v3875_v9, %v11742_v49  ;;  %v4283_v24 = vsel %vm12000_vm0, %v4282_v50, %v4281_v58  ;;  %vm12013_vm10 = vmmov %vm12003_vm14 }
 0x3c2   : > { %vm12014_vm0 = vmmov %vm12004_vm2 }
 0x3c3   : > { %v4312_v4 = vsel %vm12001_vm11, %v4311_v8, %v4310_v43  ;;  %vm12015_vm11 = vmmov %vm12008_vm1 }
 0x3c6   : > { %v3920_v36 = vpop.xlane.xlu1 %3919  ;;  %v3833_v30 = vpop.xlane.xlu2 %3832 }
 0x3c7   : > { %v4340_v62 = vperm.slane %v3920_v36, %v11736_v20  ;;  %v4284_v2 = vperm.slane %v3833_v30, %v8146_v0 }
 0x3c8   : > { %v3878_v29 = vpop.xlane.xlu0 %3877 }
 0x3c9   : > { %v4341_v42 = vsel %vm12002_vm7, %v4340_v62, %v4339_v1  ;;  %v4285_v44 = vsel %vm12003_vm14, %v4284_v2, %v4283_v24  ;;  %v4313_v13 = vperm.slane %v3878_v29, %v8130_v40  ;;  %vm12016_vm7 = vmmov %vm12005_vm4 }
 0x3ca   : > { %vm12017_vm14 = vmmov %vm12013_vm10 }
 0x3cb   : > { %v4314_v19 = vsel %vm12008_vm1, %v4313_v13, %v4312_v4  ;;  %vm12022_vm1 = vmmov %vm12009_vm15 }
 0x3ce   : > { %v3923_v39 = vpop.xlane.xlu1 %3922  ;;  %v3836_v55 = vpop.xlane.xlu2 %3835 }
 0x3cf   : > { %v4286_v48 = vperm.slane %v3836_v55, %v8306_v46  ;;  %v4342_v61 = vperm.slane %v3923_v39, %v11742_v49 }
 0x3d0   : > { %v3881_v34 = vpop.xlane.xlu0 %3880 }
 0x3d1   : > { %v4287_v14 = vsel %vm12004_vm2, %v4286_v48, %v4285_v44  ;;  %v4315_v43 = vperm.slane %v3881_v34, %v8146_v0  ;;  %v4343_v62 = vsel %vm12011_vm13, %v4342_v61, %v4341_v42  ;;  %vm12018_vm2 = vmmov %vm12006_vm8  ;;  %v3954_v44 = vld [vmem:[%s335_s13] sm:$0xff] }
 0x3d2   : > { %vm12025_vm13 = vmmov %vm12012_vm3 }
 0x3d3   : > { %v4316_v29 = vsel %vm12013_vm10, %v4315_v43, %v4314_v19  ;;  %vm12027_vm10 = vmmov %vm12022_vm1 }
 0x3d6   : > { %v3926_v11 = vpop.xlane.xlu1 %3925  ;;  %v3839_v5 = vpop.xlane.xlu2 %3838 }
 0x3d7   : > { %v4288_v21 = vperm.slane %v3839_v5, %v8322_v23  ;;  %v4344_v45 = vperm.slane %v3926_v11, %v8130_v40 }
 0x3d8   : > { %v3884_v63 = vpop.xlane.xlu0 %3883 }
 0x3d9   : > { %v4289_v18 = vsel %vm12005_vm4, %v4288_v21, %v4287_v14  ;;  %v4317_v1 = vperm.slane %v3884_v63, %v8306_v46  ;;  %v4345_v63 = vsel %vm12015_vm11, %v4344_v45, %v4343_v62  ;;  %vm12019_vm4 = vmmov %vm12014_vm0  ;;  %vm4376_vm11 = vcmask 1047559  }
 0x3db   : > { %v4318_v11 = vsel %vm12014_vm0, %v4317_v1, %v4316_v29 }
 0x3de   : > { %v3929_v38 = vpop.xlane.xlu1 %3928  ;;  %v3842_v27 = vpop.xlane.xlu2 %3841 }
 0x3df   : > { %v4290_v52 = vperm.slane %v3842_v27, %v11866_v47  ;;  %v4346_v30 = vperm.slane %v3929_v38, %v8146_v0 }
 0x3e0   : > { %v3887_v32 = vpop.xlane.xlu0 %3886 }
 0x3e1   : > { %v4291_v54 = vsel %vm12006_vm8, %v4290_v52, %v4289_v18  ;;  %v4319_v49 = vperm.slane %v3887_v32, %v8322_v23  ;;  %vm12020_vm8 = vmmov %vm12007_vm9 }
 0x3e3   : > { %v4320_v38 = vsel %vm12016_vm7, %v4319_v49, %v4318_v11 }
 0x3e6   : > { %v3932_v22 = vpop.xlane.xlu1 %3931  ;;  %v3845_v57 = vpop.xlane.xlu2 %3844 }
 0x3e7   : > { %v4292_v59 = vperm.slane %v3845_v57, %v11876_v31  ;;  %v4348_v39 = vperm.slane %v3932_v22, %v8306_v46  ;;  %v4347_v46 = vsel %vm12017_vm14, %v4346_v30, %v4345_v63  ;;  %vm3955_vm14 = vcmp.ne.s32.totalorder %v3954_v44, 0 }
 0x3e8   : > { %v3890_v41 = vpop.xlane.xlu0 %3889 }
 0x3e9   : > { %v4293_v37 = vsel %vm12007_vm9, %v4292_v59, %v4291_v54  ;;  %v4321_v4 = vperm.slane %v3890_v41, %v11866_v47  ;;  %v4349_v41 = vsel %vm12019_vm4, %v4348_v39, %v4347_v46  ;;  %vm12021_vm9 = vmmov %vm12016_vm7 }
 0x3ea   : > { %vm12029_vm7 = vmmov %vm12025_vm13 }
 0x3eb   : > { %v4322_v32 = vsel %vm12018_vm2, %v4321_v4, %v4320_v38 }
 0x3ee   : > { %v3935_v3 = vpop.xlane.xlu1 %3934 }
 0x3ef   : > { %v3848_v17 = vpop.xlane.xlu2 %3847  ;;  %v4350_v5 = vperm.slane %v3935_v3, %v8322_v23 }
 0x3f0   : > { %v4294_v12 = vperm.slane %v3848_v17, %v11890_v7 }
 0x3f1   : > { %v3893_v35 = vpop.xlane.xlu0 %3892  ;;  %v4351_v17 = vsel %vm12021_vm9, %v4350_v5, %v4349_v41 }
 0x3f2   : > { %v4295_v50 = vsel %vm12009_vm15, %v4294_v12, %v4293_v37  ;;  %v4323_v55 = vperm.slane %v3893_v35, %v11876_v31  ;;  %vm12023_vm15 = vmmov %vm12010_vm6 }
 0x3f3   : > { %vm12028_vm0 = vmmov %vm12023_vm15 }
 0x3f7   : > { %v10530_v20 = vpop.xlane.xlu1 %3937 }
 0x3f8   : > { %v4352_v22 = vperm.slane %v10530_v20, %v11866_v47 }
 0x3f9   : > { %v3851_v10 = vpop.xlane.xlu2 %3850 }
 0x3fa   : > { %v3896_v26 = vpop.xlane.xlu0 %3895  ;;  %v4296_v16 = vperm.slane %v3851_v10, %v11897_v60 }
 0x3fb   : > { %v4325_v42 = vperm.slane %v3896_v26, %v11890_v7 }
 0x3fc   : > { %v4297_v8 = vsel %vm12010_vm6, %v4296_v16, %v4295_v50  ;;  %vm4374_vm6 = vcmask 1046534  }
 0x400   : > { %v10532_v33 = vpop.xlane.xlu1 %3940 }
 0x401   : > { %v3854_v25 = vpop.xlane.xlu2 %3853  ;;  %v4354_v3 = vperm.slane %v10532_v33, %v11876_v31 }
 0x402   : > { %v4298_v15 = vperm.slane %v3854_v25, %v11908_v56 }
 0x403   : > { %v3899_v53 = vpop.xlane.xlu0 %3898 }
 0x404   : > { %v4299_v40 = vsel %vm12012_vm3, %v4298_v15, %v4297_v8  ;;  %v4327_v27 = vperm.slane %v3899_v53, %v11897_v60  ;;  %vm12026_vm3 = vmmov %vm12020_vm8 }
 0x408   : > { %v3944_v58 = vpop.xlane.xlu1 %3943 }
 0x409   : > { %v3857_v9 = vpop.xlane.xlu2 %3856  ;;  %v4356_v10 = vperm.slane %v3944_v58, %v11890_v7 }
 0x40a   : > { %v4300_v24 = vperm.slane %v3857_v9, %v11924_v28 }
 0x40c   : > { %v3902_v36 = vpop.xlane.xlu0 %3901  ;;  %v4301_v34 = vsel %vm4145_vm12, %v4300_v24, %v4299_v40 }
 0x40d   : > { %v4373_v0 = vsel %vm4372_vm5, %v4301_v34, %v10483_v6  ;;  %v4329_v57 = vperm.slane %v3902_v36, %v11908_v56  ;;  %v4324_v6 = vsel %vm12020_vm8, %v4323_v55, %v4322_v32  ;;  %vm12024_vm5 = vmmov %vm12018_vm2 }
 0x40e   : > { %v4326_v35 = vsel %vm12022_vm1, %v4325_v42, %v4324_v6  ;;  %v4353_v25 = vsel %vm12024_vm5, %v4352_v22, %v4351_v17 }
 0x40f   : > { %v4328_v47 = vsel %vm12023_vm15, %v4327_v27, %v4326_v35  ;;  %v4355_v31 = vsel %vm12026_vm3, %v4354_v3, %v4353_v25 }
 0x410   : > { %v3947_v23 = vpop.xlane.xlu1 %3946  ;;  %v4330_v21 = vsel %vm12025_vm13, %v4329_v57, %v4328_v47  ;;  %v4357_v33 = vsel %vm12027_vm10, %v4356_v10, %v4355_v31 }
 0x411   : > { %v3905_v26 = vpop.xlane.xlu2 %3904  ;;  %v4358_v20 = vperm.slane %v3947_v23, %v11897_v60 }
 0x412   : > { %v4331_v2 = vperm.slane %v3905_v26, %v11924_v28 }
 0x413   : > { %v4359_v52 = vsel %vm12028_vm0, %v4358_v20, %v4357_v33 }
 0x414   : > { %v3950_v48 = vpop.xlane.xlu0 %3949  ;;  %v4332_v7 = vsel %vm4145_vm12, %v4331_v2, %v4330_v21 }
 0x415   : > { %v4360_v60 = vperm.slane %v3950_v48, %v11908_v56  ;;  %v4375_v53 = vsel %vm4374_vm6, %v4332_v7, %v4373_v0 }
 0x417   : > { %v4361_v14 = vsel %vm12029_vm7, %v4360_v60, %v4359_v52 }
 0x418   : > { %v3953_v59 = vpop.xlane.xlu1 %3952 }
 0x419   : > { %v4362_v13 = vperm.slane %v3953_v59, %v11924_v28 }
 0x41b   : > { %v4363_v12 = vsel %vm4145_vm12, %v4362_v13, %v4361_v14 }
 0x41c   : > { %v4377_v18 = vsel %vm4376_vm11, %v4363_v12, %v4375_v53 }
 0x41d   : > { %v4379_v16 = vsel %vm3955_vm14, -10000.0, %v4377_v18 }
 0x41e   : > { %4382 = vmax.xlane.f32.xlu2 %v4379_v16  ;;  %4380 = vst [vmem:[%s314_s21] sm:$0xff] %v4379_v16 }
 0x427   : > { %v4394_v61 = vpop.permute.xlu0 %4393 }
 0x428   : > { %vm4395_vm2 = vcmp.eq.s32.totalorder %v7770_v51, %v4394_v61 }
 0x429   : > { %v4396_v56 = vsel %vm4395_vm2, %v4379_v16, 0.0 }
 0x42a   : > { %4397 = vadd.xlane.f32.xlu2 %v4396_v56 }
 0x491   : > { %v4383_v54 = vpop.xlane.xlu2 %4382 }
 0x492   : > { %v4384_v15 = vsub.f32 %v4379_v16, %v4383_v54 }
 0x494   : > { %v4385_v58 = vmul.f32 1.442695, %v4384_v15 }
 0x496   : > { %5262 = vpow2.f32 %v4385_v58 }
 0x49c   : > { %v5263_v28 = vpop.eup %5262 }
 0x49d   : > { %4387 = vadd.xlane.f32.xlu1 %v5263_v28 }
 0x49e   : > { %5296 = shalt.err (!%p5293_p4)
}
 0x49f   : > { %4962 = dma.vmem_to_hbm [thread:$0]  (%p5409_p5), %s4420_s23, 128, %s4422_s20, %s4403_s29   ;;  %v4398_v45 = vpop.xlane.xlu2 %4397  ;;  %vm4400_vm12 = vcmask 7168  }
 0x4a0   : > { %s343_s19 = scalar_lea.vmem %s10645_s7, %s10502_s22 }
 0x510   : > { %v4388_v51 = vpop.xlane.xlu1 %4387 }
 0x511   : > { %5264 = vlog2.f32 %v4388_v51 }
 0x517   : > { %v5265_v43 = vpop.eup %5264 }
 0x518   : > { %v4390_v37 = vmul.f32 0.6931472, %v5265_v43 }
 0x51a   : > { %v4391_v19 = vadd.f32 %v4390_v37, %v4383_v54 }
 0x51c   : > { %v4399_v1 = vsub.f32 %v4391_v19, %v4398_v45 }
 0x51e   : > { %4401 = vst.msk [vmem:[%s343_s19] sm:$0xff] %vm4400_vm12, %v4399_v1 }
 0x51f PF: > { %p4968_p7 = scmp.ge.s32.totalorder %s5331_s27, 2  ;;  %s4436_s11 = sand.u32 1, %s5319_s24  }
 0x520   : > { %s4437_s20 = scalar_lea.sflag [#allocation3], %s4436_s11 }
 0x521   : > { %p4965_p5 = pnand %p4968_p7, %p5413_p6 }
 0x523   : > { %p4966_p8 = pneg %p4965_p5 }
 0x525   : > { %5314 = dma.done.wait (%p4966_p8), %s4437_s20, 128  }
 0x526   : > { %5316 = vsyncadd (%p4966_p8), %s4437_s20, 4294967168  ;;  %p18_p9 = scmp.ge.s32.totalorder %s5397_s30, 5   ;;  %s12030_s24 = smov %s5323_s25 }
 0x527   : > { %s12031_s25 = smov %s5327_s26  ;;  %s12032_s26 = smov %s5407_s10 }
 0x528   : > { %s12033_s27 = smov %s5397_s30  ;;  %20 = sbr.rel (!%p18_p9) target bundleno = 3 (0x3), region = 100 }
 0x52d   :  { %4450 = vsyncpa [#allocation3], 1 }
 0x52e   :  { %4452 = vsyncpa [#allocation3 + $0x1], 1 }

</bundles_post_ra>
